<compile_context>
chip_gen: v6e
topology: v6e:2x2x1
jax: 0.10.0
libtpu: 0.0.40
codegen_flags: <defaults>
</compile_context>

<pallas_src>
import math

import jax
import jax.numpy as jnp
from jax.experimental import pallas as pl
from jax.experimental.pallas import tpu as pltpu

# ---- compact ViT-shaped "CFG" ---------------------------------------------------
B = 2                       # batch
C = 3                       # image channels
IMG = 16                    # image height / width
P = 4                       # patch size
N_TOK = (IMG // P) ** 2     # 16 tokens per image
PATCH_DIM = C * P * P       # 48
D = 32                      # CFG.image_embedding (hidden dim)
N_HEADS = 4
HD = D // N_HEADS           # 8
FF = 4 * D                  # 128
N_LAYERS = 2
EPS = 1e-6


def _layernorm(x, g, b):
    mu = jnp.mean(x, axis=-1, keepdims=True)
    var = jnp.mean((x - mu) ** 2, axis=-1, keepdims=True)
    return (x - mu) * jax.lax.rsqrt(var + EPS) * g + b


def _gelu(x):
    # exact (erf-based) GELU, as in timm ViT blocks
    return 0.5 * x * (1.0 + jax.lax.erf(x / jnp.sqrt(jnp.float32(2.0))))


def _patchify(x):
    """(B, C, H, W) -> (B*N_TOK, C*P*P): non-overlapping PxP patches (im2col of the
    conv patch-embed).  Pure data layout, done once in XLA outside the kernel."""
    b, c, h, w = x.shape
    gh, gw = h // P, w // P
    x = x.reshape(b, c, gh, P, gw, P)
    x = x.transpose(0, 2, 4, 1, 3, 5)           # (B, gh, gw, C, P, P)
    return x.reshape(b * gh * gw, c * P * P)


# --------------------------- fused Pallas kernel ----------------------------------
def image_encoder_kernel(
    patches_ref, wp_ref, bp_ref, pos_ref,
    ln1g_ref, ln1b_ref, wqkv_ref, bqkv_ref, wo_ref, bo_ref,
    ln2g_ref, ln2b_ref, w1_ref, b1_ref, w2_ref, b2_ref,
    lnfg_ref, lnfb_ref,
    o_ref,
):
    # patch embedding + positional embedding; batch flattened to (B*N_TOK, D)
    patches = patches_ref[...].astype(jnp.float32)
    x = jnp.dot(patches, wp_ref[...], preferred_element_type=jnp.float32) + bp_ref[...]
    x = x + jnp.concatenate([pos_ref[...]] * B, axis=0)

    scale = 1.0 / math.sqrt(HD)

    for l in range(N_LAYERS):                    # layers unrolled over stacked weights
        # ---- pre-norm multi-head self-attention ----
        y = _layernorm(x, ln1g_ref[l], ln1b_ref[l])
        qkv = jnp.dot(y, wqkv_ref[l], preferred_element_type=jnp.float32) + bqkv_ref[l]

        ctx_rows = []
        for b in range(B):                                   # static row slices
            rows = qkv[b * N_TOK:(b + 1) * N_TOK]            # (N_TOK, 3D)
            heads = []
            for h in range(N_HEADS):                         # static column slices
                c0 = h * HD
                q = rows[:, c0:c0 + HD] * scale
                k = rows[:, D + c0:D + c0 + HD]
                v = rows[:, 2 * D + c0:2 * D + c0 + HD]
                s = jax.lax.dot_general(                     # q @ k.T (no transpose op)
                    q, k, (((1,), (1,)), ((), ())),
                    preferred_element_type=jnp.float32)      # (N_TOK, N_TOK)
                s = s - jnp.max(s, axis=-1, keepdims=True)
                p = jnp.exp(s)
                p = p * pl.reciprocal(jnp.sum(p, axis=-1, keepdims=True), approx=True)
                heads.append(jnp.dot(p, v, preferred_element_type=jnp.float32))
            ctx_rows.append(jnp.concatenate(heads, axis=-1))  # (N_TOK, D)
        ctx = jnp.concatenate(ctx_rows, axis=0)               # (B*N_TOK, D)

        x = x + jnp.dot(ctx, wo_ref[l], preferred_element_type=jnp.float32) + bo_ref[l]

        # ---- pre-norm GELU MLP ----
        y = _layernorm(x, ln2g_ref[l], ln2b_ref[l])
        h1 = _gelu(jnp.dot(y, w1_ref[l], preferred_element_type=jnp.float32) + b1_ref[l])
        x = x + jnp.dot(h1, w2_ref[l], preferred_element_type=jnp.float32) + b2_ref[l]

    # ---- final LayerNorm + global average pool over tokens ----
    x = _layernorm(x, lnfg_ref[...], lnfb_ref[...])
    pooled = jnp.concatenate(
        [jnp.mean(x[b * N_TOK:(b + 1) * N_TOK], axis=0, keepdims=True)
         for b in range(B)],
        axis=0)                                               # (B, D)
    o_ref[...] = pooled.astype(o_ref.dtype)


def image_encoder_forward(params, x):
    patches = _patchify(x).astype(jnp.float32)
    args = (
        patches, params["w_patch"], params["b_patch"], params["pos_emb"],
        params["ln1_g"], params["ln1_b"], params["wqkv"], params["bqkv"],
        params["wo"], params["bo"], params["ln2_g"], params["ln2_b"],
        params["w1"], params["b1"], params["w2"], params["b2"],
        params["lnf_g"], params["lnf_b"],
    )
    # Single fused, grid-less pallas_call: every operand is a full-array VMEM block
    # (activations + all weights total < 100 KiB, far under any generation's VMEM).
    return pl.pallas_call(
        image_encoder_kernel,
        out_shape=jax.ShapeDtypeStruct((x.shape[0], D), jnp.float32),
        compiler_params=pltpu.CompilerParams(vmem_limit_bytes=32 * 1024 * 1024),
    )(*args)


# --------------------------- pure-JAX reference -----------------------------------
def ref_forward(params, x):
    b = x.shape[0]
    h = _patchify(x).astype(jnp.float32) @ params["w_patch"] + params["b_patch"]
    h = h.reshape(b, N_TOK, D) + params["pos_emb"][None]
    for l in range(N_LAYERS):
        y = _layernorm(h, params["ln1_g"][l], params["ln1_b"][l])
        qkv = y @ params["wqkv"][l] + params["bqkv"][l]
        q, k, v = jnp.split(qkv, 3, axis=-1)
        q = q.reshape(b, N_TOK, N_HEADS, HD).transpose(0, 2, 1, 3) / math.sqrt(HD)
        k = k.reshape(b, N_TOK, N_HEADS, HD).transpose(0, 2, 1, 3)
        v = v.reshape(b, N_TOK, N_HEADS, HD).transpose(0, 2, 1, 3)
        s = jnp.einsum("bhqd,bhkd->bhqk", q, k)
        p = jax.nn.softmax(s, axis=-1)
        ctx = jnp.einsum("bhqk,bhkd->bhqd", p, v)
        ctx = ctx.transpose(0, 2, 1, 3).reshape(b, N_TOK, D)
        h = h + ctx @ params["wo"][l] + params["bo"][l]
        y = _layernorm(h, params["ln2_g"][l], params["ln2_b"][l])
        mlp = _gelu(y @ params["w1"][l] + params["b1"][l]) @ params["w2"][l] + params["b2"][l]
        h = h + mlp
    h = _layernorm(h, params["lnf_g"], params["lnf_b"])
    return jnp.mean(h, axis=1)


# --------------------------- deterministic parameter init -------------------------
def _xavier(key, fan_in, fan_out):
    a = math.sqrt(6.0 / (fan_in + fan_out))
    return jax.random.uniform(key, (fan_in, fan_out), jnp.float32, -a, a)


def init_params(key):
    n_keys = 3 + N_LAYERS * 12 + 2
    keys = iter(jax.random.split(key, n_keys))
    nrm = lambda k, shape, s=0.02: s * jax.random.normal(k, shape, jnp.float32)

    params = {
        "w_patch": _xavier(next(keys), PATCH_DIM, D),   # pre-transposed: (in, out)
        "b_patch": nrm(next(keys), (1, D)),
        "pos_emb": nrm(next(keys), (N_TOK, D)),
    }
    per_layer = {k: [] for k in
                 ("wqkv", "bqkv", "wo", "bo", "w1", "b1", "w2", "b2",
                  "ln1_g", "ln1_b", "ln2_g", "ln2_b")}
    for _ in range(N_LAYERS):
        per_layer["wqkv"].append(_xavier(next(keys), D, 3 * D))   # fused Q,K,V
        per_layer["bqkv"].append(nrm(next(keys), (1, 3 * D)))
        per_layer["wo"].append(_xavier(next(keys), D, D))
        per_layer["bo"].append(nrm(next(keys), (1, D)))
        per_layer["w1"].append(_xavier(next(keys), D, FF))
        per_layer["b1"].append(nrm(next(keys), (1, FF)))
        per_layer["w2"].append(_xavier(next(keys), FF, D))
        per_layer["b2"].append(nrm(next(keys), (1, D)))
        per_layer["ln1_g"].append(1.0 + nrm(next(keys), (1, D), 0.1))
        per_layer["ln1_b"].append(nrm(next(keys), (1, D), 0.1))
        per_layer["ln2_g"].append(1.0 + nrm(next(keys), (1, D), 0.1))
        per_layer["ln2_b"].append(nrm(next(keys), (1, D), 0.1))
    for k, v in per_layer.items():
        params[k] = jnp.stack(v, axis=0)                # leading layer axis
    params["lnf_g"] = 1.0 + nrm(next(keys), (1, D), 0.1)
    params["lnf_b"] = nrm(next(keys), (1, D), 0.1)
    return params


if __name__ == "__main__":
    root = jax.random.PRNGKey(0)
    kp, kx = jax.random.split(root)
    params = init_params(kp)
    x = jax.random.normal(kx, (B, C, IMG, IMG), jnp.float32)

    fwd = jax.jit(image_encoder_forward)
    out = jax.block_until_ready(fwd(params, x))

    ref = jax.block_until_ready(ref_forward(params, x))
    assert out.shape == (B, D), out.shape
    # approx=True softmax reciprocal (EUP vrcp) -> allow ~1e-3 tolerance
    assert jnp.allclose(out, ref, atol=1e-3, rtol=1e-3), float(jnp.max(jnp.abs(out - ref)))
    print("KERNEL_OK")
</pallas_src>

<mosaic_0001>
module attributes {stable_mosaic.version = 11 : i64} {
  func.func @image_encoder_kernel(%arg0: memref<32x48xf32, #tpu.memory_space<vmem>>, %arg1: memref<48x32xf32, #tpu.memory_space<vmem>>, %arg2: memref<1x32xf32, #tpu.memory_space<vmem>>, %arg3: memref<16x32xf32, #tpu.memory_space<vmem>>, %arg4: memref<2x1x32xf32, #tpu.memory_space<vmem>>, %arg5: memref<2x1x32xf32, #tpu.memory_space<vmem>>, %arg6: memref<2x32x96xf32, #tpu.memory_space<vmem>>, %arg7: memref<2x1x96xf32, #tpu.memory_space<vmem>>, %arg8: memref<2x32x32xf32, #tpu.memory_space<vmem>>, %arg9: memref<2x1x32xf32, #tpu.memory_space<vmem>>, %arg10: memref<2x1x32xf32, #tpu.memory_space<vmem>>, %arg11: memref<2x1x32xf32, #tpu.memory_space<vmem>>, %arg12: memref<2x32x128xf32, #tpu.memory_space<vmem>>, %arg13: memref<2x1x128xf32, #tpu.memory_space<vmem>>, %arg14: memref<2x128x32xf32, #tpu.memory_space<vmem>>, %arg15: memref<2x1x32xf32, #tpu.memory_space<vmem>>, %arg16: memref<1x32xf32, #tpu.memory_space<vmem>>, %arg17: memref<1x32xf32, #tpu.memory_space<vmem>>, %arg18: memref<2x32xf32, #tpu.memory_space<vmem>>) attributes {dimension_semantics = [], scalar_prefetch = 0 : i64, scratch_operands = 0 : i64, tpu.core_type = #tpu.core_type<tc>} {
    %c0 = arith.constant 0 : index
    %c0_0 = arith.constant 0 : index
    %0 = vector.load %arg0[%c0, %c0_0] : memref<32x48xf32, #tpu.memory_space<vmem>>, vector<32x48xf32>
    %c0_1 = arith.constant 0 : index
    %c0_2 = arith.constant 0 : index
    %1 = vector.load %arg1[%c0_1, %c0_2] : memref<48x32xf32, #tpu.memory_space<vmem>>, vector<48x32xf32>
    %cst = arith.constant dense<0.000000e+00> : vector<32x32xf32>
    %2 = tpu.matmul %0, %1, %cst {dimension_numbers = #tpu.dot_dimension_numbers<[1], [0], [0], [1], [0, 0, 1, 1], [], []>} : vector<32x48xf32>, vector<48x32xf32>, vector<32x32xf32> -> vector<32x32xf32>
    %c0_3 = arith.constant 0 : index
    %c0_4 = arith.constant 0 : index
    %3 = vector.load %arg2[%c0_3, %c0_4] : memref<1x32xf32, #tpu.memory_space<vmem>>, vector<1x32xf32>
    %4 = vector.broadcast %3 : vector<1x32xf32> to vector<32x32xf32>
    %5 = arith.addf %2, %4 : vector<32x32xf32>
    %c0_5 = arith.constant 0 : index
    %c0_6 = arith.constant 0 : index
    %6 = vector.load %arg3[%c0_5, %c0_6] : memref<16x32xf32, #tpu.memory_space<vmem>>, vector<16x32xf32>
    %7 = tpu.concatenate %6, %6 in 0 : vector<16x32xf32>, vector<16x32xf32> -> vector<32x32xf32>
    %8 = arith.addf %5, %7 : vector<32x32xf32>
    %c0_7 = arith.constant 0 : index
    %c0_8 = arith.constant 0 : index
    %c0_9 = arith.constant 0 : index
    %9 = vector.load %arg4[%c0_7, %c0_8, %c0_9] : memref<2x1x32xf32, #tpu.memory_space<vmem>>, vector<1x1x32xf32>
    %10 = vector.shape_cast %9 : vector<1x1x32xf32> to vector<1x32xf32>
    %c0_10 = arith.constant 0 : index
    %c0_11 = arith.constant 0 : index
    %c0_12 = arith.constant 0 : index
    %11 = vector.load %arg5[%c0_10, %c0_11, %c0_12] : memref<2x1x32xf32, #tpu.memory_space<vmem>>, vector<1x1x32xf32>
    %12 = vector.shape_cast %11 : vector<1x1x32xf32> to vector<1x32xf32>
    %cst_13 = arith.constant dense<0.000000e+00> : vector<32xf32>
    %13 = vector.multi_reduction <add>, %8, %cst_13 [1] : vector<32x32xf32> to vector<32xf32>
    %14 = vector.shape_cast %13 : vector<32xf32> to vector<32x1xf32>
    %cst_14 = arith.constant 3.200000e+01 : f32
    %15 = vector.broadcast %cst_14 : f32 to vector<32x1xf32>
    %16 = arith.divf %14, %15 : vector<32x1xf32>
    %17 = vector.broadcast %16 : vector<32x1xf32> to vector<32x32xf32>
    %18 = arith.subf %8, %17 : vector<32x32xf32>
    %19 = arith.mulf %18, %18 : vector<32x32xf32>
    %cst_15 = arith.constant dense<0.000000e+00> : vector<32xf32>
    %20 = vector.multi_reduction <add>, %19, %cst_15 [1] : vector<32x32xf32> to vector<32xf32>
    %21 = vector.shape_cast %20 : vector<32xf32> to vector<32x1xf32>
    %cst_16 = arith.constant 3.200000e+01 : f32
    %22 = vector.broadcast %cst_16 : f32 to vector<32x1xf32>
    %23 = arith.divf %21, %22 : vector<32x1xf32>
    %24 = vector.broadcast %16 : vector<32x1xf32> to vector<32x32xf32>
    %25 = arith.subf %8, %24 : vector<32x32xf32>
    %cst_17 = arith.constant 9.99999997E-7 : f32
    %26 = vector.broadcast %cst_17 : f32 to vector<32x1xf32>
    %27 = arith.addf %23, %26 : vector<32x1xf32>
    %28 = math.rsqrt %27 : vector<32x1xf32>
    %29 = vector.broadcast %28 : vector<32x1xf32> to vector<32x32xf32>
    %30 = arith.mulf %25, %29 : vector<32x32xf32>
    %31 = vector.broadcast %10 : vector<1x32xf32> to vector<32x32xf32>
    %32 = arith.mulf %30, %31 : vector<32x32xf32>
    %33 = vector.broadcast %12 : vector<1x32xf32> to vector<32x32xf32>
    %34 = arith.addf %32, %33 : vector<32x32xf32>
    %c0_18 = arith.constant 0 : index
    %c0_19 = arith.constant 0 : index
    %c0_20 = arith.constant 0 : index
    %35 = vector.load %arg6[%c0_18, %c0_19, %c0_20] : memref<2x32x96xf32, #tpu.memory_space<vmem>>, vector<1x32x96xf32>
    %36 = vector.shape_cast %35 : vector<1x32x96xf32> to vector<32x96xf32>
    %cst_21 = arith.constant dense<0.000000e+00> : vector<32x96xf32>
    %37 = tpu.matmul %34, %36, %cst_21 {dimension_numbers = #tpu.dot_dimension_numbers<[1], [0], [0], [1], [0, 0, 1, 1], [], []>} : vector<32x32xf32>, vector<32x96xf32>, vector<32x96xf32> -> vector<32x96xf32>
    %c0_22 = arith.constant 0 : index
    %c0_23 = arith.constant 0 : index
    %c0_24 = arith.constant 0 : index
    %38 = vector.load %arg7[%c0_22, %c0_23, %c0_24] : memref<2x1x96xf32, #tpu.memory_space<vmem>>, vector<1x1x96xf32>
    %39 = vector.shape_cast %38 : vector<1x1x96xf32> to vector<1x96xf32>
    %40 = vector.broadcast %39 : vector<1x96xf32> to vector<32x96xf32>
    %41 = arith.addf %37, %40 : vector<32x96xf32>
    %42 = vector.extract_strided_slice %41 {offsets = [0, 0], sizes = [16, 96], strides = [1, 1]} : vector<32x96xf32> to vector<16x96xf32>
    %43 = vector.extract_strided_slice %42 {offsets = [0, 0], sizes = [16, 8], strides = [1, 1]} : vector<16x96xf32> to vector<16x8xf32>
    %cst_25 = arith.constant 0.353553385 : f32
    %44 = vector.broadcast %cst_25 : f32 to vector<16x8xf32>
    %45 = arith.mulf %43, %44 : vector<16x8xf32>
    %46 = vector.extract_strided_slice %42 {offsets = [0, 32], sizes = [16, 8], strides = [1, 1]} : vector<16x96xf32> to vector<16x8xf32>
    %47 = vector.extract_strided_slice %42 {offsets = [0, 64], sizes = [16, 8], strides = [1, 1]} : vector<16x96xf32> to vector<16x8xf32>
    %cst_26 = arith.constant dense<0.000000e+00> : vector<16x16xf32>
    %48 = tpu.matmul %45, %46, %cst_26 {dimension_numbers = #tpu.dot_dimension_numbers<[1], [1], [0], [0], [0, 0, 1, 0], [], []>} : vector<16x8xf32>, vector<16x8xf32>, vector<16x16xf32> -> vector<16x16xf32>
    %cst_27 = arith.constant dense<0xFF800000> : vector<16xf32>
    %49 = vector.multi_reduction <maximumf>, %48, %cst_27 [1] : vector<16x16xf32> to vector<16xf32>
    %50 = vector.shape_cast %49 : vector<16xf32> to vector<16x1xf32>
    %51 = vector.broadcast %50 : vector<16x1xf32> to vector<16x16xf32>
    %52 = arith.subf %48, %51 : vector<16x16xf32>
    %53 = math.exp %52 : vector<16x16xf32>
    %cst_28 = arith.constant dense<0.000000e+00> : vector<16xf32>
    %54 = vector.multi_reduction <add>, %53, %cst_28 [1] : vector<16x16xf32> to vector<16xf32>
    %55 = vector.shape_cast %54 : vector<16xf32> to vector<16x1xf32>
    %56 = tpu.reciprocal %55 {approx = true} : vector<16x1xf32> -> vector<16x1xf32>
    %57 = vector.broadcast %56 : vector<16x1xf32> to vector<16x16xf32>
    %58 = arith.mulf %53, %57 : vector<16x16xf32>
    %cst_29 = arith.constant dense<0.000000e+00> : vector<16x8xf32>
    %59 = tpu.matmul %58, %47, %cst_29 {dimension_numbers = #tpu.dot_dimension_numbers<[1], [0], [0], [1], [0, 0, 1, 1], [], []>} : vector<16x16xf32>, vector<16x8xf32>, vector<16x8xf32> -> vector<16x8xf32>
    %60 = vector.extract_strided_slice %42 {offsets = [0, 8], sizes = [16, 8], strides = [1, 1]} : vector<16x96xf32> to vector<16x8xf32>
    %cst_30 = arith.constant 0.353553385 : f32
    %61 = vector.broadcast %cst_30 : f32 to vector<16x8xf32>
    %62 = arith.mulf %60, %61 : vector<16x8xf32>
    %63 = vector.extract_strided_slice %42 {offsets = [0, 40], sizes = [16, 8], strides = [1, 1]} : vector<16x96xf32> to vector<16x8xf32>
    %64 = vector.extract_strided_slice %42 {offsets = [0, 72], sizes = [16, 8], strides = [1, 1]} : vector<16x96xf32> to vector<16x8xf32>
    %cst_31 = arith.constant dense<0.000000e+00> : vector<16x16xf32>
    %65 = tpu.matmul %62, %63, %cst_31 {dimension_numbers = #tpu.dot_dimension_numbers<[1], [1], [0], [0], [0, 0, 1, 0], [], []>} : vector<16x8xf32>, vector<16x8xf32>, vector<16x16xf32> -> vector<16x16xf32>
    %cst_32 = arith.constant dense<0xFF800000> : vector<16xf32>
    %66 = vector.multi_reduction <maximumf>, %65, %cst_32 [1] : vector<16x16xf32> to vector<16xf32>
    %67 = vector.shape_cast %66 : vector<16xf32> to vector<16x1xf32>
    %68 = vector.broadcast %67 : vector<16x1xf32> to vector<16x16xf32>
    %69 = arith.subf %65, %68 : vector<16x16xf32>
    %70 = math.exp %69 : vector<16x16xf32>
    %cst_33 = arith.constant dense<0.000000e+00> : vector<16xf32>
    %71 = vector.multi_reduction <add>, %70, %cst_33 [1] : vector<16x16xf32> to vector<16xf32>
    %72 = vector.shape_cast %71 : vector<16xf32> to vector<16x1xf32>
    %73 = tpu.reciprocal %72 {approx = true} : vector<16x1xf32> -> vector<16x1xf32>
    %74 = vector.broadcast %73 : vector<16x1xf32> to vector<16x16xf32>
    %75 = arith.mulf %70, %74 : vector<16x16xf32>
    %cst_34 = arith.constant dense<0.000000e+00> : vector<16x8xf32>
    %76 = tpu.matmul %75, %64, %cst_34 {dimension_numbers = #tpu.dot_dimension_numbers<[1], [0], [0], [1], [0, 0, 1, 1], [], []>} : vector<16x16xf32>, vector<16x8xf32>, vector<16x8xf32> -> vector<16x8xf32>
    %77 = vector.extract_strided_slice %42 {offsets = [0, 16], sizes = [16, 8], strides = [1, 1]} : vector<16x96xf32> to vector<16x8xf32>
    %cst_35 = arith.constant 0.353553385 : f32
    %78 = vector.broadcast %cst_35 : f32 to vector<16x8xf32>
    %79 = arith.mulf %77, %78 : vector<16x8xf32>
    %80 = vector.extract_strided_slice %42 {offsets = [0, 48], sizes = [16, 8], strides = [1, 1]} : vector<16x96xf32> to vector<16x8xf32>
    %81 = vector.extract_strided_slice %42 {offsets = [0, 80], sizes = [16, 8], strides = [1, 1]} : vector<16x96xf32> to vector<16x8xf32>
    %cst_36 = arith.constant dense<0.000000e+00> : vector<16x16xf32>
    %82 = tpu.matmul %79, %80, %cst_36 {dimension_numbers = #tpu.dot_dimension_numbers<[1], [1], [0], [0], [0, 0, 1, 0], [], []>} : vector<16x8xf32>, vector<16x8xf32>, vector<16x16xf32> -> vector<16x16xf32>
    %cst_37 = arith.constant dense<0xFF800000> : vector<16xf32>
    %83 = vector.multi_reduction <maximumf>, %82, %cst_37 [1] : vector<16x16xf32> to vector<16xf32>
    %84 = vector.shape_cast %83 : vector<16xf32> to vector<16x1xf32>
    %85 = vector.broadcast %84 : vector<16x1xf32> to vector<16x16xf32>
    %86 = arith.subf %82, %85 : vector<16x16xf32>
    %87 = math.exp %86 : vector<16x16xf32>
    %cst_38 = arith.constant dense<0.000000e+00> : vector<16xf32>
    %88 = vector.multi_reduction <add>, %87, %cst_38 [1] : vector<16x16xf32> to vector<16xf32>
    %89 = vector.shape_cast %88 : vector<16xf32> to vector<16x1xf32>
    %90 = tpu.reciprocal %89 {approx = true} : vector<16x1xf32> -> vector<16x1xf32>
    %91 = vector.broadcast %90 : vector<16x1xf32> to vector<16x16xf32>
    %92 = arith.mulf %87, %91 : vector<16x16xf32>
    %cst_39 = arith.constant dense<0.000000e+00> : vector<16x8xf32>
    %93 = tpu.matmul %92, %81, %cst_39 {dimension_numbers = #tpu.dot_dimension_numbers<[1], [0], [0], [1], [0, 0, 1, 1], [], []>} : vector<16x16xf32>, vector<16x8xf32>, vector<16x8xf32> -> vector<16x8xf32>
    %94 = vector.extract_strided_slice %42 {offsets = [0, 24], sizes = [16, 8], strides = [1, 1]} : vector<16x96xf32> to vector<16x8xf32>
    %cst_40 = arith.constant 0.353553385 : f32
    %95 = vector.broadcast %cst_40 : f32 to vector<16x8xf32>
    %96 = arith.mulf %94, %95 : vector<16x8xf32>
    %97 = vector.extract_strided_slice %42 {offsets = [0, 56], sizes = [16, 8], strides = [1, 1]} : vector<16x96xf32> to vector<16x8xf32>
    %98 = vector.extract_strided_slice %42 {offsets = [0, 88], sizes = [16, 8], strides = [1, 1]} : vector<16x96xf32> to vector<16x8xf32>
    %cst_41 = arith.constant dense<0.000000e+00> : vector<16x16xf32>
    %99 = tpu.matmul %96, %97, %cst_41 {dimension_numbers = #tpu.dot_dimension_numbers<[1], [1], [0], [0], [0, 0, 1, 0], [], []>} : vector<16x8xf32>, vector<16x8xf32>, vector<16x16xf32> -> vector<16x16xf32>
    %cst_42 = arith.constant dense<0xFF800000> : vector<16xf32>
    %100 = vector.multi_reduction <maximumf>, %99, %cst_42 [1] : vector<16x16xf32> to vector<16xf32>
    %101 = vector.shape_cast %100 : vector<16xf32> to vector<16x1xf32>
    %102 = vector.broadcast %101 : vector<16x1xf32> to vector<16x16xf32>
    %103 = arith.subf %99, %102 : vector<16x16xf32>
    %104 = math.exp %103 : vector<16x16xf32>
    %cst_43 = arith.constant dense<0.000000e+00> : vector<16xf32>
    %105 = vector.multi_reduction <add>, %104, %cst_43 [1] : vector<16x16xf32> to vector<16xf32>
    %106 = vector.shape_cast %105 : vector<16xf32> to vector<16x1xf32>
    %107 = tpu.reciprocal %106 {approx = true} : vector<16x1xf32> -> vector<16x1xf32>
    %108 = vector.broadcast %107 : vector<16x1xf32> to vector<16x16xf32>
    %109 = arith.mulf %104, %108 : vector<16x16xf32>
    %cst_44 = arith.constant dense<0.000000e+00> : vector<16x8xf32>
    %110 = tpu.matmul %109, %98, %cst_44 {dimension_numbers = #tpu.dot_dimension_numbers<[1], [0], [0], [1], [0, 0, 1, 1], [], []>} : vector<16x16xf32>, vector<16x8xf32>, vector<16x8xf32> -> vector<16x8xf32>
    %111 = tpu.concatenate %59, %76, %93, %110 in 1 : vector<16x8xf32>, vector<16x8xf32>, vector<16x8xf32>, vector<16x8xf32> -> vector<16x32xf32>
    %112 = vector.extract_strided_slice %41 {offsets = [16, 0], sizes = [16, 96], strides = [1, 1]} : vector<32x96xf32> to vector<16x96xf32>
    %113 = vector.extract_strided_slice %112 {offsets = [0, 0], sizes = [16, 8], strides = [1, 1]} : vector<16x96xf32> to vector<16x8xf32>
    %cst_45 = arith.constant 0.353553385 : f32
    %114 = vector.broadcast %cst_45 : f32 to vector<16x8xf32>
    %115 = arith.mulf %113, %114 : vector<16x8xf32>
    %116 = vector.extract_strided_slice %112 {offsets = [0, 32], sizes = [16, 8], strides = [1, 1]} : vector<16x96xf32> to vector<16x8xf32>
    %117 = vector.extract_strided_slice %112 {offsets = [0, 64], sizes = [16, 8], strides = [1, 1]} : vector<16x96xf32> to vector<16x8xf32>
    %cst_46 = arith.constant dense<0.000000e+00> : vector<16x16xf32>
    %118 = tpu.matmul %115, %116, %cst_46 {dimension_numbers = #tpu.dot_dimension_numbers<[1], [1], [0], [0], [0, 0, 1, 0], [], []>} : vector<16x8xf32>, vector<16x8xf32>, vector<16x16xf32> -> vector<16x16xf32>
    %cst_47 = arith.constant dense<0xFF800000> : vector<16xf32>
    %119 = vector.multi_reduction <maximumf>, %118, %cst_47 [1] : vector<16x16xf32> to vector<16xf32>
    %120 = vector.shape_cast %119 : vector<16xf32> to vector<16x1xf32>
    %121 = vector.broadcast %120 : vector<16x1xf32> to vector<16x16xf32>
    %122 = arith.subf %118, %121 : vector<16x16xf32>
    %123 = math.exp %122 : vector<16x16xf32>
    %cst_48 = arith.constant dense<0.000000e+00> : vector<16xf32>
    %124 = vector.multi_reduction <add>, %123, %cst_48 [1] : vector<16x16xf32> to vector<16xf32>
    %125 = vector.shape_cast %124 : vector<16xf32> to vector<16x1xf32>
    %126 = tpu.reciprocal %125 {approx = true} : vector<16x1xf32> -> vector<16x1xf32>
    %127 = vector.broadcast %126 : vector<16x1xf32> to vector<16x16xf32>
    %128 = arith.mulf %123, %127 : vector<16x16xf32>
    %cst_49 = arith.constant dense<0.000000e+00> : vector<16x8xf32>
    %129 = tpu.matmul %128, %117, %cst_49 {dimension_numbers = #tpu.dot_dimension_numbers<[1], [0], [0], [1], [0, 0, 1, 1], [], []>} : vector<16x16xf32>, vector<16x8xf32>, vector<16x8xf32> -> vector<16x8xf32>
    %130 = vector.extract_strided_slice %112 {offsets = [0, 8], sizes = [16, 8], strides = [1, 1]} : vector<16x96xf32> to vector<16x8xf32>
    %cst_50 = arith.constant 0.353553385 : f32
    %131 = vector.broadcast %cst_50 : f32 to vector<16x8xf32>
    %132 = arith.mulf %130, %131 : vector<16x8xf32>
    %133 = vector.extract_strided_slice %112 {offsets = [0, 40], sizes = [16, 8], strides = [1, 1]} : vector<16x96xf32> to vector<16x8xf32>
    %134 = vector.extract_strided_slice %112 {offsets = [0, 72], sizes = [16, 8], strides = [1, 1]} : vector<16x96xf32> to vector<16x8xf32>
    %cst_51 = arith.constant dense<0.000000e+00> : vector<16x16xf32>
    %135 = tpu.matmul %132, %133, %cst_51 {dimension_numbers = #tpu.dot_dimension_numbers<[1], [1], [0], [0], [0, 0, 1, 0], [], []>} : vector<16x8xf32>, vector<16x8xf32>, vector<16x16xf32> -> vector<16x16xf32>
    %cst_52 = arith.constant dense<0xFF800000> : vector<16xf32>
    %136 = vector.multi_reduction <maximumf>, %135, %cst_52 [1] : vector<16x16xf32> to vector<16xf32>
    %137 = vector.shape_cast %136 : vector<16xf32> to vector<16x1xf32>
    %138 = vector.broadcast %137 : vector<16x1xf32> to vector<16x16xf32>
    %139 = arith.subf %135, %138 : vector<16x16xf32>
    %140 = math.exp %139 : vector<16x16xf32>
    %cst_53 = arith.constant dense<0.000000e+00> : vector<16xf32>
    %141 = vector.multi_reduction <add>, %140, %cst_53 [1] : vector<16x16xf32> to vector<16xf32>
    %142 = vector.shape_cast %141 : vector<16xf32> to vector<16x1xf32>
    %143 = tpu.reciprocal %142 {approx = true} : vector<16x1xf32> -> vector<16x1xf32>
    %144 = vector.broadcast %143 : vector<16x1xf32> to vector<16x16xf32>
    %145 = arith.mulf %140, %144 : vector<16x16xf32>
    %cst_54 = arith.constant dense<0.000000e+00> : vector<16x8xf32>
    %146 = tpu.matmul %145, %134, %cst_54 {dimension_numbers = #tpu.dot_dimension_numbers<[1], [0], [0], [1], [0, 0, 1, 1], [], []>} : vector<16x16xf32>, vector<16x8xf32>, vector<16x8xf32> -> vector<16x8xf32>
    %147 = vector.extract_strided_slice %112 {offsets = [0, 16], sizes = [16, 8], strides = [1, 1]} : vector<16x96xf32> to vector<16x8xf32>
    %cst_55 = arith.constant 0.353553385 : f32
    %148 = vector.broadcast %cst_55 : f32 to vector<16x8xf32>
    %149 = arith.mulf %147, %148 : vector<16x8xf32>
    %150 = vector.extract_strided_slice %112 {offsets = [0, 48], sizes = [16, 8], strides = [1, 1]} : vector<16x96xf32> to vector<16x8xf32>
    %151 = vector.extract_strided_slice %112 {offsets = [0, 80], sizes = [16, 8], strides = [1, 1]} : vector<16x96xf32> to vector<16x8xf32>
    %cst_56 = arith.constant dense<0.000000e+00> : vector<16x16xf32>
    %152 = tpu.matmul %149, %150, %cst_56 {dimension_numbers = #tpu.dot_dimension_numbers<[1], [1], [0], [0], [0, 0, 1, 0], [], []>} : vector<16x8xf32>, vector<16x8xf32>, vector<16x16xf32> -> vector<16x16xf32>
    %cst_57 = arith.constant dense<0xFF800000> : vector<16xf32>
    %153 = vector.multi_reduction <maximumf>, %152, %cst_57 [1] : vector<16x16xf32> to vector<16xf32>
    %154 = vector.shape_cast %153 : vector<16xf32> to vector<16x1xf32>
    %155 = vector.broadcast %154 : vector<16x1xf32> to vector<16x16xf32>
    %156 = arith.subf %152, %155 : vector<16x16xf32>
    %157 = math.exp %156 : vector<16x16xf32>
    %cst_58 = arith.constant dense<0.000000e+00> : vector<16xf32>
    %158 = vector.multi_reduction <add>, %157, %cst_58 [1] : vector<16x16xf32> to vector<16xf32>
    %159 = vector.shape_cast %158 : vector<16xf32> to vector<16x1xf32>
    %160 = tpu.reciprocal %159 {approx = true} : vector<16x1xf32> -> vector<16x1xf32>
    %161 = vector.broadcast %160 : vector<16x1xf32> to vector<16x16xf32>
    %162 = arith.mulf %157, %161 : vector<16x16xf32>
    %cst_59 = arith.constant dense<0.000000e+00> : vector<16x8xf32>
    %163 = tpu.matmul %162, %151, %cst_59 {dimension_numbers = #tpu.dot_dimension_numbers<[1], [0], [0], [1], [0, 0, 1, 1], [], []>} : vector<16x16xf32>, vector<16x8xf32>, vector<16x8xf32> -> vector<16x8xf32>
    %164 = vector.extract_strided_slice %112 {offsets = [0, 24], sizes = [16, 8], strides = [1, 1]} : vector<16x96xf32> to vector<16x8xf32>
    %cst_60 = arith.constant 0.353553385 : f32
    %165 = vector.broadcast %cst_60 : f32 to vector<16x8xf32>
    %166 = arith.mulf %164, %165 : vector<16x8xf32>
    %167 = vector.extract_strided_slice %112 {offsets = [0, 56], sizes = [16, 8], strides = [1, 1]} : vector<16x96xf32> to vector<16x8xf32>
    %168 = vector.extract_strided_slice %112 {offsets = [0, 88], sizes = [16, 8], strides = [1, 1]} : vector<16x96xf32> to vector<16x8xf32>
    %cst_61 = arith.constant dense<0.000000e+00> : vector<16x16xf32>
    %169 = tpu.matmul %166, %167, %cst_61 {dimension_numbers = #tpu.dot_dimension_numbers<[1], [1], [0], [0], [0, 0, 1, 0], [], []>} : vector<16x8xf32>, vector<16x8xf32>, vector<16x16xf32> -> vector<16x16xf32>
    %cst_62 = arith.constant dense<0xFF800000> : vector<16xf32>
    %170 = vector.multi_reduction <maximumf>, %169, %cst_62 [1] : vector<16x16xf32> to vector<16xf32>
    %171 = vector.shape_cast %170 : vector<16xf32> to vector<16x1xf32>
    %172 = vector.broadcast %171 : vector<16x1xf32> to vector<16x16xf32>
    %173 = arith.subf %169, %172 : vector<16x16xf32>
    %174 = math.exp %173 : vector<16x16xf32>
    %cst_63 = arith.constant dense<0.000000e+00> : vector<16xf32>
    %175 = vector.multi_reduction <add>, %174, %cst_63 [1] : vector<16x16xf32> to vector<16xf32>
    %176 = vector.shape_cast %175 : vector<16xf32> to vector<16x1xf32>
    %177 = tpu.reciprocal %176 {approx = true} : vector<16x1xf32> -> vector<16x1xf32>
    %178 = vector.broadcast %177 : vector<16x1xf32> to vector<16x16xf32>
    %179 = arith.mulf %174, %178 : vector<16x16xf32>
    %cst_64 = arith.constant dense<0.000000e+00> : vector<16x8xf32>
    %180 = tpu.matmul %179, %168, %cst_64 {dimension_numbers = #tpu.dot_dimension_numbers<[1], [0], [0], [1], [0, 0, 1, 1], [], []>} : vector<16x16xf32>, vector<16x8xf32>, vector<16x8xf32> -> vector<16x8xf32>
    %181 = tpu.concatenate %129, %146, %163, %180 in 1 : vector<16x8xf32>, vector<16x8xf32>, vector<16x8xf32>, vector<16x8xf32> -> vector<16x32xf32>
    %182 = tpu.concatenate %111, %181 in 0 : vector<16x32xf32>, vector<16x32xf32> -> vector<32x32xf32>
    %c0_65 = arith.constant 0 : index
    %c0_66 = arith.constant 0 : index
    %c0_67 = arith.constant 0 : index
    %183 = vector.load %arg8[%c0_65, %c0_66, %c0_67] : memref<2x32x32xf32, #tpu.memory_space<vmem>>, vector<1x32x32xf32>
    %184 = vector.shape_cast %183 : vector<1x32x32xf32> to vector<32x32xf32>
    %cst_68 = arith.constant dense<0.000000e+00> : vector<32x32xf32>
    %185 = tpu.matmul %182, %184, %cst_68 {dimension_numbers = #tpu.dot_dimension_numbers<[1], [0], [0], [1], [0, 0, 1, 1], [], []>} : vector<32x32xf32>, vector<32x32xf32>, vector<32x32xf32> -> vector<32x32xf32>
    %186 = arith.addf %8, %185 : vector<32x32xf32>
    %c0_69 = arith.constant 0 : index
    %c0_70 = arith.constant 0 : index
    %c0_71 = arith.constant 0 : index
    %187 = vector.load %arg9[%c0_69, %c0_70, %c0_71] : memref<2x1x32xf32, #tpu.memory_space<vmem>>, vector<1x1x32xf32>
    %188 = vector.shape_cast %187 : vector<1x1x32xf32> to vector<1x32xf32>
    %189 = vector.broadcast %188 : vector<1x32xf32> to vector<32x32xf32>
    %190 = arith.addf %186, %189 : vector<32x32xf32>
    %c0_72 = arith.constant 0 : index
    %c0_73 = arith.constant 0 : index
    %c0_74 = arith.constant 0 : index
    %191 = vector.load %arg10[%c0_72, %c0_73, %c0_74] : memref<2x1x32xf32, #tpu.memory_space<vmem>>, vector<1x1x32xf32>
    %192 = vector.shape_cast %191 : vector<1x1x32xf32> to vector<1x32xf32>
    %c0_75 = arith.constant 0 : index
    %c0_76 = arith.constant 0 : index
    %c0_77 = arith.constant 0 : index
    %193 = vector.load %arg11[%c0_75, %c0_76, %c0_77] : memref<2x1x32xf32, #tpu.memory_space<vmem>>, vector<1x1x32xf32>
    %194 = vector.shape_cast %193 : vector<1x1x32xf32> to vector<1x32xf32>
    %cst_78 = arith.constant dense<0.000000e+00> : vector<32xf32>
    %195 = vector.multi_reduction <add>, %190, %cst_78 [1] : vector<32x32xf32> to vector<32xf32>
    %196 = vector.shape_cast %195 : vector<32xf32> to vector<32x1xf32>
    %cst_79 = arith.constant 3.200000e+01 : f32
    %197 = vector.broadcast %cst_79 : f32 to vector<32x1xf32>
    %198 = arith.divf %196, %197 : vector<32x1xf32>
    %199 = vector.broadcast %198 : vector<32x1xf32> to vector<32x32xf32>
    %200 = arith.subf %190, %199 : vector<32x32xf32>
    %201 = arith.mulf %200, %200 : vector<32x32xf32>
    %cst_80 = arith.constant dense<0.000000e+00> : vector<32xf32>
    %202 = vector.multi_reduction <add>, %201, %cst_80 [1] : vector<32x32xf32> to vector<32xf32>
    %203 = vector.shape_cast %202 : vector<32xf32> to vector<32x1xf32>
    %cst_81 = arith.constant 3.200000e+01 : f32
    %204 = vector.broadcast %cst_81 : f32 to vector<32x1xf32>
    %205 = arith.divf %203, %204 : vector<32x1xf32>
    %206 = vector.broadcast %198 : vector<32x1xf32> to vector<32x32xf32>
    %207 = arith.subf %190, %206 : vector<32x32xf32>
    %cst_82 = arith.constant 9.99999997E-7 : f32
    %208 = vector.broadcast %cst_82 : f32 to vector<32x1xf32>
    %209 = arith.addf %205, %208 : vector<32x1xf32>
    %210 = math.rsqrt %209 : vector<32x1xf32>
    %211 = vector.broadcast %210 : vector<32x1xf32> to vector<32x32xf32>
    %212 = arith.mulf %207, %211 : vector<32x32xf32>
    %213 = vector.broadcast %192 : vector<1x32xf32> to vector<32x32xf32>
    %214 = arith.mulf %212, %213 : vector<32x32xf32>
    %215 = vector.broadcast %194 : vector<1x32xf32> to vector<32x32xf32>
    %216 = arith.addf %214, %215 : vector<32x32xf32>
    %c0_83 = arith.constant 0 : index
    %c0_84 = arith.constant 0 : index
    %c0_85 = arith.constant 0 : index
    %217 = vector.load %arg12[%c0_83, %c0_84, %c0_85] : memref<2x32x128xf32, #tpu.memory_space<vmem>>, vector<1x32x128xf32>
    %218 = vector.shape_cast %217 : vector<1x32x128xf32> to vector<32x128xf32>
    %cst_86 = arith.constant dense<0.000000e+00> : vector<32x128xf32>
    %219 = tpu.matmul %216, %218, %cst_86 {dimension_numbers = #tpu.dot_dimension_numbers<[1], [0], [0], [1], [0, 0, 1, 1], [], []>} : vector<32x32xf32>, vector<32x128xf32>, vector<32x128xf32> -> vector<32x128xf32>
    %c0_87 = arith.constant 0 : index
    %c0_88 = arith.constant 0 : index
    %c0_89 = arith.constant 0 : index
    %220 = vector.load %arg13[%c0_87, %c0_88, %c0_89] : memref<2x1x128xf32, #tpu.memory_space<vmem>>, vector<1x1x128xf32>
    %221 = vector.shape_cast %220 : vector<1x1x128xf32> to vector<1x128xf32>
    %222 = vector.broadcast %221 : vector<1x128xf32> to vector<32x128xf32>
    %223 = arith.addf %219, %222 : vector<32x128xf32>
    %cst_90 = arith.constant 5.000000e-01 : f32
    %224 = vector.broadcast %cst_90 : f32 to vector<32x128xf32>
    %225 = arith.mulf %224, %223 : vector<32x128xf32>
    %cst_91 = arith.constant 2.000000e+00 : f32
    %226 = math.sqrt %cst_91 : f32
    %227 = vector.broadcast %226 : f32 to vector<32x128xf32>
    %228 = arith.divf %223, %227 : vector<32x128xf32>
    %229 = math.erf %228 : vector<32x128xf32>
    %cst_92 = arith.constant 1.000000e+00 : f32
    %230 = vector.broadcast %cst_92 : f32 to vector<32x128xf32>
    %231 = arith.addf %230, %229 : vector<32x128xf32>
    %232 = arith.mulf %225, %231 : vector<32x128xf32>
    %c0_93 = arith.constant 0 : index
    %c0_94 = arith.constant 0 : index
    %c0_95 = arith.constant 0 : index
    %233 = vector.load %arg14[%c0_93, %c0_94, %c0_95] : memref<2x128x32xf32, #tpu.memory_space<vmem>>, vector<1x128x32xf32>
    %234 = vector.shape_cast %233 : vector<1x128x32xf32> to vector<128x32xf32>
    %cst_96 = arith.constant dense<0.000000e+00> : vector<32x32xf32>
    %235 = tpu.matmul %232, %234, %cst_96 {dimension_numbers = #tpu.dot_dimension_numbers<[1], [0], [0], [1], [0, 0, 1, 1], [], []>} : vector<32x128xf32>, vector<128x32xf32>, vector<32x32xf32> -> vector<32x32xf32>
    %236 = arith.addf %190, %235 : vector<32x32xf32>
    %c0_97 = arith.constant 0 : index
    %c0_98 = arith.constant 0 : index
    %c0_99 = arith.constant 0 : index
    %237 = vector.load %arg15[%c0_97, %c0_98, %c0_99] : memref<2x1x32xf32, #tpu.memory_space<vmem>>, vector<1x1x32xf32>
    %238 = vector.shape_cast %237 : vector<1x1x32xf32> to vector<1x32xf32>
    %239 = vector.broadcast %238 : vector<1x32xf32> to vector<32x32xf32>
    %240 = arith.addf %236, %239 : vector<32x32xf32>
    %c1 = arith.constant 1 : index
    %c0_100 = arith.constant 0 : index
    %c0_101 = arith.constant 0 : index
    %241 = vector.load %arg4[%c1, %c0_100, %c0_101] : memref<2x1x32xf32, #tpu.memory_space<vmem>>, vector<1x1x32xf32>
    %242 = vector.shape_cast %241 : vector<1x1x32xf32> to vector<1x32xf32>
    %c1_102 = arith.constant 1 : index
    %c0_103 = arith.constant 0 : index
    %c0_104 = arith.constant 0 : index
    %243 = vector.load %arg5[%c1_102, %c0_103, %c0_104] : memref<2x1x32xf32, #tpu.memory_space<vmem>>, vector<1x1x32xf32>
    %244 = vector.shape_cast %243 : vector<1x1x32xf32> to vector<1x32xf32>
    %cst_105 = arith.constant dense<0.000000e+00> : vector<32xf32>
    %245 = vector.multi_reduction <add>, %240, %cst_105 [1] : vector<32x32xf32> to vector<32xf32>
    %246 = vector.shape_cast %245 : vector<32xf32> to vector<32x1xf32>
    %cst_106 = arith.constant 3.200000e+01 : f32
    %247 = vector.broadcast %cst_106 : f32 to vector<32x1xf32>
    %248 = arith.divf %246, %247 : vector<32x1xf32>
    %249 = vector.broadcast %248 : vector<32x1xf32> to vector<32x32xf32>
    %250 = arith.subf %240, %249 : vector<32x32xf32>
    %251 = arith.mulf %250, %250 : vector<32x32xf32>
    %cst_107 = arith.constant dense<0.000000e+00> : vector<32xf32>
    %252 = vector.multi_reduction <add>, %251, %cst_107 [1] : vector<32x32xf32> to vector<32xf32>
    %253 = vector.shape_cast %252 : vector<32xf32> to vector<32x1xf32>
    %cst_108 = arith.constant 3.200000e+01 : f32
    %254 = vector.broadcast %cst_108 : f32 to vector<32x1xf32>
    %255 = arith.divf %253, %254 : vector<32x1xf32>
    %256 = vector.broadcast %248 : vector<32x1xf32> to vector<32x32xf32>
    %257 = arith.subf %240, %256 : vector<32x32xf32>
    %cst_109 = arith.constant 9.99999997E-7 : f32
    %258 = vector.broadcast %cst_109 : f32 to vector<32x1xf32>
    %259 = arith.addf %255, %258 : vector<32x1xf32>
    %260 = math.rsqrt %259 : vector<32x1xf32>
    %261 = vector.broadcast %260 : vector<32x1xf32> to vector<32x32xf32>
    %262 = arith.mulf %257, %261 : vector<32x32xf32>
    %263 = vector.broadcast %242 : vector<1x32xf32> to vector<32x32xf32>
    %264 = arith.mulf %262, %263 : vector<32x32xf32>
    %265 = vector.broadcast %244 : vector<1x32xf32> to vector<32x32xf32>
    %266 = arith.addf %264, %265 : vector<32x32xf32>
    %c1_110 = arith.constant 1 : index
    %c0_111 = arith.constant 0 : index
    %c0_112 = arith.constant 0 : index
    %267 = vector.load %arg6[%c1_110, %c0_111, %c0_112] : memref<2x32x96xf32, #tpu.memory_space<vmem>>, vector<1x32x96xf32>
    %268 = vector.shape_cast %267 : vector<1x32x96xf32> to vector<32x96xf32>
    %cst_113 = arith.constant dense<0.000000e+00> : vector<32x96xf32>
    %269 = tpu.matmul %266, %268, %cst_113 {dimension_numbers = #tpu.dot_dimension_numbers<[1], [0], [0], [1], [0, 0, 1, 1], [], []>} : vector<32x32xf32>, vector<32x96xf32>, vector<32x96xf32> -> vector<32x96xf32>
    %c1_114 = arith.constant 1 : index
    %c0_115 = arith.constant 0 : index
    %c0_116 = arith.constant 0 : index
    %270 = vector.load %arg7[%c1_114, %c0_115, %c0_116] : memref<2x1x96xf32, #tpu.memory_space<vmem>>, vector<1x1x96xf32>
    %271 = vector.shape_cast %270 : vector<1x1x96xf32> to vector<1x96xf32>
    %272 = vector.broadcast %271 : vector<1x96xf32> to vector<32x96xf32>
    %273 = arith.addf %269, %272 : vector<32x96xf32>
    %274 = vector.extract_strided_slice %273 {offsets = [0, 0], sizes = [16, 96], strides = [1, 1]} : vector<32x96xf32> to vector<16x96xf32>
    %275 = vector.extract_strided_slice %274 {offsets = [0, 0], sizes = [16, 8], strides = [1, 1]} : vector<16x96xf32> to vector<16x8xf32>
    %cst_117 = arith.constant 0.353553385 : f32
    %276 = vector.broadcast %cst_117 : f32 to vector<16x8xf32>
    %277 = arith.mulf %275, %276 : vector<16x8xf32>
    %278 = vector.extract_strided_slice %274 {offsets = [0, 32], sizes = [16, 8], strides = [1, 1]} : vector<16x96xf32> to vector<16x8xf32>
    %279 = vector.extract_strided_slice %274 {offsets = [0, 64], sizes = [16, 8], strides = [1, 1]} : vector<16x96xf32> to vector<16x8xf32>
    %cst_118 = arith.constant dense<0.000000e+00> : vector<16x16xf32>
    %280 = tpu.matmul %277, %278, %cst_118 {dimension_numbers = #tpu.dot_dimension_numbers<[1], [1], [0], [0], [0, 0, 1, 0], [], []>} : vector<16x8xf32>, vector<16x8xf32>, vector<16x16xf32> -> vector<16x16xf32>
    %cst_119 = arith.constant dense<0xFF800000> : vector<16xf32>
    %281 = vector.multi_reduction <maximumf>, %280, %cst_119 [1] : vector<16x16xf32> to vector<16xf32>
    %282 = vector.shape_cast %281 : vector<16xf32> to vector<16x1xf32>
    %283 = vector.broadcast %282 : vector<16x1xf32> to vector<16x16xf32>
    %284 = arith.subf %280, %283 : vector<16x16xf32>
    %285 = math.exp %284 : vector<16x16xf32>
    %cst_120 = arith.constant dense<0.000000e+00> : vector<16xf32>
    %286 = vector.multi_reduction <add>, %285, %cst_120 [1] : vector<16x16xf32> to vector<16xf32>
    %287 = vector.shape_cast %286 : vector<16xf32> to vector<16x1xf32>
    %288 = tpu.reciprocal %287 {approx = true} : vector<16x1xf32> -> vector<16x1xf32>
    %289 = vector.broadcast %288 : vector<16x1xf32> to vector<16x16xf32>
    %290 = arith.mulf %285, %289 : vector<16x16xf32>
    %cst_121 = arith.constant dense<0.000000e+00> : vector<16x8xf32>
    %291 = tpu.matmul %290, %279, %cst_121 {dimension_numbers = #tpu.dot_dimension_numbers<[1], [0], [0], [1], [0, 0, 1, 1], [], []>} : vector<16x16xf32>, vector<16x8xf32>, vector<16x8xf32> -> vector<16x8xf32>
    %292 = vector.extract_strided_slice %274 {offsets = [0, 8], sizes = [16, 8], strides = [1, 1]} : vector<16x96xf32> to vector<16x8xf32>
    %cst_122 = arith.constant 0.353553385 : f32
    %293 = vector.broadcast %cst_122 : f32 to vector<16x8xf32>
    %294 = arith.mulf %292, %293 : vector<16x8xf32>
    %295 = vector.extract_strided_slice %274 {offsets = [0, 40], sizes = [16, 8], strides = [1, 1]} : vector<16x96xf32> to vector<16x8xf32>
    %296 = vector.extract_strided_slice %274 {offsets = [0, 72], sizes = [16, 8], strides = [1, 1]} : vector<16x96xf32> to vector<16x8xf32>
    %cst_123 = arith.constant dense<0.000000e+00> : vector<16x16xf32>
    %297 = tpu.matmul %294, %295, %cst_123 {dimension_numbers = #tpu.dot_dimension_numbers<[1], [1], [0], [0], [0, 0, 1, 0], [], []>} : vector<16x8xf32>, vector<16x8xf32>, vector<16x16xf32> -> vector<16x16xf32>
    %cst_124 = arith.constant dense<0xFF800000> : vector<16xf32>
    %298 = vector.multi_reduction <maximumf>, %297, %cst_124 [1] : vector<16x16xf32> to vector<16xf32>
    %299 = vector.shape_cast %298 : vector<16xf32> to vector<16x1xf32>
    %300 = vector.broadcast %299 : vector<16x1xf32> to vector<16x16xf32>
    %301 = arith.subf %297, %300 : vector<16x16xf32>
    %302 = math.exp %301 : vector<16x16xf32>
    %cst_125 = arith.constant dense<0.000000e+00> : vector<16xf32>
    %303 = vector.multi_reduction <add>, %302, %cst_125 [1] : vector<16x16xf32> to vector<16xf32>
    %304 = vector.shape_cast %303 : vector<16xf32> to vector<16x1xf32>
    %305 = tpu.reciprocal %304 {approx = true} : vector<16x1xf32> -> vector<16x1xf32>
    %306 = vector.broadcast %305 : vector<16x1xf32> to vector<16x16xf32>
    %307 = arith.mulf %302, %306 : vector<16x16xf32>
    %cst_126 = arith.constant dense<0.000000e+00> : vector<16x8xf32>
    %308 = tpu.matmul %307, %296, %cst_126 {dimension_numbers = #tpu.dot_dimension_numbers<[1], [0], [0], [1], [0, 0, 1, 1], [], []>} : vector<16x16xf32>, vector<16x8xf32>, vector<16x8xf32> -> vector<16x8xf32>
    %309 = vector.extract_strided_slice %274 {offsets = [0, 16], sizes = [16, 8], strides = [1, 1]} : vector<16x96xf32> to vector<16x8xf32>
    %cst_127 = arith.constant 0.353553385 : f32
    %310 = vector.broadcast %cst_127 : f32 to vector<16x8xf32>
    %311 = arith.mulf %309, %310 : vector<16x8xf32>
    %312 = vector.extract_strided_slice %274 {offsets = [0, 48], sizes = [16, 8], strides = [1, 1]} : vector<16x96xf32> to vector<16x8xf32>
    %313 = vector.extract_strided_slice %274 {offsets = [0, 80], sizes = [16, 8], strides = [1, 1]} : vector<16x96xf32> to vector<16x8xf32>
    %cst_128 = arith.constant dense<0.000000e+00> : vector<16x16xf32>
    %314 = tpu.matmul %311, %312, %cst_128 {dimension_numbers = #tpu.dot_dimension_numbers<[1], [1], [0], [0], [0, 0, 1, 0], [], []>} : vector<16x8xf32>, vector<16x8xf32>, vector<16x16xf32> -> vector<16x16xf32>
    %cst_129 = arith.constant dense<0xFF800000> : vector<16xf32>
    %315 = vector.multi_reduction <maximumf>, %314, %cst_129 [1] : vector<16x16xf32> to vector<16xf32>
    %316 = vector.shape_cast %315 : vector<16xf32> to vector<16x1xf32>
    %317 = vector.broadcast %316 : vector<16x1xf32> to vector<16x16xf32>
    %318 = arith.subf %314, %317 : vector<16x16xf32>
    %319 = math.exp %318 : vector<16x16xf32>
    %cst_130 = arith.constant dense<0.000000e+00> : vector<16xf32>
    %320 = vector.multi_reduction <add>, %319, %cst_130 [1] : vector<16x16xf32> to vector<16xf32>
    %321 = vector.shape_cast %320 : vector<16xf32> to vector<16x1xf32>
    %322 = tpu.reciprocal %321 {approx = true} : vector<16x1xf32> -> vector<16x1xf32>
    %323 = vector.broadcast %322 : vector<16x1xf32> to vector<16x16xf32>
    %324 = arith.mulf %319, %323 : vector<16x16xf32>
    %cst_131 = arith.constant dense<0.000000e+00> : vector<16x8xf32>
    %325 = tpu.matmul %324, %313, %cst_131 {dimension_numbers = #tpu.dot_dimension_numbers<[1], [0], [0], [1], [0, 0, 1, 1], [], []>} : vector<16x16xf32>, vector<16x8xf32>, vector<16x8xf32> -> vector<16x8xf32>
    %326 = vector.extract_strided_slice %274 {offsets = [0, 24], sizes = [16, 8], strides = [1, 1]} : vector<16x96xf32> to vector<16x8xf32>
    %cst_132 = arith.constant 0.353553385 : f32
    %327 = vector.broadcast %cst_132 : f32 to vector<16x8xf32>
    %328 = arith.mulf %326, %327 : vector<16x8xf32>
    %329 = vector.extract_strided_slice %274 {offsets = [0, 56], sizes = [16, 8], strides = [1, 1]} : vector<16x96xf32> to vector<16x8xf32>
    %330 = vector.extract_strided_slice %274 {offsets = [0, 88], sizes = [16, 8], strides = [1, 1]} : vector<16x96xf32> to vector<16x8xf32>
    %cst_133 = arith.constant dense<0.000000e+00> : vector<16x16xf32>
    %331 = tpu.matmul %328, %329, %cst_133 {dimension_numbers = #tpu.dot_dimension_numbers<[1], [1], [0], [0], [0, 0, 1, 0], [], []>} : vector<16x8xf32>, vector<16x8xf32>, vector<16x16xf32> -> vector<16x16xf32>
    %cst_134 = arith.constant dense<0xFF800000> : vector<16xf32>
    %332 = vector.multi_reduction <maximumf>, %331, %cst_134 [1] : vector<16x16xf32> to vector<16xf32>
    %333 = vector.shape_cast %332 : vector<16xf32> to vector<16x1xf32>
    %334 = vector.broadcast %333 : vector<16x1xf32> to vector<16x16xf32>
    %335 = arith.subf %331, %334 : vector<16x16xf32>
    %336 = math.exp %335 : vector<16x16xf32>
    %cst_135 = arith.constant dense<0.000000e+00> : vector<16xf32>
    %337 = vector.multi_reduction <add>, %336, %cst_135 [1] : vector<16x16xf32> to vector<16xf32>
    %338 = vector.shape_cast %337 : vector<16xf32> to vector<16x1xf32>
    %339 = tpu.reciprocal %338 {approx = true} : vector<16x1xf32> -> vector<16x1xf32>
    %340 = vector.broadcast %339 : vector<16x1xf32> to vector<16x16xf32>
    %341 = arith.mulf %336, %340 : vector<16x16xf32>
    %cst_136 = arith.constant dense<0.000000e+00> : vector<16x8xf32>
    %342 = tpu.matmul %341, %330, %cst_136 {dimension_numbers = #tpu.dot_dimension_numbers<[1], [0], [0], [1], [0, 0, 1, 1], [], []>} : vector<16x16xf32>, vector<16x8xf32>, vector<16x8xf32> -> vector<16x8xf32>
    %343 = tpu.concatenate %291, %308, %325, %342 in 1 : vector<16x8xf32>, vector<16x8xf32>, vector<16x8xf32>, vector<16x8xf32> -> vector<16x32xf32>
    %344 = vector.extract_strided_slice %273 {offsets = [16, 0], sizes = [16, 96], strides = [1, 1]} : vector<32x96xf32> to vector<16x96xf32>
    %345 = vector.extract_strided_slice %344 {offsets = [0, 0], sizes = [16, 8], strides = [1, 1]} : vector<16x96xf32> to vector<16x8xf32>
    %cst_137 = arith.constant 0.353553385 : f32
    %346 = vector.broadcast %cst_137 : f32 to vector<16x8xf32>
    %347 = arith.mulf %345, %346 : vector<16x8xf32>
    %348 = vector.extract_strided_slice %344 {offsets = [0, 32], sizes = [16, 8], strides = [1, 1]} : vector<16x96xf32> to vector<16x8xf32>
    %349 = vector.extract_strided_slice %344 {offsets = [0, 64], sizes = [16, 8], strides = [1, 1]} : vector<16x96xf32> to vector<16x8xf32>
    %cst_138 = arith.constant dense<0.000000e+00> : vector<16x16xf32>
    %350 = tpu.matmul %347, %348, %cst_138 {dimension_numbers = #tpu.dot_dimension_numbers<[1], [1], [0], [0], [0, 0, 1, 0], [], []>} : vector<16x8xf32>, vector<16x8xf32>, vector<16x16xf32> -> vector<16x16xf32>
    %cst_139 = arith.constant dense<0xFF800000> : vector<16xf32>
    %351 = vector.multi_reduction <maximumf>, %350, %cst_139 [1] : vector<16x16xf32> to vector<16xf32>
    %352 = vector.shape_cast %351 : vector<16xf32> to vector<16x1xf32>
    %353 = vector.broadcast %352 : vector<16x1xf32> to vector<16x16xf32>
    %354 = arith.subf %350, %353 : vector<16x16xf32>
    %355 = math.exp %354 : vector<16x16xf32>
    %cst_140 = arith.constant dense<0.000000e+00> : vector<16xf32>
    %356 = vector.multi_reduction <add>, %355, %cst_140 [1] : vector<16x16xf32> to vector<16xf32>
    %357 = vector.shape_cast %356 : vector<16xf32> to vector<16x1xf32>
    %358 = tpu.reciprocal %357 {approx = true} : vector<16x1xf32> -> vector<16x1xf32>
    %359 = vector.broadcast %358 : vector<16x1xf32> to vector<16x16xf32>
    %360 = arith.mulf %355, %359 : vector<16x16xf32>
    %cst_141 = arith.constant dense<0.000000e+00> : vector<16x8xf32>
    %361 = tpu.matmul %360, %349, %cst_141 {dimension_numbers = #tpu.dot_dimension_numbers<[1], [0], [0], [1], [0, 0, 1, 1], [], []>} : vector<16x16xf32>, vector<16x8xf32>, vector<16x8xf32> -> vector<16x8xf32>
    %362 = vector.extract_strided_slice %344 {offsets = [0, 8], sizes = [16, 8], strides = [1, 1]} : vector<16x96xf32> to vector<16x8xf32>
    %cst_142 = arith.constant 0.353553385 : f32
    %363 = vector.broadcast %cst_142 : f32 to vector<16x8xf32>
    %364 = arith.mulf %362, %363 : vector<16x8xf32>
    %365 = vector.extract_strided_slice %344 {offsets = [0, 40], sizes = [16, 8], strides = [1, 1]} : vector<16x96xf32> to vector<16x8xf32>
    %366 = vector.extract_strided_slice %344 {offsets = [0, 72], sizes = [16, 8], strides = [1, 1]} : vector<16x96xf32> to vector<16x8xf32>
    %cst_143 = arith.constant dense<0.000000e+00> : vector<16x16xf32>
    %367 = tpu.matmul %364, %365, %cst_143 {dimension_numbers = #tpu.dot_dimension_numbers<[1], [1], [0], [0], [0, 0, 1, 0], [], []>} : vector<16x8xf32>, vector<16x8xf32>, vector<16x16xf32> -> vector<16x16xf32>
    %cst_144 = arith.constant dense<0xFF800000> : vector<16xf32>
    %368 = vector.multi_reduction <maximumf>, %367, %cst_144 [1] : vector<16x16xf32> to vector<16xf32>
    %369 = vector.shape_cast %368 : vector<16xf32> to vector<16x1xf32>
    %370 = vector.broadcast %369 : vector<16x1xf32> to vector<16x16xf32>
    %371 = arith.subf %367, %370 : vector<16x16xf32>
    %372 = math.exp %371 : vector<16x16xf32>
    %cst_145 = arith.constant dense<0.000000e+00> : vector<16xf32>
    %373 = vector.multi_reduction <add>, %372, %cst_145 [1] : vector<16x16xf32> to vector<16xf32>
    %374 = vector.shape_cast %373 : vector<16xf32> to vector<16x1xf32>
    %375 = tpu.reciprocal %374 {approx = true} : vector<16x1xf32> -> vector<16x1xf32>
    %376 = vector.broadcast %375 : vector<16x1xf32> to vector<16x16xf32>
    %377 = arith.mulf %372, %376 : vector<16x16xf32>
    %cst_146 = arith.constant dense<0.000000e+00> : vector<16x8xf32>
    %378 = tpu.matmul %377, %366, %cst_146 {dimension_numbers = #tpu.dot_dimension_numbers<[1], [0], [0], [1], [0, 0, 1, 1], [], []>} : vector<16x16xf32>, vector<16x8xf32>, vector<16x8xf32> -> vector<16x8xf32>
    %379 = vector.extract_strided_slice %344 {offsets = [0, 16], sizes = [16, 8], strides = [1, 1]} : vector<16x96xf32> to vector<16x8xf32>
    %cst_147 = arith.constant 0.353553385 : f32
    %380 = vector.broadcast %cst_147 : f32 to vector<16x8xf32>
    %381 = arith.mulf %379, %380 : vector<16x8xf32>
    %382 = vector.extract_strided_slice %344 {offsets = [0, 48], sizes = [16, 8], strides = [1, 1]} : vector<16x96xf32> to vector<16x8xf32>
    %383 = vector.extract_strided_slice %344 {offsets = [0, 80], sizes = [16, 8], strides = [1, 1]} : vector<16x96xf32> to vector<16x8xf32>
    %cst_148 = arith.constant dense<0.000000e+00> : vector<16x16xf32>
    %384 = tpu.matmul %381, %382, %cst_148 {dimension_numbers = #tpu.dot_dimension_numbers<[1], [1], [0], [0], [0, 0, 1, 0], [], []>} : vector<16x8xf32>, vector<16x8xf32>, vector<16x16xf32> -> vector<16x16xf32>
    %cst_149 = arith.constant dense<0xFF800000> : vector<16xf32>
    %385 = vector.multi_reduction <maximumf>, %384, %cst_149 [1] : vector<16x16xf32> to vector<16xf32>
    %386 = vector.shape_cast %385 : vector<16xf32> to vector<16x1xf32>
    %387 = vector.broadcast %386 : vector<16x1xf32> to vector<16x16xf32>
    %388 = arith.subf %384, %387 : vector<16x16xf32>
    %389 = math.exp %388 : vector<16x16xf32>
    %cst_150 = arith.constant dense<0.000000e+00> : vector<16xf32>
    %390 = vector.multi_reduction <add>, %389, %cst_150 [1] : vector<16x16xf32> to vector<16xf32>
    %391 = vector.shape_cast %390 : vector<16xf32> to vector<16x1xf32>
    %392 = tpu.reciprocal %391 {approx = true} : vector<16x1xf32> -> vector<16x1xf32>
    %393 = vector.broadcast %392 : vector<16x1xf32> to vector<16x16xf32>
    %394 = arith.mulf %389, %393 : vector<16x16xf32>
    %cst_151 = arith.constant dense<0.000000e+00> : vector<16x8xf32>
    %395 = tpu.matmul %394, %383, %cst_151 {dimension_numbers = #tpu.dot_dimension_numbers<[1], [0], [0], [1], [0, 0, 1, 1], [], []>} : vector<16x16xf32>, vector<16x8xf32>, vector<16x8xf32> -> vector<16x8xf32>
    %396 = vector.extract_strided_slice %344 {offsets = [0, 24], sizes = [16, 8], strides = [1, 1]} : vector<16x96xf32> to vector<16x8xf32>
    %cst_152 = arith.constant 0.353553385 : f32
    %397 = vector.broadcast %cst_152 : f32 to vector<16x8xf32>
    %398 = arith.mulf %396, %397 : vector<16x8xf32>
    %399 = vector.extract_strided_slice %344 {offsets = [0, 56], sizes = [16, 8], strides = [1, 1]} : vector<16x96xf32> to vector<16x8xf32>
    %400 = vector.extract_strided_slice %344 {offsets = [0, 88], sizes = [16, 8], strides = [1, 1]} : vector<16x96xf32> to vector<16x8xf32>
    %cst_153 = arith.constant dense<0.000000e+00> : vector<16x16xf32>
    %401 = tpu.matmul %398, %399, %cst_153 {dimension_numbers = #tpu.dot_dimension_numbers<[1], [1], [0], [0], [0, 0, 1, 0], [], []>} : vector<16x8xf32>, vector<16x8xf32>, vector<16x16xf32> -> vector<16x16xf32>
    %cst_154 = arith.constant dense<0xFF800000> : vector<16xf32>
    %402 = vector.multi_reduction <maximumf>, %401, %cst_154 [1] : vector<16x16xf32> to vector<16xf32>
    %403 = vector.shape_cast %402 : vector<16xf32> to vector<16x1xf32>
    %404 = vector.broadcast %403 : vector<16x1xf32> to vector<16x16xf32>
    %405 = arith.subf %401, %404 : vector<16x16xf32>
    %406 = math.exp %405 : vector<16x16xf32>
    %cst_155 = arith.constant dense<0.000000e+00> : vector<16xf32>
    %407 = vector.multi_reduction <add>, %406, %cst_155 [1] : vector<16x16xf32> to vector<16xf32>
    %408 = vector.shape_cast %407 : vector<16xf32> to vector<16x1xf32>
    %409 = tpu.reciprocal %408 {approx = true} : vector<16x1xf32> -> vector<16x1xf32>
    %410 = vector.broadcast %409 : vector<16x1xf32> to vector<16x16xf32>
    %411 = arith.mulf %406, %410 : vector<16x16xf32>
    %cst_156 = arith.constant dense<0.000000e+00> : vector<16x8xf32>
    %412 = tpu.matmul %411, %400, %cst_156 {dimension_numbers = #tpu.dot_dimension_numbers<[1], [0], [0], [1], [0, 0, 1, 1], [], []>} : vector<16x16xf32>, vector<16x8xf32>, vector<16x8xf32> -> vector<16x8xf32>
    %413 = tpu.concatenate %361, %378, %395, %412 in 1 : vector<16x8xf32>, vector<16x8xf32>, vector<16x8xf32>, vector<16x8xf32> -> vector<16x32xf32>
    %414 = tpu.concatenate %343, %413 in 0 : vector<16x32xf32>, vector<16x32xf32> -> vector<32x32xf32>
    %c1_157 = arith.constant 1 : index
    %c0_158 = arith.constant 0 : index
    %c0_159 = arith.constant 0 : index
    %415 = vector.load %arg8[%c1_157, %c0_158, %c0_159] : memref<2x32x32xf32, #tpu.memory_space<vmem>>, vector<1x32x32xf32>
    %416 = vector.shape_cast %415 : vector<1x32x32xf32> to vector<32x32xf32>
    %cst_160 = arith.constant dense<0.000000e+00> : vector<32x32xf32>
    %417 = tpu.matmul %414, %416, %cst_160 {dimension_numbers = #tpu.dot_dimension_numbers<[1], [0], [0], [1], [0, 0, 1, 1], [], []>} : vector<32x32xf32>, vector<32x32xf32>, vector<32x32xf32> -> vector<32x32xf32>
    %418 = arith.addf %240, %417 : vector<32x32xf32>
    %c1_161 = arith.constant 1 : index
    %c0_162 = arith.constant 0 : index
    %c0_163 = arith.constant 0 : index
    %419 = vector.load %arg9[%c1_161, %c0_162, %c0_163] : memref<2x1x32xf32, #tpu.memory_space<vmem>>, vector<1x1x32xf32>
    %420 = vector.shape_cast %419 : vector<1x1x32xf32> to vector<1x32xf32>
    %421 = vector.broadcast %420 : vector<1x32xf32> to vector<32x32xf32>
    %422 = arith.addf %418, %421 : vector<32x32xf32>
    %c1_164 = arith.constant 1 : index
    %c0_165 = arith.constant 0 : index
    %c0_166 = arith.constant 0 : index
    %423 = vector.load %arg10[%c1_164, %c0_165, %c0_166] : memref<2x1x32xf32, #tpu.memory_space<vmem>>, vector<1x1x32xf32>
    %424 = vector.shape_cast %423 : vector<1x1x32xf32> to vector<1x32xf32>
    %c1_167 = arith.constant 1 : index
    %c0_168 = arith.constant 0 : index
    %c0_169 = arith.constant 0 : index
    %425 = vector.load %arg11[%c1_167, %c0_168, %c0_169] : memref<2x1x32xf32, #tpu.memory_space<vmem>>, vector<1x1x32xf32>
    %426 = vector.shape_cast %425 : vector<1x1x32xf32> to vector<1x32xf32>
    %cst_170 = arith.constant dense<0.000000e+00> : vector<32xf32>
    %427 = vector.multi_reduction <add>, %422, %cst_170 [1] : vector<32x32xf32> to vector<32xf32>
    %428 = vector.shape_cast %427 : vector<32xf32> to vector<32x1xf32>
    %cst_171 = arith.constant 3.200000e+01 : f32
    %429 = vector.broadcast %cst_171 : f32 to vector<32x1xf32>
    %430 = arith.divf %428, %429 : vector<32x1xf32>
    %431 = vector.broadcast %430 : vector<32x1xf32> to vector<32x32xf32>
    %432 = arith.subf %422, %431 : vector<32x32xf32>
    %433 = arith.mulf %432, %432 : vector<32x32xf32>
    %cst_172 = arith.constant dense<0.000000e+00> : vector<32xf32>
    %434 = vector.multi_reduction <add>, %433, %cst_172 [1] : vector<32x32xf32> to vector<32xf32>
    %435 = vector.shape_cast %434 : vector<32xf32> to vector<32x1xf32>
    %cst_173 = arith.constant 3.200000e+01 : f32
    %436 = vector.broadcast %cst_173 : f32 to vector<32x1xf32>
    %437 = arith.divf %435, %436 : vector<32x1xf32>
    %438 = vector.broadcast %430 : vector<32x1xf32> to vector<32x32xf32>
    %439 = arith.subf %422, %438 : vector<32x32xf32>
    %cst_174 = arith.constant 9.99999997E-7 : f32
    %440 = vector.broadcast %cst_174 : f32 to vector<32x1xf32>
    %441 = arith.addf %437, %440 : vector<32x1xf32>
    %442 = math.rsqrt %441 : vector<32x1xf32>
    %443 = vector.broadcast %442 : vector<32x1xf32> to vector<32x32xf32>
    %444 = arith.mulf %439, %443 : vector<32x32xf32>
    %445 = vector.broadcast %424 : vector<1x32xf32> to vector<32x32xf32>
    %446 = arith.mulf %444, %445 : vector<32x32xf32>
    %447 = vector.broadcast %426 : vector<1x32xf32> to vector<32x32xf32>
    %448 = arith.addf %446, %447 : vector<32x32xf32>
    %c1_175 = arith.constant 1 : index
    %c0_176 = arith.constant 0 : index
    %c0_177 = arith.constant 0 : index
    %449 = vector.load %arg12[%c1_175, %c0_176, %c0_177] : memref<2x32x128xf32, #tpu.memory_space<vmem>>, vector<1x32x128xf32>
    %450 = vector.shape_cast %449 : vector<1x32x128xf32> to vector<32x128xf32>
    %cst_178 = arith.constant dense<0.000000e+00> : vector<32x128xf32>
    %451 = tpu.matmul %448, %450, %cst_178 {dimension_numbers = #tpu.dot_dimension_numbers<[1], [0], [0], [1], [0, 0, 1, 1], [], []>} : vector<32x32xf32>, vector<32x128xf32>, vector<32x128xf32> -> vector<32x128xf32>
    %c1_179 = arith.constant 1 : index
    %c0_180 = arith.constant 0 : index
    %c0_181 = arith.constant 0 : index
    %452 = vector.load %arg13[%c1_179, %c0_180, %c0_181] : memref<2x1x128xf32, #tpu.memory_space<vmem>>, vector<1x1x128xf32>
    %453 = vector.shape_cast %452 : vector<1x1x128xf32> to vector<1x128xf32>
    %454 = vector.broadcast %453 : vector<1x128xf32> to vector<32x128xf32>
    %455 = arith.addf %451, %454 : vector<32x128xf32>
    %cst_182 = arith.constant 5.000000e-01 : f32
    %456 = vector.broadcast %cst_182 : f32 to vector<32x128xf32>
    %457 = arith.mulf %456, %455 : vector<32x128xf32>
    %cst_183 = arith.constant 2.000000e+00 : f32
    %458 = math.sqrt %cst_183 : f32
    %459 = vector.broadcast %458 : f32 to vector<32x128xf32>
    %460 = arith.divf %455, %459 : vector<32x128xf32>
    %461 = math.erf %460 : vector<32x128xf32>
    %cst_184 = arith.constant 1.000000e+00 : f32
    %462 = vector.broadcast %cst_184 : f32 to vector<32x128xf32>
    %463 = arith.addf %462, %461 : vector<32x128xf32>
    %464 = arith.mulf %457, %463 : vector<32x128xf32>
    %c1_185 = arith.constant 1 : index
    %c0_186 = arith.constant 0 : index
    %c0_187 = arith.constant 0 : index
    %465 = vector.load %arg14[%c1_185, %c0_186, %c0_187] : memref<2x128x32xf32, #tpu.memory_space<vmem>>, vector<1x128x32xf32>
    %466 = vector.shape_cast %465 : vector<1x128x32xf32> to vector<128x32xf32>
    %cst_188 = arith.constant dense<0.000000e+00> : vector<32x32xf32>
    %467 = tpu.matmul %464, %466, %cst_188 {dimension_numbers = #tpu.dot_dimension_numbers<[1], [0], [0], [1], [0, 0, 1, 1], [], []>} : vector<32x128xf32>, vector<128x32xf32>, vector<32x32xf32> -> vector<32x32xf32>
    %468 = arith.addf %422, %467 : vector<32x32xf32>
    %c1_189 = arith.constant 1 : index
    %c0_190 = arith.constant 0 : index
    %c0_191 = arith.constant 0 : index
    %469 = vector.load %arg15[%c1_189, %c0_190, %c0_191] : memref<2x1x32xf32, #tpu.memory_space<vmem>>, vector<1x1x32xf32>
    %470 = vector.shape_cast %469 : vector<1x1x32xf32> to vector<1x32xf32>
    %471 = vector.broadcast %470 : vector<1x32xf32> to vector<32x32xf32>
    %472 = arith.addf %468, %471 : vector<32x32xf32>
    %c0_192 = arith.constant 0 : index
    %c0_193 = arith.constant 0 : index
    %473 = vector.load %arg16[%c0_192, %c0_193] : memref<1x32xf32, #tpu.memory_space<vmem>>, vector<1x32xf32>
    %c0_194 = arith.constant 0 : index
    %c0_195 = arith.constant 0 : index
    %474 = vector.load %arg17[%c0_194, %c0_195] : memref<1x32xf32, #tpu.memory_space<vmem>>, vector<1x32xf32>
    %cst_196 = arith.constant dense<0.000000e+00> : vector<32xf32>
    %475 = vector.multi_reduction <add>, %472, %cst_196 [1] : vector<32x32xf32> to vector<32xf32>
    %476 = vector.shape_cast %475 : vector<32xf32> to vector<32x1xf32>
    %cst_197 = arith.constant 3.200000e+01 : f32
    %477 = vector.broadcast %cst_197 : f32 to vector<32x1xf32>
    %478 = arith.divf %476, %477 : vector<32x1xf32>
    %479 = vector.broadcast %478 : vector<32x1xf32> to vector<32x32xf32>
    %480 = arith.subf %472, %479 : vector<32x32xf32>
    %481 = arith.mulf %480, %480 : vector<32x32xf32>
    %cst_198 = arith.constant dense<0.000000e+00> : vector<32xf32>
    %482 = vector.multi_reduction <add>, %481, %cst_198 [1] : vector<32x32xf32> to vector<32xf32>
    %483 = vector.shape_cast %482 : vector<32xf32> to vector<32x1xf32>
    %cst_199 = arith.constant 3.200000e+01 : f32
    %484 = vector.broadcast %cst_199 : f32 to vector<32x1xf32>
    %485 = arith.divf %483, %484 : vector<32x1xf32>
    %486 = vector.broadcast %478 : vector<32x1xf32> to vector<32x32xf32>
    %487 = arith.subf %472, %486 : vector<32x32xf32>
    %cst_200 = arith.constant 9.99999997E-7 : f32
    %488 = vector.broadcast %cst_200 : f32 to vector<32x1xf32>
    %489 = arith.addf %485, %488 : vector<32x1xf32>
    %490 = math.rsqrt %489 : vector<32x1xf32>
    %491 = vector.broadcast %490 : vector<32x1xf32> to vector<32x32xf32>
    %492 = arith.mulf %487, %491 : vector<32x32xf32>
    %493 = vector.broadcast %473 : vector<1x32xf32> to vector<32x32xf32>
    %494 = arith.mulf %492, %493 : vector<32x32xf32>
    %495 = vector.broadcast %474 : vector<1x32xf32> to vector<32x32xf32>
    %496 = arith.addf %494, %495 : vector<32x32xf32>
    %497 = vector.extract_strided_slice %496 {offsets = [0, 0], sizes = [16, 32], strides = [1, 1]} : vector<32x32xf32> to vector<16x32xf32>
    %cst_201 = arith.constant dense<0.000000e+00> : vector<32xf32>
    %498 = vector.multi_reduction <add>, %497, %cst_201 [0] : vector<16x32xf32> to vector<32xf32>
    %499 = vector.shape_cast %498 : vector<32xf32> to vector<1x32xf32>
    %cst_202 = arith.constant 1.600000e+01 : f32
    %500 = vector.broadcast %cst_202 : f32 to vector<1x32xf32>
    %501 = arith.divf %499, %500 : vector<1x32xf32>
    %502 = vector.extract_strided_slice %496 {offsets = [16, 0], sizes = [16, 32], strides = [1, 1]} : vector<32x32xf32> to vector<16x32xf32>
    %cst_203 = arith.constant dense<0.000000e+00> : vector<32xf32>
    %503 = vector.multi_reduction <add>, %502, %cst_203 [0] : vector<16x32xf32> to vector<32xf32>
    %504 = vector.shape_cast %503 : vector<32xf32> to vector<1x32xf32>
    %cst_204 = arith.constant 1.600000e+01 : f32
    %505 = vector.broadcast %cst_204 : f32 to vector<1x32xf32>
    %506 = arith.divf %504, %505 : vector<1x32xf32>
    %507 = tpu.concatenate %501, %506 in 0 : vector<1x32xf32>, vector<1x32xf32> -> vector<2x32xf32>
    %c0_205 = arith.constant 0 : index
    %c0_206 = arith.constant 0 : index
    %508 = vector.load %arg18[%c0_205, %c0_206] : memref<2x32xf32, #tpu.memory_space<vmem>>, vector<2x32xf32>
    tpu.vector_store %arg18[%c0_205, %c0_206], %507 {strides = array<i32>} : memref<2x32xf32, #tpu.memory_space<vmem>>, vector<2x32xf32>,
    return
  }
}

</mosaic_0001>

<bundles_post_ra>
// kernel: image_encoder_forward.1
= control target key start
LH: loop header
LB: loop body
LE: loop exit
PB: predicated region body
PF: predicated region fallthrough
CT: control target
= control target key end

     0   :  { %s7020_s0 = inlined_call_operand.vmem [shape: f32[32,48], index: 0, kind: input, shape index: {}]   ;;  %s7021_s1 = inlined_call_operand.vmem [shape: f32[48,32], index: 1, kind: input, shape index: {}]   ;;  %s7022_s2 = inlined_call_operand.vmem [shape: f32[1,32], index: 2, kind: input, shape index: {}]   ;;  %s7023_s3 = inlined_call_operand.vmem [shape: f32[16,32], index: 3, kind: input, shape index: {}]   ;;  %s7024_s4 = inlined_call_operand.vmem [shape: f32[2,1,32], index: 4, kind: input, shape index: {}]   ;;  %s7025_s5 = inlined_call_operand.vmem [shape: f32[2,1,32], index: 5, kind: input, shape index: {}]   ;;  %s7026_s6 = inlined_call_operand.vmem [shape: f32[2,32,96], index: 6, kind: input, shape index: {}]   ;;  %s7027_s7 = inlined_call_operand.vmem [shape: f32[2,1,96], index: 7, kind: input, shape index: {}]   ;;  %s7028_s8 = inlined_call_operand.vmem [shape: f32[2,32,32], index: 8, kind: input, shape index: {}]   ;;  %s7029_s9 = inlined_call_operand.vmem [shape: f32[2,1,32], index: 9, kind: input, shape index: {}]   ;;  %s7030_s10 = inlined_call_operand.vmem [shape: f32[2,1,32], index: 10, kind: input, shape index: {}]   ;;  %s7031_s11 = inlined_call_operand.vmem [shape: f32[2,1,32], index: 11, kind: input, shape index: {}]   ;;  %s7032_s12 = inlined_call_operand.vmem [shape: f32[2,32,128], index: 12, kind: input, shape index: {}]   ;;  %s7033_s13 = inlined_call_operand.vmem [shape: f32[2,1,128], index: 13, kind: input, shape index: {}]   ;;  %s7034_s14 = inlined_call_operand.vmem [shape: f32[2,128,32], index: 14, kind: input, shape index: {}]   ;;  %s7035_s15 = inlined_call_operand.vmem [shape: f32[2,1,32], index: 15, kind: input, shape index: {}]   ;;  %s7036_s16 = inlined_call_operand.vmem [shape: f32[1,32], index: 16, kind: input, shape index: {}]   ;;  %s7037_s17 = inlined_call_operand.vmem [shape: f32[1,32], index: 17, kind: input, shape index: {}]   ;;  %s7038_s18 = inlined_call_operand.hbm [shape: f32[2,32], index: 18, kind: output, shape index: {}]  }
   0x1   :  { %7053 = sst [smem:[#allocation5_spill]] %s7020_s0 }
   0x2   :  { %7054 = sst [smem:[#allocation6_spill]] %s7021_s1 }
   0x3   :  { %7055 = sst [smem:[#allocation7_spill]] %s7022_s2 }
   0x4   :  { %s7056_s29 = sld [smem:[#allocation6_spill]]  ;;  %vm77_vm0 = vcmask 392192  }
   0x5   :  { %s7057_s22 = sld [smem:[#allocation5_spill]] }
   0xa   :  { %v69_v0 = vld [vmem:[%s7056_s29 + $0x28] sm:$0xff]  ;;  %v68_v1 = vld [vmem:[%s7056_s29 + $0x20] sm:$0xff]  ;;  %v67_v2 = vld [vmem:[%s7056_s29 + $0x18] sm:$0xff] }
   0xb   :  { %5277 = vmatprep.subr.mxu1 %v69_v0  ;;  %v60_v3 = vld [vmem:[%s7057_s22] sm:$0xff] }
   0xc   :  { %5278 = vmatpush3.msra.mxu1 %v69_v0  ;;  %5289 = vmatprep.mubr.msk.f32.mxu1 %vm77_vm0, %v60_v3 }
   0xd   :  { %5279 = vmatprep.subr.mxu1 %v68_v1 }
   0xe   :  { %23 = vsyncpa [#allocation3], 0  ;;  %5280 = vmatpush3.msra.mxu1 %v68_v1  ;;  %v66_v4 = vld [vmem:[%s7056_s29 + $0x10] sm:$0xff]  ;;  %v65_v5 = vld [vmem:[%s7056_s29 + $0x8] sm:$0xff]  ;;  %s7058_s2 = sld [smem:[#allocation7_spill]]  ;;  %vm183_vm1 = vcmask 261120  }
   0xf   :  { %5281 = vmatprep.subr.mxu1 %v67_v2  ;;  %v64_v6 = vld [vmem:[%s7056_s29] sm:$0xff]  ;;  %v61_v7 = vld [vmem:[%s7057_s22 + $0x8] sm:$0xff]  ;;  %v62_v8 = vld [vmem:[%s7057_s22 + $0x10] sm:$0xff]  ;;  %s5900_s25 = smov 96   ;;  %vm373_vm2 = vcmask 64512   ;;  %s5901_s26 = smov 120  }
  0x10   :  { %5282 = vmatpush3.msra.mxu1 %v67_v2  ;;  %v63_v9 = vld [vmem:[%s7057_s22 + $0x18] sm:$0xff]  ;;  %v175_v13 = vld [vmem:[%s7023_s3] sm:$0xff]  ;;  %v176_v16 = vld [vmem:[%s7023_s3 + $0x8] sm:$0xff]  ;;  %s5902_s3 = smov 88   ;;  %vm459_vm3 = vcmask 130048   ;;  %s5903_s22 = smov 64  }
  0x11   :  { %5283 = vmatprep.subr.mxu1 %v66_v4  ;;  %v260_v44 = vld [vmem:[%s7026_s6 + $0x18] sm:$0xff]  ;;  %v259_v45 = vld [vmem:[%s7026_s6 + $0x10] sm:$0xff]  ;;  %v258_v46 = vld [vmem:[%s7026_s6 + $0x8] sm:$0xff]  ;;  %s5904_s27 = smov 56   ;;  %s5905_s28 = smov 80   ;;  %vm1197_vm4 = vcmask 195584  }
  0x12   :  { %5284 = vmatpush3.msra.mxu1 %v66_v4  ;;  %v257_v47 = vld [vmem:[%s7026_s6] sm:$0xff]  ;;  %s5906_s30 = smov 112   ;;  %s5907_s0 = smov 48   ;;  %vm4854_vm5 = vcmask 1040384   ;;  %vm4856_vm6 = vcmask 254976  }
  0x13   :  { %5285 = vmatprep.subr.mxu1 %v65_v5  ;;  %v4877_v63 = vld [vmem:[%s7024_s4] ss:$0 sm:$0xff]  ;;  %s7051_s19 = smov 72   ;;  %s7047_s1 = smov 104  }
  0x14   :  { %5286 = vmatpush3.msra.mxu1 %v65_v5  ;;  %v4872_v11 = vld [vmem:[%s7058_s2] ss:$0 sm:$0xff]  ;;  %s7045_s20 = smov 40   ;;  %s7043_s29 = smov 8  }
  0x15   :  { %5287 = vmatprep.subr.mxu1 %v64_v6  ;;  %v4878_v1 = vld [vmem:[%s7025_s5] ss:$0 sm:$0xff]  ;;  %s7041_s21 = smov 16   ;;  %s7049_s2 = smov 24  }
  0x16   :  { %5288 = vmatpush3.msra.mxu1 %v64_v6  ;;  %s7061_s23 = smov 40  }
  0x17   :  { %5290 = vmatmul.mubr.msk.f32.vlgmr.msra.gmra.mxu1 %vm77_vm0, %v61_v7  ;;  %5295 = vmatprep.subr.mxu1 %v260_v44 }
  0x18   :  { %5292 = vmatprep.mubr.msk.f32.mxu1 %vm77_vm0, %v62_v8  ;;  %5296 = vmatpush3.msra.mxu1 %v260_v44 }
  0x19   :  { %5297 = vmatprep.subr.mxu1 %v259_v45 }
  0x1a   :  { %5298 = vmatpush3.msra.mxu1 %v259_v45 }
  0x1b   :  { %5293 = vmatmul.mubr.msk.f32.gmra.mxu1 %vm77_vm0, %v63_v9  ;;  %5299 = vmatprep.subr.mxu1 %v258_v46 }
  0x1c   :  { %5300 = vmatpush3.msra.mxu1 %v258_v46 }
  0x1d   :  { %5301 = vmatprep.subr.mxu1 %v257_v47 }
  0x1e   :  { %5302 = vmatpush3.msra.mxu1 %v257_v47 }
  0xd7   :  { %v5291_v10 = vpop.f32.mrf.mxu1 }
  0xd8   :  { %v162_v14 = vadd.f32 %v5291_v10, %v4872_v11 }
  0xd9   :  { %v156_v12 = vpop.f32.mrf.mxu1 }
  0xda   :  { %v157_v15 = vadd.f32 %v4872_v11, %v156_v12  ;;  %v6055_v21 = vadd.f32 %v176_v16, %v162_v14 }
  0xdb   :  { %v5294_v17 = vpop.f32.mrf.mxu1 }
  0xdc   :  { %v6053_v18 = vadd.f32 %v175_v13, %v157_v15  ;;  %v172_v19 = vadd.f32 %v5294_v17, %v4872_v11  ;;  %v187_v26 = vsel %vm183_vm1, %v6055_v21, 0.0 }
  0xdd   :  { %v166_v20 = vpop.f32.mrf.mxu1 }
  0xde   :  { %v184_v22 = vsel %vm183_vm1, %v6053_v18, 0.0  ;;  %v6059_v23 = vadd.f32 %v176_v16, %v172_v19  ;;  %v167_v24 = vadd.f32 %v4872_v11, %v166_v20  ;;  %v6102_v20 = vld [vmem:[%s7027_s7] ss:$0 sm:$0xff] }
  0xdf   :  { %185 = vadd.xlane.f32.xlu0 %v184_v22 }
  0xe0   :  { %v6061_v25 = vadd.f32 %v175_v13, %v167_v24  ;;  %v193_v41 = vsel %vm183_vm1, %v6059_v23, 0.0 }
  0xe2   :  { %v190_v27 = vsel %vm183_vm1, %v6061_v25, 0.0 }
  0xe3   :  { %188 = vadd.xlane.f32.xlu0 %v187_v26 }
  0xe7   :  { %191 = vadd.xlane.f32.xlu0 %v190_v27 }
 0x168   :  { %v186_v28 = vpop.xlane.xlu0 %185 }
 0x169   :  { %v197_v29 = vmul.f32 0.03125, %v186_v28 }
 0x16b   :  { %v201_v30 = vsub.f32 %v6053_v18, %v197_v29 }
 0x16c   :  { %v189_v31 = vpop.xlane.xlu0 %188 }
 0x16d   :  { %v198_v32 = vmul.f32 0.03125, %v189_v31  ;;  %v205_v33 = vmul.f32 %v201_v30, %v201_v30 }
 0x16f   :  { %v202_v34 = vsub.f32 %v6055_v21, %v198_v32  ;;  %v209_v35 = vsel %vm183_vm1, %v205_v33, 0.0 }
 0x170   :  { %210 = vadd.xlane.f32.xlu1 %v209_v35  ;;  %v192_v36 = vpop.xlane.xlu0 %191 }
 0x171   :  { %v206_v37 = vmul.f32 %v202_v34, %v202_v34  ;;  %v199_v38 = vmul.f32 0.03125, %v192_v36 }
 0x173   :  { %v212_v39 = vsel %vm183_vm1, %v206_v37, 0.0  ;;  %v203_v40 = vsub.f32 %v6061_v25, %v199_v38 }
 0x174   :  { %213 = vadd.xlane.f32.xlu1 %v212_v39 }
 0x175   :  { %v207_v42 = vmul.f32 %v203_v40, %v203_v40 }
 0x177   :  { %v215_v43 = vsel %vm183_vm1, %v207_v42, 0.0 }
 0x178   :  { %194 = vadd.xlane.f32.xlu1 %v193_v41  ;;  %216 = vadd.xlane.f32.xlu0 %v215_v43 }
 0x1f9   :  { %v211_v48 = vpop.xlane.xlu1 %210 }
 0x1fa   :  { %v221_v49 = vmul.f32 0.03125, %v211_v48 }
 0x1fc   :  { %v225_v50 = vadd.f32 1e-06, %v221_v49 }
 0x1fd   :  { %v214_v51 = vpop.xlane.xlu1 %213 }
 0x1fe   :  { %5694 = vrsqrt.f32 %v225_v50  ;;  %v222_v52 = vmul.f32 0.03125, %v214_v51 }
 0x200   :  { %v226_v53 = vadd.f32 1e-06, %v222_v52 }
 0x201   :  { %v195_v54 = vpop.xlane.xlu1 %194  ;;  %v217_v55 = vpop.xlane.xlu0 %216 }
 0x202   :  { %5696 = vrsqrt.f32 %v226_v53  ;;  %v200_v56 = vmul.f32 0.03125, %v195_v54  ;;  %v223_v57 = vmul.f32 0.03125, %v217_v55 }
 0x204   :  { %v204_v58 = vsub.f32 %v6059_v23, %v200_v56  ;;  %v227_v59 = vadd.f32 1e-06, %v223_v57 }
 0x206   :  { %v208_v60 = vmul.f32 %v204_v58, %v204_v58  ;;  %5698 = vrsqrt.f32 %v227_v59 }
 0x208   :  { %v218_v61 = vsel %vm183_vm1, %v208_v60, 0.0 }
 0x209   :  { %219 = vadd.xlane.f32.xlu1 %v218_v61 }
 0x20b   :  { %v5695_v62 = vpop.eup %5694 }
 0x20c   :  { %v233_v0 = vmul.f32 %v5695_v62, %v201_v30 }
 0x20e   :  { %v243_v2 = vmul.f32 %v4877_v63, %v233_v0 }
 0x20f   :  { %v5697_v3 = vpop.eup %5696 }
 0x210   :  { %v234_v4 = vmul.f32 %v5697_v3, %v202_v34  ;;  %v253_v5 = vadd.f32 %v4878_v1, %v243_v2 }
 0x212   :  { %v244_v6 = vmul.f32 %v4877_v63, %v234_v4  ;;  %5303 = vmatprep.mubr.msk.f32.mxu1 %vm183_vm1, %v253_v5 }
 0x213   :  { %v5699_v7 = vpop.eup %5698 }
 0x214   :  { %v254_v8 = vadd.f32 %v4878_v1, %v244_v6  ;;  %v235_v9 = vmul.f32 %v5699_v7, %v203_v40 }
 0x216   :  { %5304 = vmatmul.mubr.msk.f32.vlgmr.msra.gmra.mxu1 %vm183_vm1, %v254_v8  ;;  %v245_v10 = vmul.f32 %v4877_v63, %v235_v9 }
 0x218   :  { %v255_v11 = vadd.f32 %v4878_v1, %v245_v10 }
 0x21a   :  { %5306 = vmatprep.mubr.msk.f32.mxu1 %vm183_vm1, %v255_v11 }
 0x292   :  { %v220_v12 = vpop.xlane.xlu1 %219 }
 0x293   :  { %v224_v13 = vmul.f32 0.03125, %v220_v12 }
 0x295   :  { %v228_v14 = vadd.f32 1e-06, %v224_v13 }
 0x297   :  { %5700 = vrsqrt.f32 %v228_v14 }
 0x2a4   :  { %v5701_v15 = vpop.eup %5700 }
 0x2a5   :  { %v236_v16 = vmul.f32 %v5701_v15, %v204_v58 }
 0x2a7   :  { %v246_v17 = vmul.f32 %v4877_v63, %v236_v16 }
 0x2a9   :  { %v256_v19 = vadd.f32 %v4878_v1, %v246_v17 }
 0x2ab   :  { %5307 = vmatmul.mubr.msk.f32.gmra.mxu1 %vm183_vm1, %v256_v19 }
 0x2d6   :  { %v5305_v22 = vpop.f32.mrf.mxu1 }
 0x2d7   :  { %v6105_v24 = vadd.f32 %v5305_v22, %v6102_v20 }
 0x2d8   :  { %v346_v26 = vpop.f32.mrf.mxu1 }
 0x2d9   :  { %v6108_v27 = vadd.f32 %v6102_v20, %v346_v26  ;;  %371 = vrot.lane.b32.xlu0 %v6105_v24, %s5900_s25  ;;  %v6126_v29 = vmul.f32 0.35355338, %v6105_v24 }
 0x2db   :  { %369 = vrot.lane.b32.xlu1 %v6108_v27, %s5900_s25  ;;  %v6115_v28 = vmul.f32 0.35355338, %v6108_v27 }
 0x2dd   :  { %569 = vrot.lane.b32.xlu0 %v6115_v28, %s5901_s26  ;;  %5313 = vmatprep.mubr.msk.f32.mxu1 %vm373_vm2, %v6115_v28 }
 0x2df   :  { %575 = vrot.lane.b32.xlu1 %v6105_v24, %s5902_s3 }
 0x2e3   :  { %573 = vrot.lane.b32.xlu1 %v6108_v27, %s5902_s3 }
 0x2e7   :  { %571 = vrot.lane.b32.xlu1 %v6126_v29, %s5901_s26 }
 0x34b   :  { %v372_v30 = vpop.permute.xlu0 %371 }
 0x34c   :  { %5309 = vmatprep.subr.msk.mxu1 %vm373_vm2, %v372_v30 }
 0x34d   :  { %v370_v31 = vpop.permute.xlu1 %369  ;;  %5310 = vmatpush3.xpose.msk.msra.mxu1 %vm373_vm2, %v372_v30 }
 0x34e   :  { %5311 = vmatprep.subr.msk.mxu1 %vm373_vm2, %v370_v31 }
 0x34f   :  { %v570_v33 = vpop.permute.xlu0 %569 }
 0x351   :  { %v576_v32 = vpop.permute.xlu1 %575  ;;  %5312 = vmatpush3.xpose.msk.msra.mxu1 %vm373_vm2, %v370_v31 }
 0x352   :  { %5323 = vmatprep.subr.msk.mxu1 %vm373_vm2, %v576_v32 }
 0x354   :  { %5314 = vmatmul.mubr.msk.f32.vlgmr.msra.gmra.mxu1 %vm373_vm2, %v6126_v29 }
 0x355   :  { %v574_v34 = vpop.permute.xlu1 %573  ;;  %5324 = vmatpush3.xpose.msk.msra.mxu1 %vm373_vm2, %v576_v32  ;;  %5327 = vmatprep.mubr.msk.f32.mxu1 %vm373_vm2, %v570_v33 }
 0x356   :  { %5325 = vmatprep.subr.msk.mxu1 %vm373_vm2, %v574_v34 }
 0x359   :  { %5326 = vmatpush3.xpose.msk.msra.mxu1 %vm373_vm2, %v574_v34  ;;  %v572_v35 = vpop.permute.xlu1 %571 }
 0x35c   :  { %5328 = vmatmul.mubr.msk.f32.vlgmr.msra.gmra.mxu1 %vm373_vm2, %v572_v35 }
 0x36b   :  { %v6142_v36 = vpop.f32.mrf.mxu1 }
 0x36d   :  { %v6144_v37 = vpop.f32.mrf.mxu1 }
 0x414   :  { %v5315_v38 = vpop.f32.mrf.mxu1 }
 0x415   :  { %v463_v39 = vsel %vm459_vm3, %v5315_v38, -inf }
 0x416   :  { %464 = vmax.xlane.f32.xlu1 %v463_v39  ;;  %v450_v40 = vpop.f32.mrf.mxu1 }
 0x417   :  { %v460_v41 = vsel %vm459_vm3, %v450_v40, -inf }
 0x418   :  { %461 = vmax.xlane.f32.xlu0 %v460_v41 }
 0x41c   :  { %v5329_v42 = vpop.f32.mrf.mxu1 }
 0x41d   :  { %v663_v45 = vsel %vm459_vm3, %v5329_v42, -inf }
 0x41e   :  { %v651_v43 = vpop.f32.mrf.mxu1 }
 0x41f   :  { %v660_v44 = vsel %vm459_vm3, %v651_v43, -inf }
 0x420   :  { %661 = vmax.xlane.f32.xlu0 %v660_v44 }
 0x424   :  { %664 = vmax.xlane.f32.xlu0 %v663_v45 }
 0x427   :  { %482 = vrot.lane.b32.xlu1 %v6108_v27, %s5903_s22 }
 0x42b   :  { %684 = vrot.lane.b32.xlu1 %v6105_v24, %s5904_s27 }
 0x42f   :  { %682 = vrot.lane.b32.xlu1 %v6108_v27, %s5904_s27 }
 0x43a   :  { %484 = vrot.lane.b32.xlu0 %v6105_v24, %s5903_s22 }
 0x49f   :  { %v465_v46 = vpop.xlane.xlu1 %464 }
 0x4a0   :  { %v467_v47 = vsub.f32 %v5315_v38, %v465_v46 }
 0x4a1   :  { %v462_v48 = vpop.xlane.xlu0 %461 }
 0x4a2   :  { %v470_v49 = vmul.f32 1.442695, %v467_v47  ;;  %v466_v50 = vsub.f32 %v450_v40, %v462_v48 }
 0x4a3   :  { %v483_v57 = vpop.permute.xlu1 %482 }
 0x4a4   :  { %5702 = vpow2.f32 %v470_v49  ;;  %v468_v51 = vmul.f32 1.442695, %v466_v50 }
 0x4a6   :  { %5704 = vpow2.f32 %v468_v51 }
 0x4a7   :  { %v685_v0 = vpop.permute.xlu1 %684 }
 0x4a9   :  { %v662_v52 = vpop.xlane.xlu0 %661 }
 0x4aa   :  { %v666_v53 = vsub.f32 %v651_v43, %v662_v52 }
 0x4ab   :  { %v683_v5 = vpop.permute.xlu1 %682 }
 0x4ac   :  { %v668_v54 = vmul.f32 1.442695, %v666_v53 }
 0x4ad   :  { %v665_v55 = vpop.xlane.xlu0 %664 }
 0x4ae   :  { %5706 = vpow2.f32 %v668_v54  ;;  %v667_v56 = vsub.f32 %v5329_v42, %v665_v55 }
 0x4b0   :  { %v670_v58 = vmul.f32 1.442695, %v667_v56 }
 0x4b1   :  { %v5703_v59 = vpop.eup %5702  ;;  %v485_v60 = vpop.permute.xlu0 %484 }
 0x4b2   :  { %5708 = vpow2.f32 %v670_v58  ;;  %5316 = vmatprep.subr.mxu0 %v485_v60  ;;  %v475_v61 = vsel %vm459_vm3, %v5703_v59, 0.0 }
 0x4b3   :  { %v5705_v62 = vpop.eup %5704  ;;  %476 = vadd.xlane.f32.xlu1 %v475_v61  ;;  %5317 = vmatpush3.msra.mxu0 %v485_v60 }
 0x4b4   :  { %5318 = vmatprep.subr.mxu0 %v483_v57  ;;  %v472_v63 = vsel %vm459_vm3, %v5705_v62, 0.0 }
 0x4b5   :  { %473 = vadd.xlane.f32.xlu0 %v472_v63  ;;  %5319 = vmatpush3.msra.mxu0 %v483_v57 }
 0x4b6   :  { %5330 = vmatprep.subr.mxu0 %v685_v0 }
 0x4bb   :  { %v5707_v1 = vpop.eup %5706 }
 0x4bc   :  { %v672_v2 = vsel %vm459_vm3, %v5707_v1, 0.0 }
 0x4bd   :  { %673 = vadd.xlane.f32.xlu0 %v672_v2 }
 0x4bf   :  { %v5709_v3 = vpop.eup %5708 }
 0x4c0   :  { %v675_v4 = vsel %vm459_vm3, %v5709_v3, 0.0 }
 0x4c1   :  { %676 = vadd.xlane.f32.xlu1 %v675_v4  ;;  %v6228_v4 = vadd.f32 %v6102_v20, %v6144_v37 }
 0x4d2   :  { %773 = vrot.lane.b32.xlu1 %v6108_v27, %s5905_s28 }
 0x4d3   :  { %775 = vrot.lane.b32.xlu0 %v6105_v24, %s5905_s28 }
 0x4d6   :  { %771 = vrot.lane.b32.xlu1 %v6126_v29, %s5906_s30 }
 0x4d7   :  { %769 = vrot.lane.b32.xlu0 %v6115_v28, %s5906_s30 }
 0x53c   :  { %v477_v6 = vpop.xlane.xlu1 %476 }
 0x53d   :  { %5710 = vrcp.f32 %v477_v6 }
 0x53e   :  { %v474_v7 = vpop.xlane.xlu0 %473 }
 0x53f   :  { %5712 = vrcp.f32 %v474_v7 }
 0x546   :  { %v674_v8 = vpop.xlane.xlu0 %673 }
 0x547   :  { %5714 = vrcp.f32 %v674_v8 }
 0x54a   :  { %v677_v9 = vpop.xlane.xlu1 %676  ;;  %v5711_v10 = vpop.eup %5710 }
 0x54b   :  { %5716 = vrcp.f32 %v677_v9  ;;  %v481_v13 = vmul.f32 %v5711_v10, %v5703_v59  ;;  %v776_v14 = vpop.permute.xlu0 %775 }
 0x54c   :  { %v5713_v11 = vpop.eup %5712 }
 0x54d   :  { %v480_v12 = vmul.f32 %v5713_v11, %v5705_v62 }
 0x54e   :  { %v774_v26 = vpop.permute.xlu1 %773 }
 0x54f   :  { %5320 = vmatprep.mubr.msk.f32.mxu0 %vm459_vm3, %v480_v12  ;;  %v770_v22 = vpop.permute.xlu0 %769 }
 0x550   :  { %5321 = vmatmul.mubr.msk.f32.vlgmr.msra.gmra.mxu0 %vm459_vm3, %v481_v13 }
 0x551   :  { %5331 = vmatpush3.msra.mxu0 %v685_v0 }
 0x552   :  { %5332 = vmatprep.subr.mxu0 %v683_v5  ;;  %v772_v30 = vpop.permute.xlu1 %771 }
 0x553   :  { %5333 = vmatpush3.msra.mxu0 %v683_v5 }
 0x554   :  { %v5715_v15 = vpop.eup %5714  ;;  %5337 = vmatprep.subr.msk.mxu0 %vm373_vm2, %v776_v14 }
 0x555   :  { %v680_v16 = vmul.f32 %v5715_v15, %v5707_v1 }
 0x557   :  { %5334 = vmatprep.mubr.msk.f32.mxu0 %vm459_vm3, %v680_v16 }
 0x558   :  { %v5717_v17 = vpop.eup %5716 }
 0x559   :  { %v681_v19 = vmul.f32 %v5717_v17, %v5709_v3  ;;  %v6222_v3 = vadd.f32 %v6142_v36, %v6102_v20 }
 0x55b   :  { %5335 = vmatmul.mubr.msk.f32.vlgmr.msra.gmra.mxu0 %vm459_vm3, %v681_v19 }
 0x55c   :  { %5338 = vmatpush3.xpose.msk.msra.mxu0 %vm373_vm2, %v776_v14  ;;  %5341 = vmatprep.mubr.msk.f32.mxu0 %vm373_vm2, %v770_v22 }
 0x55d   :  { %5339 = vmatprep.subr.msk.mxu0 %vm373_vm2, %v774_v26 }
 0x560   :  { %5340 = vmatpush3.xpose.msk.msra.mxu0 %vm373_vm2, %v774_v26 }
 0x563   :  { %5342 = vmatmul.mubr.msk.f32.vlgmr.msra.gmra.mxu0 %vm373_vm2, %v772_v30  ;;  %v6248_v30 = vmul.f32 0.35355338, %v6222_v3 }
 0x610   :  { %v6180_v31 = vpop.f32.mrf.mxu0 }
 0x612   :  { %v6182_v32 = vpop.f32.mrf.mxu0 }
 0x61b   :  { %v6184_v33 = vpop.f32.mrf.mxu0 }
 0x61d   :  { %v6186_v34 = vpop.f32.mrf.mxu0 }
 0x623   :  { %v5343_v35 = vpop.f32.mrf.mxu0 }
 0x624   :  { %v863_v38 = vsel %vm459_vm3, %v5343_v35, -inf }
 0x625   :  { %864 = vmax.xlane.f32.xlu1 %v863_v38  ;;  %v851_v39 = vpop.f32.mrf.mxu0 }
 0x626   :  { %v860_v40 = vsel %vm459_vm3, %v851_v39, -inf }
 0x627   :  { %861 = vmax.xlane.f32.xlu0 %v860_v40 }
 0x636   :  { %882 = vrot.lane.b32.xlu1 %v6108_v27, %s5907_s0 }
 0x63a   :  { %975 = vrot.lane.b32.xlu1 %v6105_v24, %s7051_s19 }
 0x63e   :  { %973 = vrot.lane.b32.xlu1 %v6108_v27, %s7051_s19 }
 0x642   :  { %971 = vrot.lane.b32.xlu1 %v6126_v29, %s7047_s1 }
 0x6ae   :  { %v865_v41 = vpop.xlane.xlu1 %864 }
 0x6af   :  { %v867_v42 = vsub.f32 %v5343_v35, %v865_v41 }
 0x6b0   :  { %v862_v43 = vpop.xlane.xlu0 %861 }
 0x6b1   :  { %v870_v44 = vmul.f32 1.442695, %v867_v42  ;;  %v866_v45 = vsub.f32 %v851_v39, %v862_v43 }
 0x6b2   :  { %v883_v52 = vpop.permute.xlu1 %882 }
 0x6b3   :  { %5718 = vpow2.f32 %v870_v44  ;;  %v868_v46 = vmul.f32 1.442695, %v866_v45 }
 0x6b5   :  { %5720 = vpow2.f32 %v868_v46 }
 0x6b6   :  { %v976_v54 = vpop.permute.xlu1 %975 }
 0x6ba   :  { %v974_v59 = vpop.permute.xlu1 %973 }
 0x6be   :  { %v972_v60 = vpop.permute.xlu1 %971 }
 0x6c0   :  { %v5719_v47 = vpop.eup %5718 }
 0x6c1   :  { %v875_v48 = vsel %vm459_vm3, %v5719_v47, 0.0 }
 0x6c2   :  { %v5721_v49 = vpop.eup %5720  ;;  %876 = vadd.xlane.f32.xlu0 %v875_v48 }
 0x6c3   :  { %v872_v50 = vsel %vm459_vm3, %v5721_v49, 0.0 }
 0x6c6   :  { %873 = vadd.xlane.f32.xlu0 %v872_v50 }
 0x6dc   :  { %884 = vrot.lane.b32.xlu0 %v6105_v24, %s5907_s0 }
 0x6e0   :  { %969 = vrot.lane.b32.xlu0 %v6115_v28, %s7047_s1 }
 0x74b   :  { %v877_v29 = vpop.xlane.xlu0 %876 }
 0x74c   :  { %5722 = vrcp.f32 %v877_v29 }
 0x74f   :  { %v874_v51 = vpop.xlane.xlu0 %873 }
 0x750   :  { %5724 = vrcp.f32 %v874_v51 }
 0x753   :  { %v885_v53 = vpop.permute.xlu0 %884 }
 0x754   :  { %5344 = vmatprep.subr.mxu1 %v885_v53 }
 0x755   :  { %5345 = vmatpush3.msra.mxu1 %v885_v53 }
 0x756   :  { %5346 = vmatprep.subr.mxu1 %v883_v52 }
 0x757   :  { %5347 = vmatpush3.msra.mxu1 %v883_v52  ;;  %v970_v28 = vpop.permute.xlu0 %969 }
 0x758   :  { %5351 = vmatprep.subr.msk.mxu1 %vm373_vm2, %v976_v54 }
 0x759   :  { %v5723_v55 = vpop.eup %5722 }
 0x75a   :  { %v881_v58 = vmul.f32 %v5723_v55, %v5719_v47 }
 0x75d   :  { %v5725_v56 = vpop.eup %5724 }
 0x75e   :  { %v880_v57 = vmul.f32 %v5725_v56, %v5721_v49 }
 0x760   :  { %5348 = vmatprep.mubr.msk.f32.mxu1 %vm459_vm3, %v880_v57 }
 0x761   :  { %5349 = vmatmul.mubr.msk.f32.vlgmr.msra.gmra.mxu1 %vm459_vm3, %v881_v58 }
 0x762   :  { %5352 = vmatpush3.xpose.msk.msra.mxu1 %vm373_vm2, %v976_v54  ;;  %5355 = vmatprep.mubr.msk.f32.mxu1 %vm373_vm2, %v970_v28 }
 0x763   :  { %5353 = vmatprep.subr.msk.mxu1 %vm373_vm2, %v974_v59 }
 0x766   :  { %5354 = vmatpush3.xpose.msk.msra.mxu1 %vm373_vm2, %v974_v59 }
 0x769   :  { %5356 = vmatmul.mubr.msk.f32.vlgmr.msra.gmra.mxu1 %vm373_vm2, %v972_v60 }
 0x821   :  { %v6212_v61 = vpop.f32.mrf.mxu1 }
 0x823   :  { %v6214_v62 = vpop.f32.mrf.mxu1 }
 0x829   :  { %v5357_v63 = vpop.f32.mrf.mxu1 }
 0x82a   :  { %v1063_v0 = vsel %vm459_vm3, %v5357_v63, -inf }
 0x82b   :  { %1064 = vmax.xlane.f32.xlu1 %v1063_v0  ;;  %v1051_v1 = vpop.f32.mrf.mxu1 }
 0x82c   :  { %v1060_v2 = vsel %vm459_vm3, %v1051_v1, -inf }
 0x82d   :  { %1061 = vmax.xlane.f32.xlu0 %v1060_v2 }
 0x83c   :  { %1082 = vrot.lane.b32.xlu1 %v6108_v27, %s7045_s20 }
 0x840   :  { %1206 = vrot.lane.b32.xlu1 %v6222_v3, %s5900_s25 }
 0x844   :  { %1204 = vrot.lane.b32.xlu1 %v6228_v4, %s5900_s25 }
 0x8b4   :  { %v1065_v5 = vpop.xlane.xlu1 %1064 }
 0x8b5   :  { %v1067_v6 = vsub.f32 %v5357_v63, %v1065_v5 }
 0x8b6   :  { %v1062_v7 = vpop.xlane.xlu0 %1061 }
 0x8b7   :  { %v1070_v8 = vmul.f32 1.442695, %v1067_v6  ;;  %v1066_v9 = vsub.f32 %v1051_v1, %v1062_v7 }
 0x8b8   :  { %v1083_v13 = vpop.permute.xlu1 %1082 }
 0x8b9   :  { %5726 = vpow2.f32 %v1070_v8  ;;  %v1068_v27 = vmul.f32 1.442695, %v1066_v9 }
 0x8bb   :  { %5728 = vpow2.f32 %v1068_v27 }
 0x8bc   :  { %v1207_v15 = vpop.permute.xlu1 %1206 }
 0x8c0   :  { %v1205_v26 = vpop.permute.xlu1 %1204 }
 0x8c6   :  { %v5727_v36 = vpop.eup %5726 }
 0x8c7   :  { %v1075_v10 = vsel %vm459_vm3, %v5727_v36, 0.0 }
 0x8c8   :  { %v5729_v11 = vpop.eup %5728  ;;  %1076 = vadd.xlane.f32.xlu0 %v1075_v10 }
 0x8c9   :  { %v1072_v12 = vsel %vm459_vm3, %v5729_v11, 0.0 }
 0x8cc   :  { %1073 = vadd.xlane.f32.xlu0 %v1072_v12 }
 0x8e2   :  { %1084 = vrot.lane.b32.xlu0 %v6105_v24, %s7045_s20  ;;  %v6239_v24 = vmul.f32 0.35355338, %v6228_v4 }
 0x951   :  { %v1077_v20 = vpop.xlane.xlu0 %1076 }
 0x952   :  { %5730 = vrcp.f32 %v1077_v20 }
 0x955   :  { %v1074_v37 = vpop.xlane.xlu0 %1073 }
 0x956   :  { %5732 = vrcp.f32 %v1074_v37 }
 0x959   :  { %v1085_v14 = vpop.permute.xlu0 %1084 }
 0x95a   :  { %5358 = vmatprep.subr.mxu0 %v1085_v14 }
 0x95b   :  { %5359 = vmatpush3.msra.mxu0 %v1085_v14 }
 0x95c   :  { %5360 = vmatprep.subr.mxu0 %v1083_v13 }
 0x95d   :  { %5361 = vmatpush3.msra.mxu0 %v1083_v13 }
 0x95e   :  { %5365 = vmatprep.subr.msk.mxu0 %vm373_vm2, %v1207_v15 }
 0x95f   :  { %v5731_v16 = vpop.eup %5730 }
 0x960   :  { %v1081_v22 = vmul.f32 %v5731_v16, %v5727_v36 }
 0x963   :  { %v5733_v17 = vpop.eup %5732 }
 0x964   :  { %v1080_v19 = vmul.f32 %v5733_v17, %v5729_v11 }
 0x966   :  { %5362 = vmatprep.mubr.msk.f32.mxu0 %vm459_vm3, %v1080_v19 }
 0x967   :  { %5363 = vmatmul.mubr.msk.f32.vlgmr.msra.gmra.mxu0 %vm459_vm3, %v1081_v22 }
 0x968   :  { %5366 = vmatpush3.xpose.msk.msra.mxu0 %vm373_vm2, %v1207_v15  ;;  %5369 = vmatprep.mubr.msk.f32.mxu0 %vm373_vm2, %v6239_v24 }
 0x969   :  { %5367 = vmatprep.subr.msk.mxu0 %vm373_vm2, %v1205_v26 }
 0x96c   :  { %5368 = vmatpush3.xpose.msk.msra.mxu0 %vm373_vm2, %v1205_v26 }
 0x96f   :  { %5370 = vmatmul.mubr.msk.f32.vlgmr.msra.gmra.mxu0 %vm373_vm2, %v6248_v30 }
 0xa27   :  { %v6252_v35 = vpop.f32.mrf.mxu0 }
 0xa29   :  { %v6254_v38 = vpop.f32.mrf.mxu0 }
 0xa2f   :  { %v5371_v39 = vpop.f32.mrf.mxu0 }
 0xa30   :  { %v1296_v40 = vsel %vm459_vm3, %v5371_v39, -inf }
 0xa31   :  { %1297 = vmax.xlane.f32.xlu1 %v1296_v40  ;;  %v1284_v41 = vpop.f32.mrf.mxu0 }
 0xa32   :  { %v1293_v42 = vsel %vm459_vm3, %v1284_v41, -inf }
 0xa33   :  { %1294 = vmax.xlane.f32.xlu0 %v1293_v42 }
 0xa42   :  { %1315 = vrot.lane.b32.xlu1 %v6228_v4, %s5903_s22 }
 0xa46   :  { %1408 = vrot.lane.b32.xlu1 %v6222_v3, %s5902_s3 }
 0xa4a   :  { %1406 = vrot.lane.b32.xlu1 %v6228_v4, %s5902_s3 }
 0xa4e   :  { %1404 = vrot.lane.b32.xlu1 %v6248_v30, %s5901_s26 }
 0xaba   :  { %v1298_v43 = vpop.xlane.xlu1 %1297 }
 0xabb   :  { %v1300_v44 = vsub.f32 %v5371_v39, %v1298_v43 }
 0xabc   :  { %v1295_v45 = vpop.xlane.xlu0 %1294 }
 0xabd   :  { %v1303_v46 = vmul.f32 1.442695, %v1300_v44  ;;  %v1299_v47 = vsub.f32 %v1284_v41, %v1295_v45 }
 0xabe   :  { %v1316_v54 = vpop.permute.xlu1 %1315 }
 0xabf   :  { %5734 = vpow2.f32 %v1303_v46  ;;  %v1301_v48 = vmul.f32 1.442695, %v1299_v47 }
 0xac1   :  { %5736 = vpow2.f32 %v1301_v48 }
 0xac2   :  { %v1409_v56 = vpop.permute.xlu1 %1408 }
 0xac6   :  { %v1407_v63 = vpop.permute.xlu1 %1406 }
 0xaca   :  { %v1405_v0 = vpop.permute.xlu1 %1404 }
 0xacc   :  { %v5735_v49 = vpop.eup %5734 }
 0xacd   :  { %v1308_v50 = vsel %vm459_vm3, %v5735_v49, 0.0 }
 0xace   :  { %v5737_v29 = vpop.eup %5736  ;;  %1309 = vadd.xlane.f32.xlu0 %v1308_v50 }
 0xacf   :  { %v1305_v51 = vsel %vm459_vm3, %v5737_v29, 0.0 }
 0xad2   :  { %1306 = vadd.xlane.f32.xlu0 %v1305_v51 }
 0xae8   :  { %1317 = vrot.lane.b32.xlu0 %v6222_v3, %s5903_s22 }
 0xaec   :  { %1402 = vrot.lane.b32.xlu0 %v6239_v24, %s5901_s26 }
 0xb57   :  { %v1310_v52 = vpop.xlane.xlu0 %1309 }
 0xb58   :  { %5738 = vrcp.f32 %v1310_v52 }
 0xb5b   :  { %v1307_v53 = vpop.xlane.xlu0 %1306 }
 0xb5c   :  { %5740 = vrcp.f32 %v1307_v53 }
 0xb5f   :  { %v1318_v55 = vpop.permute.xlu0 %1317 }
 0xb60   :  { %5372 = vmatprep.subr.mxu1 %v1318_v55 }
 0xb61   :  { %5373 = vmatpush3.msra.mxu1 %v1318_v55 }
 0xb62   :  { %5374 = vmatprep.subr.mxu1 %v1316_v54 }
 0xb63   :  { %5375 = vmatpush3.msra.mxu1 %v1316_v54  ;;  %v1403_v60 = vpop.permute.xlu0 %1402 }
 0xb64   :  { %5379 = vmatprep.subr.msk.mxu1 %vm373_vm2, %v1409_v56 }
 0xb65   :  { %v5739_v57 = vpop.eup %5738 }
 0xb66   :  { %v1314_v59 = vmul.f32 %v5739_v57, %v5735_v49 }
 0xb69   :  { %v5741_v58 = vpop.eup %5740 }
 0xb6a   :  { %v1313_v28 = vmul.f32 %v5741_v58, %v5737_v29 }
 0xb6c   :  { %5376 = vmatprep.mubr.msk.f32.mxu1 %vm459_vm3, %v1313_v28 }
 0xb6d   :  { %5377 = vmatmul.mubr.msk.f32.vlgmr.msra.gmra.mxu1 %vm459_vm3, %v1314_v59 }
 0xb6e   :  { %5380 = vmatpush3.xpose.msk.msra.mxu1 %vm373_vm2, %v1409_v56  ;;  %5383 = vmatprep.mubr.msk.f32.mxu1 %vm373_vm2, %v1403_v60 }
 0xb6f   :  { %5381 = vmatprep.subr.msk.mxu1 %vm373_vm2, %v1407_v63 }
 0xb72   :  { %5382 = vmatpush3.xpose.msk.msra.mxu1 %vm373_vm2, %v1407_v63 }
 0xb75   :  { %5384 = vmatmul.mubr.msk.f32.vlgmr.msra.gmra.mxu1 %vm373_vm2, %v1405_v0 }
 0xc2d   :  { %v6280_v1 = vpop.f32.mrf.mxu1 }
 0xc2f   :  { %v6282_v2 = vpop.f32.mrf.mxu1 }
 0xc35   :  { %v5385_v5 = vpop.f32.mrf.mxu1 }
 0xc36   :  { %v1496_v6 = vsel %vm459_vm3, %v5385_v5, -inf }
 0xc37   :  { %1497 = vmax.xlane.f32.xlu1 %v1496_v6  ;;  %v1484_v7 = vpop.f32.mrf.mxu1 }
 0xc38   :  { %v1493_v8 = vsel %vm459_vm3, %v1484_v7, -inf }
 0xc39   :  { %1494 = vmax.xlane.f32.xlu0 %v1493_v8 }
 0xc48   :  { %1515 = vrot.lane.b32.xlu1 %v6228_v4, %s5904_s27 }
 0xc4c   :  { %1608 = vrot.lane.b32.xlu1 %v6222_v3, %s5905_s28 }
 0xc50   :  { %1606 = vrot.lane.b32.xlu1 %v6228_v4, %s5905_s28 }
 0xc54   :  { %1604 = vrot.lane.b32.xlu1 %v6248_v30, %s5906_s30 }
 0xcc0   :  { %v1498_v9 = vpop.xlane.xlu1 %1497 }
 0xcc1   :  { %v1500_v27 = vsub.f32 %v5385_v5, %v1498_v9 }
 0xcc2   :  { %v1495_v36 = vpop.xlane.xlu0 %1494 }
 0xcc3   :  { %v1503_v10 = vmul.f32 1.442695, %v1500_v27  ;;  %v1499_v11 = vsub.f32 %v1484_v7, %v1495_v36 }
 0xcc4   :  { %v1516_v17 = vpop.permute.xlu1 %1515 }
 0xcc5   :  { %5742 = vpow2.f32 %v1503_v10  ;;  %v1501_v12 = vmul.f32 1.442695, %v1499_v11 }
 0xcc7   :  { %5744 = vpow2.f32 %v1501_v12 }
 0xcc8   :  { %v1609_v22 = vpop.permute.xlu1 %1608 }
 0xccc   :  { %v1607_v43 = vpop.permute.xlu1 %1606 }
 0xcd0   :  { %v1605_v44 = vpop.permute.xlu1 %1604 }
 0xcd2   :  { %v5743_v20 = vpop.eup %5742 }
 0xcd3   :  { %v1508_v37 = vsel %vm459_vm3, %v5743_v20, 0.0 }
 0xcd4   :  { %v5745_v13 = vpop.eup %5744  ;;  %1509 = vadd.xlane.f32.xlu0 %v1508_v37 }
 0xcd5   :  { %v1505_v14 = vsel %vm459_vm3, %v5745_v13, 0.0 }
 0xcd8   :  { %1506 = vadd.xlane.f32.xlu0 %v1505_v14 }
 0xcee   :  { %1517 = vrot.lane.b32.xlu0 %v6222_v3, %s5904_s27 }
 0xcf2   :  { %1602 = vrot.lane.b32.xlu0 %v6239_v24, %s5906_s30 }
 0xd5d   :  { %v1510_v15 = vpop.xlane.xlu0 %1509 }
 0xd5e   :  { %5746 = vrcp.f32 %v1510_v15 }
 0xd61   :  { %v1507_v16 = vpop.xlane.xlu0 %1506 }
 0xd62   :  { %5748 = vrcp.f32 %v1507_v16 }
 0xd65   :  { %v1518_v19 = vpop.permute.xlu0 %1517 }
 0xd66   :  { %5386 = vmatprep.subr.mxu0 %v1518_v19 }
 0xd67   :  { %5387 = vmatpush3.msra.mxu0 %v1518_v19 }
 0xd68   :  { %5388 = vmatprep.subr.mxu0 %v1516_v17 }
 0xd69   :  { %5389 = vmatpush3.msra.mxu0 %v1516_v17  ;;  %v1603_v42 = vpop.permute.xlu0 %1602 }
 0xd6a   :  { %5393 = vmatprep.subr.msk.mxu0 %vm373_vm2, %v1609_v22 }
 0xd6b   :  { %v5747_v26 = vpop.eup %5746 }
 0xd6c   :  { %v1514_v41 = vmul.f32 %v5747_v26, %v5743_v20 }
 0xd6f   :  { %v5749_v39 = vpop.eup %5748 }
 0xd70   :  { %v1513_v40 = vmul.f32 %v5749_v39, %v5745_v13 }
 0xd72   :  { %5390 = vmatprep.mubr.msk.f32.mxu0 %vm459_vm3, %v1513_v40 }
 0xd73   :  { %5391 = vmatmul.mubr.msk.f32.vlgmr.msra.gmra.mxu0 %vm459_vm3, %v1514_v41 }
 0xd74   :  { %5394 = vmatpush3.xpose.msk.msra.mxu0 %vm373_vm2, %v1609_v22  ;;  %5397 = vmatprep.mubr.msk.f32.mxu0 %vm373_vm2, %v1603_v42  ;;  %v2035_v22 = vld [vmem:[%s7028_s8 + $0x18] sm:$0xff] }
 0xd75   :  { %5395 = vmatprep.subr.msk.mxu0 %vm373_vm2, %v1607_v43 }
 0xd78   :  { %5396 = vmatpush3.xpose.msk.msra.mxu0 %vm373_vm2, %v1607_v43 }
 0xd7b   :  { %5398 = vmatmul.mubr.msk.f32.vlgmr.msra.gmra.mxu0 %vm373_vm2, %v1605_v44 }
 0xe33   :  { %v6308_v45 = vpop.f32.mrf.mxu0 }
 0xe35   :  { %v6310_v46 = vpop.f32.mrf.mxu0 }
 0xe3b   :  { %v5399_v47 = vpop.f32.mrf.mxu0 }
 0xe3c   :  { %v1696_v48 = vsel %vm459_vm3, %v5399_v47, -inf }
 0xe3d   :  { %1697 = vmax.xlane.f32.xlu1 %v1696_v48  ;;  %v1684_v49 = vpop.f32.mrf.mxu0 }
 0xe3e   :  { %v1693_v50 = vsel %vm459_vm3, %v1684_v49, -inf }
 0xe3f   :  { %1694 = vmax.xlane.f32.xlu0 %v1693_v50 }
 0xe4e   :  { %1715 = vrot.lane.b32.xlu1 %v6228_v4, %s5907_s0 }
 0xe52   :  { %1808 = vrot.lane.b32.xlu1 %v6222_v3, %s7051_s19 }
 0xe56   :  { %1806 = vrot.lane.b32.xlu1 %v6228_v4, %s7051_s19 }
 0xe5a   :  { %1804 = vrot.lane.b32.xlu1 %v6248_v30, %s7047_s1 }
 0xec6   :  { %v1698_v29 = vpop.xlane.xlu1 %1697 }
 0xec7   :  { %v1700_v51 = vsub.f32 %v5399_v47, %v1698_v29  ;;  %v2032_v29 = vld [vmem:[%s7028_s8] sm:$0xff] }
 0xec8   :  { %v1695_v52 = vpop.xlane.xlu0 %1694 }
 0xec9   :  { %v1703_v53 = vmul.f32 1.442695, %v1700_v51  ;;  %v1699_v54 = vsub.f32 %v1684_v49, %v1695_v52  ;;  %v2034_v49 = vld [vmem:[%s7028_s8 + $0x10] sm:$0xff] }
 0xeca   :  { %v1716_v60 = vpop.permute.xlu1 %1715 }
 0xecb   :  { %5750 = vpow2.f32 %v1703_v53  ;;  %v1701_v55 = vmul.f32 1.442695, %v1699_v54 }
 0xecd   :  { %5752 = vpow2.f32 %v1701_v55 }
 0xece   :  { %v1809_v0 = vpop.permute.xlu1 %1808 }
 0xed2   :  { %v1807_v9 = vpop.permute.xlu1 %1806 }
 0xed6   :  { %v1805_v27 = vpop.permute.xlu1 %1804 }
 0xed8   :  { %v5751_v56 = vpop.eup %5750 }
 0xed9   :  { %v1708_v57 = vsel %vm459_vm3, %v5751_v56, 0.0 }
 0xeda   :  { %v5753_v58 = vpop.eup %5752  ;;  %1709 = vadd.xlane.f32.xlu0 %v1708_v57 }
 0xedb   :  { %v1705_v28 = vsel %vm459_vm3, %v5753_v58, 0.0 }
 0xede   :  { %1706 = vadd.xlane.f32.xlu0 %v1705_v28 }
 0xef4   :  { %1717 = vrot.lane.b32.xlu0 %v6222_v3, %s5907_s0 }
 0xef8   :  { %1802 = vrot.lane.b32.xlu0 %v6239_v24, %s7047_s1 }
 0xf63   :  { %v1710_v30 = vpop.xlane.xlu0 %1709 }
 0xf64   :  { %5754 = vrcp.f32 %v1710_v30  ;;  %v4936_v30 = vld [vmem:[%s7029_s9] ss:$0 sm:$0xff] }
 0xf67   :  { %v1707_v59 = vpop.xlane.xlu0 %1706 }
 0xf68   :  { %5756 = vrcp.f32 %v1707_v59 }
 0xf6b   :  { %v1718_v63 = vpop.permute.xlu0 %1717 }
 0xf6c   :  { %5400 = vmatprep.subr.mxu1 %v1718_v63 }
 0xf6d   :  { %5401 = vmatpush3.msra.mxu1 %v1718_v63 }
 0xf6e   :  { %5402 = vmatprep.subr.mxu1 %v1716_v60 }
 0xf6f   :  { %5403 = vmatpush3.msra.mxu1 %v1716_v60  ;;  %v1803_v24 = vpop.permute.xlu0 %1802 }
 0xf70   :  { %5407 = vmatprep.subr.msk.mxu1 %vm373_vm2, %v1809_v0 }
 0xf71   :  { %v5755_v5 = vpop.eup %5754 }
 0xf72   :  { %v1714_v8 = vmul.f32 %v5755_v5, %v5751_v56 }
 0xf75   :  { %v5757_v6 = vpop.eup %5756 }
 0xf76   :  { %v1713_v7 = vmul.f32 %v5757_v6, %v5753_v58 }
 0xf78   :  { %5404 = vmatprep.mubr.msk.f32.mxu1 %vm459_vm3, %v1713_v7 }
 0xf79   :  { %5405 = vmatmul.mubr.msk.f32.vlgmr.msra.gmra.mxu1 %vm459_vm3, %v1714_v8 }
 0xf7a   :  { %5408 = vmatpush3.xpose.msk.msra.mxu1 %vm373_vm2, %v1809_v0  ;;  %5411 = vmatprep.mubr.msk.f32.mxu1 %vm373_vm2, %v1803_v24 }
 0xf7b   :  { %5409 = vmatprep.subr.msk.mxu1 %vm373_vm2, %v1807_v9 }
 0xf7e   :  { %5410 = vmatpush3.xpose.msk.msra.mxu1 %vm373_vm2, %v1807_v9 }
 0xf81   :  { %5412 = vmatmul.mubr.msk.f32.vlgmr.msra.gmra.mxu1 %vm373_vm2, %v1805_v27 }
0x1039   :  { %v5406_v36 = vpop.f32.mrf.mxu1 }
0x103b   :  { %v1793_v10 = vpop.f32.mrf.mxu1 }
0x1041   :  { %v5413_v11 = vpop.f32.mrf.mxu1 }
0x1042   :  { %v1896_v12 = vsel %vm459_vm3, %v5413_v11, -inf }
0x1043   :  { %1897 = vmax.xlane.f32.xlu1 %v1896_v12  ;;  %v1884_v20 = vpop.f32.mrf.mxu1 }
0x1044   :  { %v1893_v37 = vsel %vm459_vm3, %v1884_v20, -inf }
0x1045   :  { %1894 = vmax.xlane.f32.xlu0 %v1893_v37 }
0x1054   :  { %1915 = vrot.lane.b32.xlu1 %v6228_v4, %s7045_s20 }
0x1058   :  { %1171 = vrot.lane.b32.xlu1 %v6186_v34, %s7043_s29 }
0x105b   :  { %1917 = vrot.lane.b32.xlu0 %v6222_v3, %s7045_s20 }
0x105c   :  { %1173 = vrot.lane.b32.xlu1 %v6184_v33, %s7043_s29 }
0x1060   :  { %1181 = vrot.lane.b32.xlu1 %v6212_v61, %s7041_s21 }
0x1064   :  { %1189 = vrot.lane.b32.xlu1 %v6252_v35, %s7049_s2 }
0x1068   :  { %2006 = vrot.lane.b32.xlu1 %v6308_v45, %s7043_s29 }
0x106c   :  { %2014 = vrot.lane.b32.xlu1 %v5406_v36, %s7041_s21 }
0x10cc   :  { %v1898_v34 = vpop.xlane.xlu1 %1897 }
0x10cd   :  { %v1900_v4 = vsub.f32 %v5413_v11, %v1898_v34 }
0x10ce   :  { %v1895_v13 = vpop.xlane.xlu0 %1894 }
0x10cf   :  { %v1903_v3 = vmul.f32 1.442695, %v1900_v4  ;;  %v1899_v14 = vsub.f32 %v1884_v20, %v1895_v13 }
0x10d0   :  { %v1916_v61 = vpop.permute.xlu1 %1915 }
0x10d1   :  { %5758 = vpow2.f32 %v1903_v3  ;;  %v1901_v33 = vmul.f32 1.442695, %v1899_v14 }
0x10d2   :  { %v1918_v15 = vpop.permute.xlu0 %1917 }
0x10d3   :  { %5760 = vpow2.f32 %v1901_v33  ;;  %5414 = vmatprep.subr.mxu0 %v1918_v15  ;;  %v2225_v33 = vld [vmem:[%s7032_s12 + $0x18] sm:$0xff] }
0x10d4   :  { %5415 = vmatpush3.msra.mxu0 %v1918_v15  ;;  %v1172_v40 = vpop.permute.xlu1 %1171  ;;  %v2224_v15 = vld [vmem:[%s7032_s12 + $0x10] sm:$0xff]  ;;  %5435 = vmatprep.subr.mxu1 %v2225_v33 }
0x10d5   :  { %5416 = vmatprep.subr.mxu0 %v1916_v61  ;;  %5436 = vmatpush3.msra.mxu1 %v2225_v33 }
0x10d6   :  { %5417 = vmatpush3.msra.mxu0 %v1916_v61  ;;  %v2223_v61 = vld [vmem:[%s7032_s12 + $0x8] sm:$0xff]  ;;  %5437 = vmatprep.subr.mxu1 %v2224_v15 }
0x10d7   :  { %5421 = vmatprep.subr.mxu0 %v2035_v22  ;;  %5438 = vmatpush3.msra.mxu1 %v2224_v15 }
0x10d8   :  { %5439 = vmatprep.subr.mxu1 %v2223_v61 }
0x10d9   :  { %5440 = vmatpush3.msra.mxu1 %v2223_v61 }
0x10de   :  { %v5759_v35 = vpop.eup %5758 }
0x10df   :  { %v1908_v16 = vsel %vm459_vm3, %v5759_v35, 0.0 }
0x10e0   :  { %v5761_v17 = vpop.eup %5760  ;;  %1909 = vadd.xlane.f32.xlu0 %v1908_v16 }
0x10e1   :  { %v1905_v19 = vsel %vm459_vm3, %v5761_v17, 0.0 }
0x10e4   :  { %1906 = vadd.xlane.f32.xlu0 %v1905_v19 }
0x10fa   :  { %1179 = vrot.lane.b32.xlu0 %v6214_v62, %s7041_s21  ;;  %v1174_v62 = vpop.permute.xlu1 %1173 }
0x10fb   :  { %v1194_v52 = vsel %vm373_vm2, %v6180_v31, %v1174_v62 }
0x10fe   :  { %1187 = vrot.lane.b32.xlu0 %v6254_v38, %s7049_s2  ;;  %v1193_v38 = vsel %vm373_vm2, %v6182_v32, %v1172_v40  ;;  %v1182_v47 = vpop.permute.xlu1 %1181  ;;  %v2033_v32 = vld [vmem:[%s7028_s8 + $0x8] sm:$0xff] }
0x10ff   :  { %v1196_v53 = vsel %vm459_vm3, %v1194_v52, %v1182_v47  ;;  %v2364_v52 = vld [vmem:[%s7034_s14 + $0x68] sm:$0xff] }
0x1102   :  { %2004 = vrot.lane.b32.xlu0 %v6310_v46, %s7043_s29  ;;  %v1190_v51 = vpop.permute.xlu1 %1189 }
0x1103   :  { %v1199_v54 = vsel %vm1197_vm4, %v1196_v53, %v1190_v51 }
0x1106   :  { %2012 = vrot.lane.b32.xlu0 %v1793_v10, %s7041_s21  ;;  %v2007_v5 = vpop.permute.xlu1 %2006  ;;  %s7060_s21 = smov 104  }
0x1107   :  { %v2027_v24 = vsel %vm373_vm2, %v6280_v1, %v2007_v5  ;;  %v2354_v5 = vld [vmem:[%s7034_s14 + $0x18] sm:$0xff] }
0x110a   :  { %v2015_v6 = vpop.permute.xlu1 %2014 }
0x110b   :  { %v2029_v36 = vsel %vm459_vm3, %v2027_v24, %v2015_v6  ;;  %v2352_v6 = vld [vmem:[%s7034_s14 + $0x8] sm:$0xff] }
0x1169   :  { %v1910_v26 = vpop.xlane.xlu0 %1909 }
0x116a   :  { %5762 = vrcp.f32 %v1910_v26 }
0x116d   :  { %v1907_v39 = vpop.xlane.xlu0 %1906 }
0x116e   :  { %5764 = vrcp.f32 %v1907_v39 }
0x1171   :  { %v1180_v41 = vpop.permute.xlu0 %1179 }
0x1172   :  { %v1195_v46 = vsel %vm459_vm3, %v1193_v38, %v1180_v41 }
0x1175   :  { %v1188_v44 = vpop.permute.xlu0 %1187 }
0x1176   :  { %v1198_v50 = vsel %vm1197_vm4, %v1195_v46, %v1188_v44 }
0x1177   :  { %v5763_v42 = vpop.eup %5762 }
0x1178   :  { %v1914_v48 = vmul.f32 %v5763_v42, %v5759_v35  ;;  %v2222_v35 = vld [vmem:[%s7032_s12] sm:$0xff] }
0x1179   :  { %5441 = vmatprep.subr.mxu1 %v2222_v35 }
0x117a   :  { %5442 = vmatpush3.msra.mxu1 %v2222_v35 }
0x117b   :  { %v5765_v43 = vpop.eup %5764 }
0x117c   :  { %v1913_v45 = vmul.f32 %v5765_v43, %v5761_v17 }
0x117e   :  { %5418 = vmatprep.mubr.msk.f32.mxu0 %vm459_vm3, %v1913_v45 }
0x117f   :  { %5419 = vmatmul.mubr.msk.f32.vlgmr.msra.gmra.mxu0 %vm459_vm3, %v1914_v48  ;;  %v6445_v48 = vld [vmem:[%s7031_s11] ss:$0 sm:$0xff] }
0x1180   :  { %5422 = vmatpush3.msra.mxu0 %v2035_v22  ;;  %5429 = vmatprep.mubr.msk.f32.mxu0 %vm183_vm1, %v1198_v50  ;;  %v2365_v50 = vld [vmem:[%s7034_s14 + $0x70] sm:$0xff] }
0x1181   :  { %5423 = vmatprep.subr.mxu0 %v2034_v49 }
0x1182   :  { %5424 = vmatpush3.msra.mxu0 %v2034_v49  ;;  %v2366_v49 = vld [vmem:[%s7034_s14 + $0x78] sm:$0xff] }
0x1183   :  { %5425 = vmatprep.subr.mxu0 %v2033_v32 }
0x1184   :  { %5426 = vmatpush3.msra.mxu0 %v2033_v32 }
0x1185   :  { %5427 = vmatprep.subr.mxu0 %v2032_v29 }
0x1186   :  { %5428 = vmatpush3.msra.mxu0 %v2032_v29 }
0x1187   :  { %5430 = vmatmul.mubr.msk.f32.vlgmr.msra.gmra.mxu0 %vm183_vm1, %v1199_v54  ;;  %5449 = vmatprep.subr.mxu0 %v2366_v49 }
0x1188   :  { %5450 = vmatpush3.msra.mxu0 %v2366_v49 }
0x1189   :  { %5451 = vmatprep.subr.mxu0 %v2365_v50 }
0x118a   :  { %5452 = vmatpush3.msra.mxu0 %v2365_v50 }
0x118b   :  { %5453 = vmatprep.subr.mxu0 %v2364_v52 }
0x118c   :  { %5454 = vmatpush3.msra.mxu0 %v2364_v52 }
0x123f   :  { %v5420_v55 = vpop.f32.mrf.mxu0 }
0x1240   :  { %2022 = vrot.lane.b32.xlu1 %v5420_v55, %s7049_s2  ;;  %v2363_v55 = vld [vmem:[%s7034_s14 + $0x60] sm:$0xff] }
0x1241   :  { %v1993_v56 = vpop.f32.mrf.mxu0  ;;  %5455 = vmatprep.subr.mxu0 %v2363_v55 }
0x1242   :  { %2020 = vrot.lane.b32.xlu0 %v1993_v56, %s7049_s2  ;;  %5456 = vmatpush3.msra.mxu0 %v2363_v55  ;;  %v2362_v56 = vld [vmem:[%s7034_s14 + $0x58] sm:$0xff] }
0x1243   :  { %5457 = vmatprep.subr.mxu0 %v2362_v56 }
0x1244   :  { %5458 = vmatpush3.msra.mxu0 %v2362_v56 }
0x1247   :  { %v5431_v57 = vpop.f32.mrf.mxu0 }
0x1248   :  { %v2134_v31 = vadd.f32 %v5431_v57, %v6055_v21  ;;  %v2361_v57 = vld [vmem:[%s7034_s14 + $0x50] sm:$0xff] }
0x1249   :  { %v2114_v58 = vpop.f32.mrf.mxu0  ;;  %5459 = vmatprep.subr.mxu0 %v2361_v57 }
0x124a   :  { %v2133_v28 = vadd.f32 %v2114_v58, %v6053_v18  ;;  %v6395_v60 = vadd.f32 %v4936_v30, %v2134_v31  ;;  %v2005_v18 = vpop.permute.xlu0 %2004  ;;  %5460 = vmatpush3.msra.mxu0 %v2361_v57  ;;  %v2360_v58 = vld [vmem:[%s7034_s14 + $0x48] sm:$0xff]  ;;  %v2358_v31 = vld [vmem:[%s7034_s14 + $0x38] sm:$0xff] }
0x124b   :  { %v2026_v7 = vsel %vm373_vm2, %v6282_v2, %v2005_v18  ;;  %5461 = vmatprep.subr.mxu0 %v2360_v58  ;;  %v2353_v18 = vld [vmem:[%s7034_s14 + $0x10] sm:$0xff] }
0x124c   :  { %v6393_v59 = vadd.f32 %v4936_v30, %v2133_v28  ;;  %v2153_v0 = vsel %vm183_vm1, %v6395_v60, 0.0  ;;  %5462 = vmatpush3.msra.mxu0 %v2360_v58  ;;  %v2359_v28 = vld [vmem:[%s7034_s14 + $0x40] sm:$0xff] }
0x124d   :  { %5463 = vmatprep.subr.mxu0 %v2359_v28 }
0x124e   :  { %v2150_v63 = vsel %vm183_vm1, %v6393_v59, 0.0  ;;  %v2013_v21 = vpop.permute.xlu0 %2012  ;;  %5464 = vmatpush3.msra.mxu0 %v2359_v28 }
0x124f   :  { %v2028_v9 = vsel %vm459_vm3, %v2026_v7, %v2013_v21  ;;  %5465 = vmatprep.subr.mxu0 %v2358_v31  ;;  %v2351_v21 = vld [vmem:[%s7034_s14] sm:$0xff] }
0x1250   :  { %5466 = vmatpush3.msra.mxu0 %v2358_v31 }
0x1261   :  { %2151 = vadd.xlane.f32.xlu0 %v2150_v63  ;;  %v2356_v63 = vld [vmem:[%s7034_s14 + $0x28] sm:$0xff] }
0x1264   :  { %2154 = vadd.xlane.f32.xlu1 %v2153_v0  ;;  %v2355_v0 = vld [vmem:[%s7034_s14 + $0x20] sm:$0xff] }
0x12b2   :  { %v2023_v8 = vpop.permute.xlu1 %2022 }
0x12b3   :  { %v2031_v11 = vsel %vm1197_vm4, %v2029_v36, %v2023_v8 }
0x12b4   :  { %v2021_v27 = vpop.permute.xlu0 %2020 }
0x12b5   :  { %v2030_v10 = vsel %vm1197_vm4, %v2028_v9, %v2021_v27 }
0x12b6   :  { %5432 = vmatprep.mubr.msk.f32.mxu0 %vm183_vm1, %v2030_v10 }
0x12b7   :  { %5433 = vmatmul.mubr.msk.f32.gmra.mxu0 %vm183_vm1, %v2031_v11 }
0x12ea   :  { %v2152_v12 = vpop.xlane.xlu0 %2151 }
0x12eb   :  { %v2162_v20 = vmul.f32 0.03125, %v2152_v12 }
0x12ed   :  { %v2166_v2 = vsub.f32 %v6393_v59, %v2162_v20  ;;  %v2155_v37 = vpop.xlane.xlu1 %2154 }
0x12ee   :  { %v2163_v34 = vmul.f32 0.03125, %v2155_v37 }
0x12ef   :  { %v2170_v1 = vmul.f32 %v2166_v2, %v2166_v2 }
0x12f0   :  { %v2167_v4 = vsub.f32 %v6395_v60, %v2163_v34 }
0x12f1   :  { %v2174_v13 = vsel %vm183_vm1, %v2170_v1, 0.0 }
0x12f2   :  { %2175 = vadd.xlane.f32.xlu0 %v2174_v13  ;;  %v2171_v3 = vmul.f32 %v2167_v4, %v2167_v4 }
0x12f4   :  { %v2177_v14 = vsel %vm183_vm1, %v2171_v3, 0.0 }
0x12f6   :  { %2178 = vadd.xlane.f32.xlu0 %v2177_v14 }
0x1377   :  { %v5434_v16 = vpop.f32.mrf.mxu0 }
0x1378   :  { %v2136_v17 = vadd.f32 %v5434_v16, %v6059_v23 }
0x1379   :  { %v2124_v19 = vpop.f32.mrf.mxu0 }
0x137a   :  { %v6428_v22 = vadd.f32 %v4936_v30, %v2136_v17  ;;  %v2135_v26 = vadd.f32 %v2124_v19, %v6061_v25  ;;  %v6440_v25 = vld [vmem:[%s7030_s10] ss:$0 sm:$0xff] }
0x137b   :  { %v2176_v39 = vpop.xlane.xlu0 %2175 }
0x137c   :  { %v6431_v40 = vadd.f32 %v4936_v30, %v2135_v26  ;;  %v2186_v41 = vmul.f32 0.03125, %v2176_v39  ;;  %v2159_v62 = vsel %vm183_vm1, %v6428_v22, 0.0  ;;  %v2357_v30 = vld [vmem:[%s7034_s14 + $0x30] sm:$0xff] }
0x137d   :  { %2160 = vadd.xlane.f32.xlu1 %v2159_v62  ;;  %5467 = vmatprep.subr.mxu0 %v2357_v30 }
0x137e   :  { %v2190_v42 = vadd.f32 1e-06, %v2186_v41  ;;  %v2156_v43 = vsel %vm183_vm1, %v6431_v40, 0.0  ;;  %5468 = vmatpush3.msra.mxu0 %v2357_v30 }
0x137f   :  { %2157 = vadd.xlane.f32.xlu0 %v2156_v43  ;;  %v2179_v44 = vpop.xlane.xlu0 %2178  ;;  %5469 = vmatprep.subr.mxu0 %v2356_v63 }
0x1380   :  { %5766 = vrsqrt.f32 %v2190_v42  ;;  %v2187_v23 = vmul.f32 0.03125, %v2179_v44  ;;  %5470 = vmatpush3.msra.mxu0 %v2356_v63 }
0x1381   :  { %5471 = vmatprep.subr.mxu0 %v2355_v0 }
0x1382   :  { %v2191_v45 = vadd.f32 1e-06, %v2187_v23  ;;  %5472 = vmatpush3.msra.mxu0 %v2355_v0 }
0x1383   :  { %5473 = vmatprep.subr.mxu0 %v2354_v5 }
0x1384   :  { %5768 = vrsqrt.f32 %v2191_v45  ;;  %5474 = vmatpush3.msra.mxu0 %v2354_v5 }
0x1385   :  { %5475 = vmatprep.subr.mxu0 %v2353_v18 }
0x1386   :  { %5476 = vmatpush3.msra.mxu0 %v2353_v18 }
0x1387   :  { %5477 = vmatprep.subr.mxu0 %v2352_v6 }
0x1388   :  { %5478 = vmatpush3.msra.mxu0 %v2352_v6 }
0x1389   :  { %5479 = vmatprep.subr.mxu0 %v2351_v21 }
0x138a   :  { %5480 = vmatpush3.msra.mxu0 %v2351_v21 }
0x138d   :  { %v5767_v38 = vpop.eup %5766 }
0x138e   :  { %v2198_v47 = vmul.f32 %v5767_v38, %v2166_v2  ;;  %v4939_v2 = vld [vmem:[%s7033_s13] ss:$0 sm:$0xff] }
0x1390   :  { %v2208_v46 = vmul.f32 %v6440_v25, %v2198_v47 }
0x1391   :  { %v5769_v32 = vpop.eup %5768 }
0x1392   :  { %v2218_v29 = vadd.f32 %v6445_v48, %v2208_v46  ;;  %v2199_v51 = vmul.f32 %v5769_v32, %v2167_v4 }
0x1394   :  { %5443 = vmatprep.mubr.msk.f32.mxu1 %vm183_vm1, %v2218_v29  ;;  %v2209_v53 = vmul.f32 %v6440_v25, %v2199_v51  ;;  %v4944_v29 = vld [vmem:[%s7035_s15] ss:$0 sm:$0xff] }
0x1396   :  { %v2219_v54 = vadd.f32 %v6445_v48, %v2209_v53 }
0x1398   :  { %5444 = vmatmul.mubr.msk.f32.vlgmr.msra.gmra.mxu1 %vm183_vm1, %v2219_v54 }
0x1406   :  { %v2161_v7 = vpop.xlane.xlu1 %2160 }
0x1407   :  { %v2165_v8 = vmul.f32 0.03125, %v2161_v7 }
0x1408   :  { %v2158_v24 = vpop.xlane.xlu0 %2157 }
0x1409   :  { %v2169_v9 = vsub.f32 %v6428_v22, %v2165_v8  ;;  %v2164_v27 = vmul.f32 0.03125, %v2158_v24 }
0x140b   :  { %v2168_v36 = vsub.f32 %v6431_v40, %v2164_v27  ;;  %v2173_v10 = vmul.f32 %v2169_v9, %v2169_v9 }
0x140d   :  { %v2183_v11 = vsel %vm183_vm1, %v2173_v10, 0.0  ;;  %v2172_v12 = vmul.f32 %v2168_v36, %v2168_v36 }
0x140e   :  { %2184 = vadd.xlane.f32.xlu1 %v2183_v11 }
0x140f   :  { %v2180_v20 = vsel %vm183_vm1, %v2172_v12, 0.0 }
0x1410   :  { %2181 = vadd.xlane.f32.xlu0 %v2180_v20 }
0x1458   :  { %v5445_v37 = vpop.f32.mrf.mxu1 }
0x1459   :  { %v2317_v34 = vadd.f32 %v5445_v37, %v4939_v2  ;;  %v4951_v37 = vld [vmem:[%s7026_s6 + $0x30] sm:$0xff] }
0x145a   :  { %v2311_v1 = vpop.f32.mrf.mxu1 }
0x145b   :  { %v2336_v4 = vmul.f32 0.70710677, %v2317_v34  ;;  %v2312_v13 = vadd.f32 %v4939_v2, %v2311_v1  ;;  %v2331_v16 = vmul.f32 0.5, %v2317_v34  ;;  %v4950_v34 = vld [vmem:[%s7026_s6 + $0x28] sm:$0xff]  ;;  %v4949_v1 = vld [vmem:[%s7026_s6 + $0x20] sm:$0xff] }
0x145d   :  { %5770 = verf.f32 %v2336_v4  ;;  %v2335_v3 = vmul.f32 0.70710677, %v2312_v13  ;;  %v2330_v61 = vmul.f32 0.5, %v2312_v13 }
0x145f   :  { %5772 = verf.f32 %v2335_v3 }
0x146a   :  { %v5771_v14 = vpop.eup %5770 }
0x146b   :  { %v2344_v15 = vadd.f32 1.0, %v5771_v14 }
0x146c   :  { %v5773_v33 = vpop.eup %5772 }
0x146d   :  { %v2343_v35 = vadd.f32 1.0, %v5773_v33  ;;  %v2348_v19 = vmul.f32 %v2344_v15, %v2331_v16 }
0x146f   :  { %v2347_v17 = vmul.f32 %v2343_v35, %v2330_v61 }
0x1471   :  { %5481 = vmatprep.mubr.f32.mxu0 %v2347_v17 }
0x1472   :  { %5482 = vmatmul.mubr.f32.vlgmr.msra.gmra.mxu0 %v2348_v19 }
0x1497   :  { %v2185_v26 = vpop.xlane.xlu1 %2184 }
0x1498   :  { %v2189_v39 = vmul.f32 0.03125, %v2185_v26 }
0x1499   :  { %v2182_v41 = vpop.xlane.xlu0 %2181 }
0x149a   :  { %v2193_v62 = vadd.f32 1e-06, %v2189_v39  ;;  %v2188_v42 = vmul.f32 0.03125, %v2182_v41 }
0x149c   :  { %5774 = vrsqrt.f32 %v2193_v62  ;;  %v2192_v43 = vadd.f32 1e-06, %v2188_v42  ;;  %v4947_v62 = vld [vmem:[%s7024_s4 + $0x1] ss:$0 sm:$0xff] }
0x149e   :  { %5776 = vrsqrt.f32 %v2192_v43 }
0x14a9   :  { %v5775_v44 = vpop.eup %5774 }
0x14aa   :  { %v2201_v23 = vmul.f32 %v5775_v44, %v2169_v9 }
0x14ab   :  { %v5777_v45 = vpop.eup %5776 }
0x14ac   :  { %v2200_v38 = vmul.f32 %v5777_v45, %v2168_v36  ;;  %v2211_v47 = vmul.f32 %v6440_v25, %v2201_v23  ;;  %v4948_v23 = vld [vmem:[%s7025_s5 + $0x1] ss:$0 sm:$0xff] }
0x14ae   :  { %v2210_v46 = vmul.f32 %v6440_v25, %v2200_v38  ;;  %v2221_v50 = vadd.f32 %v6445_v48, %v2211_v47 }
0x14b0   :  { %v2220_v49 = vadd.f32 %v6445_v48, %v2210_v46 }
0x14b2   :  { %5446 = vmatprep.mubr.msk.f32.mxu1 %vm183_vm1, %v2220_v49 }
0x14b3   :  { %5447 = vmatmul.mubr.msk.f32.gmra.mxu1 %vm183_vm1, %v2221_v50 }
0x1532   :  { %v5483_v32 = vpop.f32.mrf.mxu0 }
0x1533   :  { %v2453_v51 = vadd.f32 %v5483_v32, %v6395_v60 }
0x1534   :  { %v2433_v52 = vpop.f32.mrf.mxu0 }
0x1535   :  { %v6518_v53 = vadd.f32 %v4944_v29, %v2453_v51  ;;  %v2452_v25 = vadd.f32 %v2433_v52, %v6393_v59 }
0x1537   :  { %v6521_v54 = vadd.f32 %v4944_v29, %v2452_v25  ;;  %v2474_v48 = vsel %vm183_vm1, %v6518_v53, 0.0 }
0x1538   :  { %2475 = vadd.xlane.f32.xlu1 %v2474_v48 }
0x1539   :  { %v2471_v55 = vsel %vm183_vm1, %v6521_v54, 0.0 }
0x153a   :  { %2472 = vadd.xlane.f32.xlu0 %v2471_v55 }
0x1573   :  { %v5448_v56 = vpop.f32.mrf.mxu1 }
0x1574   :  { %v2327_v57 = vadd.f32 %v5448_v56, %v4939_v2  ;;  %v6568_v56 = vld [vmem:[%s7027_s7 + $0x1] ss:$0 sm:$0xff]  ;;  %s7059_s7 = smov 72  }
0x1575   :  { %v2321_v58 = vpop.f32.mrf.mxu1 }
0x1576   :  { %v2338_v28 = vmul.f32 0.70710677, %v2327_v57  ;;  %v2322_v60 = vadd.f32 %v4939_v2, %v2321_v58  ;;  %v2333_v18 = vmul.f32 0.5, %v2327_v57  ;;  %v4952_v2 = vld [vmem:[%s7026_s6 + $0x38] sm:$0xff] }
0x1577   :  { %5487 = vmatprep.subr.mxu1 %v4952_v2 }
0x1578   :  { %5778 = verf.f32 %v2338_v28  ;;  %v2337_v31 = vmul.f32 0.70710677, %v2322_v60  ;;  %v2332_v0 = vmul.f32 0.5, %v2322_v60  ;;  %5488 = vmatpush3.msra.mxu1 %v4952_v2 }
0x1579   :  { %5489 = vmatprep.subr.mxu1 %v4951_v37 }
0x157a   :  { %5780 = verf.f32 %v2337_v31  ;;  %5490 = vmatpush3.msra.mxu1 %v4951_v37 }
0x157b   :  { %5491 = vmatprep.subr.mxu1 %v4950_v34 }
0x157c   :  { %5492 = vmatpush3.msra.mxu1 %v4950_v34 }
0x157d   :  { %5493 = vmatprep.subr.mxu1 %v4949_v1 }
0x157e   :  { %5494 = vmatpush3.msra.mxu1 %v4949_v1 }
0x1585   :  { %v5779_v30 = vpop.eup %5778 }
0x1586   :  { %v2346_v63 = vadd.f32 1.0, %v5779_v30 }
0x1587   :  { %v5781_v59 = vpop.eup %5780 }
0x1588   :  { %v2345_v5 = vadd.f32 1.0, %v5781_v59  ;;  %v2350_v21 = vmul.f32 %v2346_v63, %v2333_v18 }
0x158a   :  { %v2349_v6 = vmul.f32 %v2345_v5, %v2332_v0 }
0x158c   :  { %5484 = vmatprep.mubr.f32.mxu0 %v2349_v6 }
0x158d   :  { %5485 = vmatmul.mubr.f32.gmra.mxu0 %v2350_v21 }
0x15c1   :  { %v2476_v7 = vpop.xlane.xlu1 %2475 }
0x15c2   :  { %v2484_v8 = vmul.f32 0.03125, %v2476_v7 }
0x15c3   :  { %v2473_v24 = vpop.xlane.xlu0 %2472 }
0x15c4   :  { %v2488_v9 = vsub.f32 %v6518_v53, %v2484_v8  ;;  %v2483_v27 = vmul.f32 0.03125, %v2473_v24 }
0x15c6   :  { %v2487_v36 = vsub.f32 %v6521_v54, %v2483_v27  ;;  %v2492_v10 = vmul.f32 %v2488_v9, %v2488_v9 }
0x15c8   :  { %v2498_v11 = vsel %vm183_vm1, %v2492_v10, 0.0  ;;  %v2491_v12 = vmul.f32 %v2487_v36, %v2487_v36 }
0x15c9   :  { %2499 = vadd.xlane.f32.xlu1 %v2498_v11 }
0x15ca   :  { %v2495_v20 = vsel %vm183_vm1, %v2491_v12, 0.0 }
0x15cb   :  { %2496 = vadd.xlane.f32.xlu0 %v2495_v20 }
0x164d   :  { %v5486_v4 = vpop.f32.mrf.mxu0 }
0x164e   :  { %v2455_v13 = vadd.f32 %v5486_v4, %v6428_v22 }
0x164f   :  { %v2443_v3 = vpop.f32.mrf.mxu0 }
0x1650   :  { %v6544_v14 = vadd.f32 %v4944_v29, %v2455_v13  ;;  %v2454_v33 = vadd.f32 %v2443_v3, %v6431_v40 }
0x1652   :  { %v6547_v15 = vadd.f32 %v4944_v29, %v2454_v33  ;;  %v2500_v61 = vpop.xlane.xlu1 %2499  ;;  %v2480_v35 = vsel %vm183_vm1, %v6544_v14, 0.0 }
0x1653   :  { %v2508_v16 = vmul.f32 0.03125, %v2500_v61  ;;  %2481 = vadd.xlane.f32.xlu1 %v2480_v35 }
0x1654   :  { %v2497_v17 = vpop.xlane.xlu0 %2496  ;;  %v2477_v19 = vsel %vm183_vm1, %v6547_v15, 0.0 }
0x1655   :  { %v2512_v26 = vadd.f32 1e-06, %v2508_v16  ;;  %v2507_v39 = vmul.f32 0.03125, %v2497_v17  ;;  %2478 = vadd.xlane.f32.xlu0 %v2477_v19 }
0x1657   :  { %5782 = vrsqrt.f32 %v2512_v26  ;;  %v2511_v22 = vadd.f32 1e-06, %v2507_v39 }
0x1659   :  { %5784 = vrsqrt.f32 %v2511_v22 }
0x1664   :  { %v5783_v41 = vpop.eup %5782 }
0x1665   :  { %v2520_v40 = vmul.f32 %v5783_v41, %v2488_v9 }
0x1666   :  { %v5785_v42 = vpop.eup %5784 }
0x1667   :  { %v2519_v43 = vmul.f32 %v5785_v42, %v2487_v36  ;;  %v2530_v44 = vmul.f32 %v4947_v62, %v2520_v40 }
0x1669   :  { %v2529_v45 = vmul.f32 %v4947_v62, %v2519_v43  ;;  %v2540_v47 = vadd.f32 %v4948_v23, %v2530_v44 }
0x166b   :  { %v2539_v38 = vadd.f32 %v4948_v23, %v2529_v45 }
0x166d   :  { %5495 = vmatprep.mubr.msk.f32.mxu1 %vm183_vm1, %v2539_v38 }
0x166e   :  { %5496 = vmatmul.mubr.msk.f32.vlgmr.msra.gmra.mxu1 %vm183_vm1, %v2540_v47 }
0x16dc   :  { %v2482_v46 = vpop.xlane.xlu1 %2481 }
0x16dd   :  { %v2486_v49 = vmul.f32 0.03125, %v2482_v46 }
0x16de   :  { %v2479_v50 = vpop.xlane.xlu0 %2478 }
0x16df   :  { %v2490_v32 = vsub.f32 %v6544_v14, %v2486_v49  ;;  %v2485_v29 = vmul.f32 0.03125, %v2479_v50 }
0x16e1   :  { %v2489_v51 = vsub.f32 %v6547_v15, %v2485_v29  ;;  %v2494_v52 = vmul.f32 %v2490_v32, %v2490_v32 }
0x16e3   :  { %v2504_v25 = vsel %vm183_vm1, %v2494_v52, 0.0  ;;  %v2493_v48 = vmul.f32 %v2489_v51, %v2489_v51 }
0x16e4   :  { %2505 = vadd.xlane.f32.xlu1 %v2504_v25 }
0x16e5   :  { %v2501_v55 = vsel %vm183_vm1, %v2493_v48, 0.0 }
0x16e6   :  { %2502 = vadd.xlane.f32.xlu0 %v2501_v55 }
0x172e   :  { %v5497_v57 = vpop.f32.mrf.mxu1 }
0x172f   :  { %v6571_v58 = vadd.f32 %v5497_v57, %v6568_v56 }
0x1730   :  { %v2634_v28 = vpop.f32.mrf.mxu1 }
0x1731   :  { %v6574_v60 = vadd.f32 %v6568_v56, %v2634_v28  ;;  %2659 = vrot.lane.b32.xlu0 %v6571_v58, %s5900_s25  ;;  %v6592_v12 = vmul.f32 0.35355338, %v6571_v58 }
0x1733   :  { %2657 = vrot.lane.b32.xlu1 %v6574_v60, %s5900_s25  ;;  %v6582_v36 = vmul.f32 0.35355338, %v6574_v60 }
0x176d   :  { %v2506_v31 = vpop.xlane.xlu1 %2505 }
0x176e   :  { %v2510_v30 = vmul.f32 0.03125, %v2506_v31 }
0x176f   :  { %v2503_v59 = vpop.xlane.xlu0 %2502 }
0x1770   :  { %v2514_v63 = vadd.f32 1e-06, %v2510_v30  ;;  %v2509_v0 = vmul.f32 0.03125, %v2503_v59 }
0x1772   :  { %5786 = vrsqrt.f32 %v2514_v63  ;;  %v2513_v5 = vadd.f32 1e-06, %v2509_v0 }
0x1774   :  { %5788 = vrsqrt.f32 %v2513_v5 }
0x177f   :  { %v5787_v18 = vpop.eup %5786 }
0x1780   :  { %v2522_v6 = vmul.f32 %v5787_v18, %v2490_v32 }
0x1781   :  { %v5789_v21 = vpop.eup %5788 }
0x1782   :  { %v2521_v7 = vmul.f32 %v5789_v21, %v2489_v51  ;;  %v2532_v8 = vmul.f32 %v4947_v62, %v2522_v6 }
0x1784   :  { %v2531_v24 = vmul.f32 %v4947_v62, %v2521_v7  ;;  %v2542_v27 = vadd.f32 %v4948_v23, %v2532_v8 }
0x1786   :  { %v2541_v9 = vadd.f32 %v4948_v23, %v2531_v24 }
0x1788   :  { %5498 = vmatprep.mubr.msk.f32.mxu1 %vm183_vm1, %v2541_v9 }
0x1789   :  { %5499 = vmatmul.mubr.msk.f32.gmra.mxu1 %vm183_vm1, %v2542_v27 }
0x178a   :  { %5505 = vmatprep.mubr.msk.f32.mxu1 %vm373_vm2, %v6582_v36 }
0x17a3   :  { %v2660_v10 = vpop.permute.xlu0 %2659 }
0x17a4   :  { %5501 = vmatprep.subr.msk.mxu1 %vm373_vm2, %v2660_v10 }
0x17a5   :  { %v2658_v11 = vpop.permute.xlu1 %2657  ;;  %5502 = vmatpush3.xpose.msk.msra.mxu1 %vm373_vm2, %v2660_v10 }
0x17a6   :  { %5503 = vmatprep.subr.msk.mxu1 %vm373_vm2, %v2658_v11 }
0x17a9   :  { %5504 = vmatpush3.xpose.msk.msra.mxu1 %vm373_vm2, %v2658_v11 }
0x17ac   :  { %5506 = vmatmul.mubr.msk.f32.vlgmr.msra.gmra.mxu1 %vm373_vm2, %v6592_v12 }
0x1849   :  { %v6596_v20 = vpop.f32.mrf.mxu1 }
0x184b   :  { %v6598_v2 = vpop.f32.mrf.mxu1 }
0x186c   :  { %v5507_v37 = vpop.f32.mrf.mxu1 }
0x186d   :  { %v2749_v34 = vsel %vm459_vm3, %v5507_v37, -inf }
0x186e   :  { %2750 = vmax.xlane.f32.xlu0 %v2749_v34  ;;  %v2737_v1 = vpop.f32.mrf.mxu1 }
0x186f   :  { %v2746_v4 = vsel %vm459_vm3, %v2737_v1, -inf }
0x1870   :  { %2747 = vmax.xlane.f32.xlu1 %v2746_v4 }
0x1881   :  { %2768 = vrot.lane.b32.xlu1 %v6574_v60, %s5903_s22 }
0x1884   :  { %2770 = vrot.lane.b32.xlu0 %v6571_v58, %s5903_s22 }
0x1885   :  { %2861 = vrot.lane.b32.xlu1 %v6571_v58, %s5902_s3 }
0x1889   :  { %2859 = vrot.lane.b32.xlu1 %v6574_v60, %s5902_s3 }
0x18f7   :  { %v2751_v13 = vpop.xlane.xlu0 %2750 }
0x18f8   :  { %v2753_v3 = vsub.f32 %v5507_v37, %v2751_v13 }
0x18f9   :  { %v2748_v33 = vpop.xlane.xlu1 %2747 }
0x18fa   :  { %v2756_v61 = vmul.f32 1.442695, %v2753_v3  ;;  %v2752_v35 = vsub.f32 %v2737_v1, %v2748_v33 }
0x18fb   :  { %v2771_v16 = vpop.permute.xlu0 %2770 }
0x18fc   :  { %5790 = vpow2.f32 %v2756_v61  ;;  %v2754_v17 = vmul.f32 1.442695, %v2752_v35  ;;  %5508 = vmatprep.subr.mxu1 %v2771_v16 }
0x18fd   :  { %5509 = vmatpush3.msra.mxu1 %v2771_v16  ;;  %v2769_v19 = vpop.permute.xlu1 %2768 }
0x18fe   :  { %5792 = vpow2.f32 %v2754_v17  ;;  %5510 = vmatprep.subr.mxu1 %v2769_v19 }
0x18ff   :  { %5511 = vmatpush3.msra.mxu1 %v2769_v19 }
0x1901   :  { %v2862_v26 = vpop.permute.xlu1 %2861 }
0x1902   :  { %5515 = vmatprep.subr.msk.mxu1 %vm373_vm2, %v2862_v26 }
0x1905   :  { %v2860_v62 = vpop.permute.xlu1 %2859 }
0x1909   :  { %v5791_v39 = vpop.eup %5790 }
0x190a   :  { %v2761_v22 = vsel %vm459_vm3, %v5791_v39, 0.0 }
0x190b   :  { %v5793_v41 = vpop.eup %5792  ;;  %2762 = vadd.xlane.f32.xlu1 %v2761_v22 }
0x190c   :  { %v2758_v40 = vsel %vm459_vm3, %v5793_v41, 0.0 }
0x190d   :  { %2759 = vadd.xlane.f32.xlu0 %v2758_v40 }
0x191c   :  { %2855 = vrot.lane.b32.xlu1 %v6582_v36, %s5901_s26 }
0x1920   :  { %3059 = vrot.lane.b32.xlu1 %v6574_v60, %s5905_s28 }
0x1923   :  { %3061 = vrot.lane.b32.xlu0 %v6571_v58, %s5905_s28 }
0x1924   :  { %3057 = vrot.lane.b32.xlu1 %v6592_v12, %s5906_s30 }
0x1927   :  { %2857 = vrot.lane.b32.xlu0 %v6592_v12, %s5901_s26 }
0x192b   :  { %3055 = vrot.lane.b32.xlu0 %v6582_v36, %s5906_s30 }
0x1994   :  { %v2763_v42 = vpop.xlane.xlu1 %2762 }
0x1995   :  { %5794 = vrcp.f32 %v2763_v42 }
0x1996   :  { %v2760_v43 = vpop.xlane.xlu0 %2759 }
0x1997   :  { %5796 = vrcp.f32 %v2760_v43 }
0x1998   :  { %v2856_v44 = vpop.permute.xlu1 %2855 }
0x199a   :  { %v3062_v23 = vpop.permute.xlu0 %3061 }
0x199b   :  { %5529 = vmatprep.subr.msk.mxu0 %vm373_vm2, %v3062_v23 }
0x199c   :  { %5530 = vmatpush3.xpose.msk.msra.mxu0 %vm373_vm2, %v3062_v23  ;;  %v3060_v45 = vpop.permute.xlu1 %3059 }
0x199d   :  { %5531 = vmatprep.subr.msk.mxu0 %vm373_vm2, %v3060_v45 }
0x199e   :  { %v2858_v38 = vpop.permute.xlu0 %2857 }
0x19a0   :  { %5532 = vmatpush3.xpose.msk.msra.mxu0 %vm373_vm2, %v3060_v45  ;;  %v3058_v49 = vpop.permute.xlu1 %3057 }
0x19a2   :  { %v3056_v47 = vpop.permute.xlu0 %3055  ;;  %v5795_v46 = vpop.eup %5794 }
0x19a3   :  { %5533 = vmatprep.mubr.msk.f32.mxu0 %vm373_vm2, %v3056_v47  ;;  %v2767_v29 = vmul.f32 %v5795_v46, %v5791_v39 }
0x19a4   :  { %v5797_v50 = vpop.eup %5796  ;;  %5534 = vmatmul.mubr.msk.f32.vlgmr.msra.gmra.mxu0 %vm373_vm2, %v3058_v49 }
0x19a5   :  { %v2766_v32 = vmul.f32 %v5797_v50, %v5793_v41 }
0x19a7   :  { %5512 = vmatprep.mubr.msk.f32.mxu1 %vm459_vm3, %v2766_v32 }
0x19a8   :  { %5513 = vmatmul.mubr.msk.f32.vlgmr.msra.gmra.mxu1 %vm459_vm3, %v2767_v29 }
0x19a9   :  { %5516 = vmatpush3.xpose.msk.msra.mxu1 %vm373_vm2, %v2862_v26  ;;  %5519 = vmatprep.mubr.msk.f32.mxu1 %vm373_vm2, %v2856_v44 }
0x19aa   :  { %5517 = vmatprep.subr.msk.mxu1 %vm373_vm2, %v2860_v62 }
0x19ad   :  { %5518 = vmatpush3.xpose.msk.msra.mxu1 %vm373_vm2, %v2860_v62 }
0x19b0   :  { %5520 = vmatmul.mubr.msk.f32.vlgmr.msra.gmra.mxu1 %vm373_vm2, %v2858_v38 }
0x1a64   :  { %v5535_v25 = vpop.f32.mrf.mxu0 }
0x1a65   :  { %v3149_v59 = vsel %vm459_vm3, %v5535_v25, -inf }
0x1a66   :  { %v3137_v31 = vpop.f32.mrf.mxu0 }
0x1a67   :  { %v3146_v30 = vsel %vm459_vm3, %v3137_v31, -inf }
0x1a68   :  { %v6638_v51 = vpop.f32.mrf.mxu1 }
0x1a6a   :  { %v6640_v52 = vpop.f32.mrf.mxu1 }
0x1a70   :  { %v5521_v48 = vpop.f32.mrf.mxu1 }
0x1a71   :  { %v2949_v55 = vsel %vm459_vm3, %v5521_v48, -inf }
0x1a72   :  { %2950 = vmax.xlane.f32.xlu1 %v2949_v55  ;;  %v2937_v57 = vpop.f32.mrf.mxu1 }
0x1a73   :  { %v2946_v28 = vsel %vm459_vm3, %v2937_v57, -inf }
0x1a74   :  { %2947 = vmax.xlane.f32.xlu0 %v2946_v28  ;;  %v6696_v28 = vadd.f32 %v6568_v56, %v6598_v2 }
0x1a78   :  { %3147 = vmax.xlane.f32.xlu0 %v3146_v30 }
0x1a7c   :  { %3150 = vmax.xlane.f32.xlu0 %v3149_v59 }
0x1afb   :  { %v2951_v5 = vpop.xlane.xlu1 %2950 }
0x1afc   :  { %v2953_v21 = vsub.f32 %v5521_v48, %v2951_v5 }
0x1afd   :  { %v2948_v63 = vpop.xlane.xlu0 %2947 }
0x1afe   :  { %v2952_v0 = vsub.f32 %v2937_v57, %v2948_v63  ;;  %v2956_v27 = vmul.f32 1.442695, %v2953_v21  ;;  %v6690_v57 = vadd.f32 %v6596_v20, %v6568_v56 }
0x1b00   :  { %v2954_v7 = vmul.f32 1.442695, %v2952_v0 }
0x1b01   :  { %v3148_v18 = vpop.xlane.xlu0 %3147 }
0x1b02   :  { %v3152_v6 = vsub.f32 %v3137_v31, %v3148_v18 }
0x1b04   :  { %v3154_v8 = vmul.f32 1.442695, %v3152_v6 }
0x1b05   :  { %v3151_v24 = vpop.xlane.xlu0 %3150 }
0x1b06   :  { %5798 = vpow2.f32 %v3154_v8  ;;  %v3153_v9 = vsub.f32 %v5535_v25, %v3151_v24 }
0x1b07   :  { %5800 = vpow2.f32 %v2954_v7 }
0x1b08   :  { %v3156_v10 = vmul.f32 1.442695, %v3153_v9 }
0x1b0a   :  { %5802 = vpow2.f32 %v3156_v10 }
0x1b0b   :  { %5804 = vpow2.f32 %v2956_v27 }
0x1b13   :  { %v5799_v11 = vpop.eup %5798 }
0x1b14   :  { %v3158_v37 = vsel %vm459_vm3, %v5799_v11, 0.0  ;;  %v5801_v34 = vpop.eup %5800 }
0x1b15   :  { %3159 = vadd.xlane.f32.xlu0 %v3158_v37  ;;  %v2958_v4 = vsel %vm459_vm3, %v5801_v34, 0.0  ;;  %v6716_v37 = vmul.f32 0.35355338, %v6690_v57 }
0x1b17   :  { %v5803_v1 = vpop.eup %5802 }
0x1b18   :  { %v3161_v13 = vsel %vm459_vm3, %v5803_v1, 0.0  ;;  %v5805_v3 = vpop.eup %5804 }
0x1b19   :  { %2959 = vadd.xlane.f32.xlu0 %v2958_v4  ;;  %3162 = vadd.xlane.f32.xlu1 %v3161_v13  ;;  %v2961_v33 = vsel %vm459_vm3, %v5805_v3, 0.0 }
0x1b1d   :  { %2962 = vadd.xlane.f32.xlu1 %v2961_v33 }
0x1b2e   :  { %2968 = vrot.lane.b32.xlu1 %v6574_v60, %s5904_s27 }
0x1b2f   :  { %2970 = vrot.lane.b32.xlu0 %v6571_v58, %s5904_s27 }
0x1b32   :  { %3170 = vrot.lane.b32.xlu1 %v6571_v58, %s5907_s0 }
0x1b33   :  { %3261 = vrot.lane.b32.xlu0 %v6571_v58, %s7059_s7 }
0x1b36   :  { %3168 = vrot.lane.b32.xlu1 %v6574_v60, %s5907_s0 }
0x1b37   :  { %3255 = vrot.lane.b32.xlu0 %v6582_v36, %s7060_s21 }
0x1b3a   :  { %3259 = vrot.lane.b32.xlu1 %v6574_v60, %s7059_s7 }
0x1b3e   :  { %3257 = vrot.lane.b32.xlu1 %v6592_v12, %s7060_s21 }
0x1b9e   :  { %v3160_v61 = vpop.xlane.xlu0 %3159 }
0x1ba2   :  { %v2960_v35 = vpop.xlane.xlu0 %2959  ;;  %v3163_v16 = vpop.xlane.xlu1 %3162 }
0x1ba3   :  { %5806 = vrcp.f32 %v2960_v35 }
0x1ba4   :  { %5808 = vrcp.f32 %v3160_v61 }
0x1ba6   :  { %v2971_v17 = vpop.permute.xlu0 %2970  ;;  %v2963_v19 = vpop.xlane.xlu1 %2962 }
0x1ba7   :  { %5810 = vrcp.f32 %v2963_v19  ;;  %5522 = vmatprep.subr.mxu1 %v2971_v17 }
0x1ba8   :  { %5523 = vmatpush3.msra.mxu1 %v2971_v17  ;;  %5812 = vrcp.f32 %v3163_v16 }
0x1baa   :  { %v2969_v26 = vpop.permute.xlu1 %2968  ;;  %v3262_v40 = vpop.permute.xlu0 %3261 }
0x1bab   :  { %5524 = vmatprep.subr.mxu1 %v2969_v26 }
0x1bac   :  { %5525 = vmatpush3.msra.mxu1 %v2969_v26 }
0x1bae   :  { %v3171_v36 = vpop.permute.xlu1 %3170  ;;  %v3256_v45 = vpop.permute.xlu0 %3255 }
0x1baf   :  { %5536 = vmatprep.subr.mxu1 %v3171_v36 }
0x1bb0   :  { %v5807_v39 = vpop.eup %5806 }
0x1bb1   :  { %v2966_v22 = vmul.f32 %v5807_v39, %v5801_v34  ;;  %v5809_v41 = vpop.eup %5808 }
0x1bb2   :  { %v3169_v43 = vpop.permute.xlu1 %3168  ;;  %v3166_v44 = vmul.f32 %v5809_v41, %v5799_v11 }
0x1bb3   :  { %5526 = vmatprep.mubr.msk.f32.mxu1 %vm459_vm3, %v2966_v22 }
0x1bb4   :  { %v5811_v12 = vpop.eup %5810 }
0x1bb5   :  { %v2967_v62 = vmul.f32 %v5811_v12, %v5805_v3  ;;  %v5813_v42 = vpop.eup %5812 }
0x1bb6   :  { %v3167_v23 = vmul.f32 %v5813_v42, %v5803_v1  ;;  %v3260_v38 = vpop.permute.xlu1 %3259 }
0x1bb7   :  { %5527 = vmatmul.mubr.msk.f32.vlgmr.msra.gmra.mxu1 %vm459_vm3, %v2967_v62 }
0x1bb8   :  { %5537 = vmatpush3.msra.mxu1 %v3171_v36  ;;  %5540 = vmatprep.mubr.msk.f32.mxu1 %vm459_vm3, %v3166_v44 }
0x1bb9   :  { %5538 = vmatprep.subr.mxu1 %v3169_v43 }
0x1bba   :  { %5539 = vmatpush3.msra.mxu1 %v3169_v43  ;;  %v3258_v47 = vpop.permute.xlu1 %3257 }
0x1bbb   :  { %5543 = vmatprep.subr.msk.mxu1 %vm373_vm2, %v3262_v40  ;;  %5541 = vmatmul.mubr.msk.f32.vlgmr.msra.gmra.mxu1 %vm459_vm3, %v3167_v23 }
0x1bbc   :  { %5544 = vmatpush3.xpose.msk.msra.mxu1 %vm373_vm2, %v3262_v40  ;;  %5547 = vmatprep.mubr.msk.f32.mxu1 %vm373_vm2, %v3256_v45 }
0x1bbd   :  { %5545 = vmatprep.subr.msk.mxu1 %vm373_vm2, %v3260_v38 }
0x1bc0   :  { %5546 = vmatpush3.xpose.msk.msra.mxu1 %vm373_vm2, %v3260_v38 }
0x1bc3   :  { %5548 = vmatmul.mubr.msk.f32.vlgmr.msra.gmra.mxu1 %vm373_vm2, %v3258_v47 }
0x1c77   :  { %v6676_v46 = vpop.f32.mrf.mxu1 }
0x1c79   :  { %v6678_v49 = vpop.f32.mrf.mxu1 }
0x1c7b   :  { %v6680_v50 = vpop.f32.mrf.mxu1 }
0x1c7d   :  { %v6682_v32 = vpop.f32.mrf.mxu1 }
0x1c83   :  { %v5549_v29 = vpop.f32.mrf.mxu1 }
0x1c84   :  { %v3349_v25 = vsel %vm459_vm3, %v5549_v29, -inf }
0x1c85   :  { %3350 = vmax.xlane.f32.xlu1 %v3349_v25  ;;  %v3337_v48 = vpop.f32.mrf.mxu1 }
0x1c86   :  { %v3346_v55 = vsel %vm459_vm3, %v3337_v48, -inf }
0x1c87   :  { %3347 = vmax.xlane.f32.xlu0 %v3346_v55 }
0x1c96   :  { %3368 = vrot.lane.b32.xlu1 %v6574_v60, %s7061_s23 }
0x1c9a   :  { %3491 = vrot.lane.b32.xlu1 %v6690_v57, %s5900_s25 }
0x1c9e   :  { %3489 = vrot.lane.b32.xlu1 %v6696_v28, %s5900_s25  ;;  %s7062_s25 = smov 8  }
0x1d0e   :  { %v3351_v31 = vpop.xlane.xlu1 %3350 }
0x1d0f   :  { %v3353_v30 = vsub.f32 %v5549_v29, %v3351_v31 }
0x1d10   :  { %v3348_v59 = vpop.xlane.xlu0 %3347 }
0x1d11   :  { %v3356_v63 = vmul.f32 1.442695, %v3353_v30  ;;  %v3352_v0 = vsub.f32 %v3337_v48, %v3348_v59 }
0x1d12   :  { %v3369_v21 = vpop.permute.xlu1 %3368 }
0x1d13   :  { %5814 = vpow2.f32 %v3356_v63  ;;  %v3354_v60 = vmul.f32 1.442695, %v3352_v0 }
0x1d15   :  { %5816 = vpow2.f32 %v3354_v60 }
0x1d16   :  { %v3492_v8 = vpop.permute.xlu1 %3491 }
0x1d1a   :  { %v3490_v11 = vpop.permute.xlu1 %3489 }
0x1d20   :  { %v5815_v20 = vpop.eup %5814 }
0x1d21   :  { %v3361_v5 = vsel %vm459_vm3, %v5815_v20, 0.0 }
0x1d22   :  { %v5817_v18 = vpop.eup %5816  ;;  %3362 = vadd.xlane.f32.xlu0 %v3361_v5 }
0x1d23   :  { %v3358_v6 = vsel %vm459_vm3, %v5817_v18, 0.0 }
0x1d26   :  { %3359 = vadd.xlane.f32.xlu0 %v3358_v6 }
0x1d3c   :  { %3370 = vrot.lane.b32.xlu0 %v6571_v58, %s7061_s23  ;;  %v6707_v58 = vmul.f32 0.35355338, %v6696_v28 }
0x1dab   :  { %v3363_v56 = vpop.xlane.xlu0 %3362 }
0x1dac   :  { %5818 = vrcp.f32 %v3363_v56 }
0x1daf   :  { %v3360_v2 = vpop.xlane.xlu0 %3359 }
0x1db0   :  { %5820 = vrcp.f32 %v3360_v2 }
0x1db3   :  { %v3371_v7 = vpop.permute.xlu0 %3370 }
0x1db4   :  { %5550 = vmatprep.subr.mxu0 %v3371_v7 }
0x1db5   :  { %5551 = vmatpush3.msra.mxu0 %v3371_v7 }
0x1db6   :  { %5552 = vmatprep.subr.mxu0 %v3369_v21 }
0x1db7   :  { %5553 = vmatpush3.msra.mxu0 %v3369_v21 }
0x1db8   :  { %5557 = vmatprep.subr.msk.mxu0 %vm373_vm2, %v3492_v8 }
0x1db9   :  { %v5819_v24 = vpop.eup %5818 }
0x1dba   :  { %v3367_v10 = vmul.f32 %v5819_v24, %v5815_v20 }
0x1dbd   :  { %v5821_v9 = vpop.eup %5820 }
0x1dbe   :  { %v3366_v27 = vmul.f32 %v5821_v9, %v5817_v18 }
0x1dc0   :  { %5554 = vmatprep.mubr.msk.f32.mxu0 %vm459_vm3, %v3366_v27 }
0x1dc1   :  { %5555 = vmatmul.mubr.msk.f32.vlgmr.msra.gmra.mxu0 %vm459_vm3, %v3367_v10 }
0x1dc2   :  { %5558 = vmatpush3.xpose.msk.msra.mxu0 %vm373_vm2, %v3492_v8  ;;  %5561 = vmatprep.mubr.msk.f32.mxu0 %vm373_vm2, %v6707_v58 }
0x1dc3   :  { %5559 = vmatprep.subr.msk.mxu0 %vm373_vm2, %v3490_v11 }
0x1dc6   :  { %5560 = vmatpush3.xpose.msk.msra.mxu0 %vm373_vm2, %v3490_v11 }
0x1dc9   :  { %5562 = vmatmul.mubr.msk.f32.vlgmr.msra.gmra.mxu0 %vm373_vm2, %v6716_v37 }
0x1e81   :  { %v6720_v34 = vpop.f32.mrf.mxu0 }
0x1e83   :  { %v6722_v1 = vpop.f32.mrf.mxu0 }
0x1e89   :  { %v5563_v4 = vpop.f32.mrf.mxu0 }
0x1e8a   :  { %v3581_v13 = vsel %vm459_vm3, %v5563_v4, -inf }
0x1e8b   :  { %3582 = vmax.xlane.f32.xlu1 %v3581_v13  ;;  %v3569_v3 = vpop.f32.mrf.mxu0 }
0x1e8c   :  { %v3578_v33 = vsel %vm459_vm3, %v3569_v3, -inf }
0x1e8d   :  { %3579 = vmax.xlane.f32.xlu0 %v3578_v33 }
0x1e9c   :  { %3600 = vrot.lane.b32.xlu1 %v6696_v28, %s5903_s22 }
0x1ea0   :  { %3693 = vrot.lane.b32.xlu1 %v6690_v57, %s5902_s3 }
0x1ea4   :  { %3691 = vrot.lane.b32.xlu1 %v6696_v28, %s5902_s3  ;;  %s7064_s3 = smov 24  }
0x1ea8   :  { %3689 = vrot.lane.b32.xlu1 %v6716_v37, %s5901_s26 }
0x1f14   :  { %v3583_v61 = vpop.xlane.xlu1 %3582 }
0x1f15   :  { %v3585_v35 = vsub.f32 %v5563_v4, %v3583_v61 }
0x1f16   :  { %v3580_v16 = vpop.xlane.xlu0 %3579 }
0x1f17   :  { %v3588_v17 = vmul.f32 1.442695, %v3585_v35  ;;  %v3584_v19 = vsub.f32 %v3569_v3, %v3580_v16 }
0x1f18   :  { %v3601_v62 = vpop.permute.xlu1 %3600 }
0x1f19   :  { %5822 = vpow2.f32 %v3588_v17  ;;  %v3586_v26 = vmul.f32 1.442695, %v3584_v19 }
0x1f1b   :  { %5824 = vpow2.f32 %v3586_v26 }
0x1f1c   :  { %v3694_v43 = vpop.permute.xlu1 %3693 }
0x1f20   :  { %v3692_v29 = vpop.permute.xlu1 %3691 }
0x1f24   :  { %v3690_v25 = vpop.permute.xlu1 %3689 }
0x1f26   :  { %v5823_v36 = vpop.eup %5822 }
0x1f27   :  { %v3593_v39 = vsel %vm459_vm3, %v5823_v36, 0.0 }
0x1f28   :  { %v5825_v22 = vpop.eup %5824  ;;  %3594 = vadd.xlane.f32.xlu0 %v3593_v39 }
0x1f29   :  { %v3590_v41 = vsel %vm459_vm3, %v5825_v22, 0.0 }
0x1f2c   :  { %3591 = vadd.xlane.f32.xlu0 %v3590_v41 }
0x1f42   :  { %3602 = vrot.lane.b32.xlu0 %v6690_v57, %s5903_s22 }
0x1f46   :  { %3687 = vrot.lane.b32.xlu0 %v6707_v58, %s5901_s26  ;;  %s7063_s26 = smov 16  }
0x1fb1   :  { %v3595_v12 = vpop.xlane.xlu0 %3594 }
0x1fb2   :  { %5826 = vrcp.f32 %v3595_v12 }
0x1fb5   :  { %v3592_v40 = vpop.xlane.xlu0 %3591 }
0x1fb6   :  { %5828 = vrcp.f32 %v3592_v40 }
0x1fb9   :  { %v3603_v42 = vpop.permute.xlu0 %3602 }
0x1fba   :  { %5564 = vmatprep.subr.mxu1 %v3603_v42 }
0x1fbb   :  { %5565 = vmatpush3.msra.mxu1 %v3603_v42 }
0x1fbc   :  { %5566 = vmatprep.subr.mxu1 %v3601_v62 }
0x1fbd   :  { %5567 = vmatpush3.msra.mxu1 %v3601_v62  ;;  %v3688_v47 = vpop.permute.xlu0 %3687 }
0x1fbe   :  { %5571 = vmatprep.subr.msk.mxu1 %vm373_vm2, %v3694_v43 }
0x1fbf   :  { %v5827_v44 = vpop.eup %5826 }
0x1fc0   :  { %v3599_v38 = vmul.f32 %v5827_v44, %v5823_v36 }
0x1fc3   :  { %v5829_v23 = vpop.eup %5828 }
0x1fc4   :  { %v3598_v45 = vmul.f32 %v5829_v23, %v5825_v22 }
0x1fc6   :  { %5568 = vmatprep.mubr.msk.f32.mxu1 %vm459_vm3, %v3598_v45 }
0x1fc7   :  { %5569 = vmatmul.mubr.msk.f32.vlgmr.msra.gmra.mxu1 %vm459_vm3, %v3599_v38 }
0x1fc8   :  { %5572 = vmatpush3.xpose.msk.msra.mxu1 %vm373_vm2, %v3694_v43  ;;  %5575 = vmatprep.mubr.msk.f32.mxu1 %vm373_vm2, %v3688_v47 }
0x1fc9   :  { %5573 = vmatprep.subr.msk.mxu1 %vm373_vm2, %v3692_v29 }
0x1fcc   :  { %5574 = vmatpush3.xpose.msk.msra.mxu1 %vm373_vm2, %v3692_v29 }
0x1fcf   :  { %5576 = vmatmul.mubr.msk.f32.vlgmr.msra.gmra.mxu1 %vm373_vm2, %v3690_v25 }
0x2087   :  { %v6748_v48 = vpop.f32.mrf.mxu1 }
0x2089   :  { %v6750_v55 = vpop.f32.mrf.mxu1 }
0x208f   :  { %v5577_v31 = vpop.f32.mrf.mxu1 }
0x2090   :  { %v3781_v30 = vsel %vm459_vm3, %v5577_v31, -inf }
0x2091   :  { %3782 = vmax.xlane.f32.xlu1 %v3781_v30  ;;  %v3769_v59 = vpop.f32.mrf.mxu1 }
0x2092   :  { %v3778_v63 = vsel %vm459_vm3, %v3769_v59, -inf }
0x2093   :  { %3779 = vmax.xlane.f32.xlu0 %v3778_v63 }
0x20a2   :  { %3800 = vrot.lane.b32.xlu1 %v6696_v28, %s5904_s27 }
0x20a6   :  { %3893 = vrot.lane.b32.xlu1 %v6690_v57, %s5905_s28 }
0x20aa   :  { %3891 = vrot.lane.b32.xlu1 %v6696_v28, %s5905_s28 }
0x20ae   :  { %3889 = vrot.lane.b32.xlu1 %v6716_v37, %s5906_s30 }
0x211a   :  { %v3783_v0 = vpop.xlane.xlu1 %3782 }
0x211b   :  { %v3785_v60 = vsub.f32 %v5577_v31, %v3783_v0 }
0x211c   :  { %v3780_v20 = vpop.xlane.xlu0 %3779 }
0x211d   :  { %v3788_v5 = vmul.f32 1.442695, %v3785_v60  ;;  %v3784_v18 = vsub.f32 %v3769_v59, %v3780_v20 }
0x211e   :  { %v3801_v9 = vpop.permute.xlu1 %3800 }
0x211f   :  { %5830 = vpow2.f32 %v3788_v5  ;;  %v3786_v6 = vmul.f32 1.442695, %v3784_v18 }
0x2121   :  { %5832 = vpow2.f32 %v3786_v6 }
0x2122   :  { %v3894_v10 = vpop.permute.xlu1 %3893 }
0x2126   :  { %v3892_v61 = vpop.permute.xlu1 %3891 }
0x212a   :  { %v3890_v35 = vpop.permute.xlu1 %3889 }
0x212c   :  { %v5831_v56 = vpop.eup %5830 }
0x212d   :  { %v3793_v2 = vsel %vm459_vm3, %v5831_v56, 0.0 }
0x212e   :  { %v5833_v21 = vpop.eup %5832  ;;  %3794 = vadd.xlane.f32.xlu0 %v3793_v2 }
0x212f   :  { %v3790_v7 = vsel %vm459_vm3, %v5833_v21, 0.0 }
0x2132   :  { %3791 = vadd.xlane.f32.xlu0 %v3790_v7 }
0x2148   :  { %3802 = vrot.lane.b32.xlu0 %v6690_v57, %s5904_s27 }
0x214c   :  { %3887 = vrot.lane.b32.xlu0 %v6707_v58, %s5906_s30 }
0x21b7   :  { %v3795_v8 = vpop.xlane.xlu0 %3794 }
0x21b8   :  { %5834 = vrcp.f32 %v3795_v8 }
0x21bb   :  { %v3792_v24 = vpop.xlane.xlu0 %3791 }
0x21bc   :  { %5836 = vrcp.f32 %v3792_v24 }
0x21bf   :  { %v3803_v27 = vpop.permute.xlu0 %3802 }
0x21c0   :  { %5578 = vmatprep.subr.mxu0 %v3803_v27 }
0x21c1   :  { %5579 = vmatpush3.msra.mxu0 %v3803_v27 }
0x21c2   :  { %5580 = vmatprep.subr.mxu0 %v3801_v9 }
0x21c3   :  { %5581 = vmatpush3.msra.mxu0 %v3801_v9  ;;  %v3888_v33 = vpop.permute.xlu0 %3887 }
0x21c4   :  { %5585 = vmatprep.subr.msk.mxu0 %vm373_vm2, %v3894_v10 }
0x21c5   :  { %v5835_v11 = vpop.eup %5834 }
0x21c6   :  { %v3799_v3 = vmul.f32 %v5835_v11, %v5831_v56 }
0x21c9   :  { %v5837_v4 = vpop.eup %5836 }
0x21ca   :  { %v3798_v13 = vmul.f32 %v5837_v4, %v5833_v21 }
0x21cc   :  { %5582 = vmatprep.mubr.msk.f32.mxu0 %vm459_vm3, %v3798_v13 }
0x21cd   :  { %5583 = vmatmul.mubr.msk.f32.vlgmr.msra.gmra.mxu0 %vm459_vm3, %v3799_v3 }
0x21ce   :  { %5586 = vmatpush3.xpose.msk.msra.mxu0 %vm373_vm2, %v3894_v10  ;;  %5589 = vmatprep.mubr.msk.f32.mxu0 %vm373_vm2, %v3888_v33 }
0x21cf   :  { %5587 = vmatprep.subr.msk.mxu0 %vm373_vm2, %v3892_v61 }
0x21d2   :  { %5588 = vmatpush3.xpose.msk.msra.mxu0 %vm373_vm2, %v3892_v61 }
0x21d5   :  { %5590 = vmatmul.mubr.msk.f32.vlgmr.msra.gmra.mxu0 %vm373_vm2, %v3890_v35 }
0x228d   :  { %v6776_v16 = vpop.f32.mrf.mxu0 }
0x228f   :  { %v6778_v17 = vpop.f32.mrf.mxu0 }
0x2295   :  { %v5591_v19 = vpop.f32.mrf.mxu0 }
0x2296   :  { %v3981_v26 = vsel %vm459_vm3, %v5591_v19, -inf }
0x2297   :  { %3982 = vmax.xlane.f32.xlu1 %v3981_v26  ;;  %v3969_v36 = vpop.f32.mrf.mxu0 }
0x2298   :  { %v3978_v39 = vsel %vm459_vm3, %v3969_v36, -inf }
0x2299   :  { %3979 = vmax.xlane.f32.xlu0 %v3978_v39 }
0x22a8   :  { %4000 = vrot.lane.b32.xlu1 %v6696_v28, %s5907_s0 }
0x22ac   :  { %4093 = vrot.lane.b32.xlu1 %v6690_v57, %s7059_s7 }
0x22b0   :  { %4091 = vrot.lane.b32.xlu1 %v6696_v28, %s7059_s7 }
0x22b4   :  { %4089 = vrot.lane.b32.xlu1 %v6716_v37, %s7060_s21 }
0x2320   :  { %v3983_v22 = vpop.xlane.xlu1 %3982 }
0x2321   :  { %v3985_v41 = vsub.f32 %v5591_v19, %v3983_v22  ;;  %v5007_v22 = vld [vmem:[%s7028_s8 + $0x20] sm:$0xff] }
0x2322   :  { %v3980_v12 = vpop.xlane.xlu0 %3979 }
0x2323   :  { %v3988_v40 = vmul.f32 1.442695, %v3985_v41  ;;  %v3984_v62 = vsub.f32 %v3969_v36, %v3980_v12  ;;  %v5009_v36 = vld [vmem:[%s7028_s8 + $0x30] sm:$0xff] }
0x2324   :  { %v4001_v47 = vpop.permute.xlu1 %4000 }
0x2325   :  { %5838 = vpow2.f32 %v3988_v40  ;;  %v3986_v42 = vmul.f32 1.442695, %v3984_v62 }
0x2327   :  { %5840 = vpow2.f32 %v3986_v42 }
0x2328   :  { %v4094_v25 = vpop.permute.xlu1 %4093 }
0x232c   :  { %v4092_v0 = vpop.permute.xlu1 %4091 }
0x2330   :  { %v4090_v60 = vpop.permute.xlu1 %4089 }
0x2332   :  { %v5839_v43 = vpop.eup %5838 }
0x2333   :  { %v3993_v44 = vsel %vm459_vm3, %v5839_v43, 0.0 }
0x2334   :  { %v5841_v23 = vpop.eup %5840  ;;  %3994 = vadd.xlane.f32.xlu0 %v3993_v44 }
0x2335   :  { %v3990_v45 = vsel %vm459_vm3, %v5841_v23, 0.0 }
0x2338   :  { %3991 = vadd.xlane.f32.xlu0 %v3990_v45 }
0x234e   :  { %4002 = vrot.lane.b32.xlu0 %v6690_v57, %s5907_s0 }
0x2352   :  { %4087 = vrot.lane.b32.xlu0 %v6707_v58, %s7060_s21 }
0x23bd   :  { %v3995_v37 = vpop.xlane.xlu0 %3994 }
0x23be   :  { %5842 = vrcp.f32 %v3995_v37  ;;  %v5016_v37 = vld [vmem:[%s7029_s9 + $0x1] ss:$0 sm:$0xff] }
0x23c1   :  { %v3992_v38 = vpop.xlane.xlu0 %3991 }
0x23c2   :  { %5844 = vrcp.f32 %v3992_v38 }
0x23c5   :  { %v4003_v29 = vpop.permute.xlu0 %4002 }
0x23c6   :  { %5592 = vmatprep.subr.mxu1 %v4003_v29 }
0x23c7   :  { %5593 = vmatpush3.msra.mxu1 %v4003_v29 }
0x23c8   :  { %5594 = vmatprep.subr.mxu1 %v4001_v47 }
0x23c9   :  { %5595 = vmatpush3.msra.mxu1 %v4001_v47  ;;  %v4088_v58 = vpop.permute.xlu0 %4087 }
0x23ca   :  { %5599 = vmatprep.subr.msk.mxu1 %vm373_vm2, %v4094_v25 }
0x23cb   :  { %v5843_v31 = vpop.eup %5842 }
0x23cc   :  { %v3999_v63 = vmul.f32 %v5843_v31, %v5839_v43 }
0x23cf   :  { %v5845_v30 = vpop.eup %5844 }
0x23d0   :  { %v3998_v59 = vmul.f32 %v5845_v30, %v5841_v23 }
0x23d2   :  { %5596 = vmatprep.mubr.msk.f32.mxu1 %vm459_vm3, %v3998_v59 }
0x23d3   :  { %5597 = vmatmul.mubr.msk.f32.vlgmr.msra.gmra.mxu1 %vm459_vm3, %v3999_v63 }
0x23d4   :  { %5600 = vmatpush3.xpose.msk.msra.mxu1 %vm373_vm2, %v4094_v25  ;;  %5603 = vmatprep.mubr.msk.f32.mxu1 %vm373_vm2, %v4088_v58 }
0x23d5   :  { %5601 = vmatprep.subr.msk.mxu1 %vm373_vm2, %v4092_v0 }
0x23d8   :  { %5602 = vmatpush3.xpose.msk.msra.mxu1 %vm373_vm2, %v4092_v0 }
0x23db   :  { %5604 = vmatmul.mubr.msk.f32.vlgmr.msra.gmra.mxu1 %vm373_vm2, %v4090_v60 }
0x2493   :  { %v5598_v20 = vpop.f32.mrf.mxu1 }
0x2495   :  { %v4078_v5 = vpop.f32.mrf.mxu1 }
0x249b   :  { %v5605_v18 = vpop.f32.mrf.mxu1 }
0x249c   :  { %v4181_v6 = vsel %vm459_vm3, %v5605_v18, -inf }
0x249d   :  { %4182 = vmax.xlane.f32.xlu1 %v4181_v6  ;;  %v4169_v56 = vpop.f32.mrf.mxu1 }
0x249e   :  { %v4178_v2 = vsel %vm459_vm3, %v4169_v56, -inf }
0x249f   :  { %4179 = vmax.xlane.f32.xlu0 %v4178_v2 }
0x24ae   :  { %4200 = vrot.lane.b32.xlu1 %v6696_v28, %s7061_s23 }
0x24b2   :  { %3457 = vrot.lane.b32.xlu1 %v6678_v49, %s7062_s25 }
0x24b6   :  { %3459 = vrot.lane.b32.xlu1 %v6676_v46, %s7062_s25 }
0x24ba   :  { %3467 = vrot.lane.b32.xlu1 %v6680_v50, %s7063_s26 }
0x24be   :  { %3475 = vrot.lane.b32.xlu1 %v6720_v34, %s7064_s3 }
0x24c2   :  { %4291 = vrot.lane.b32.xlu1 %v6776_v16, %s7062_s25 }
0x24c6   :  { %4299 = vrot.lane.b32.xlu1 %v5598_v20, %s7063_s26 }
0x2526   :  { %v4183_v21 = vpop.xlane.xlu1 %4182 }
0x2527   :  { %v4185_v7 = vsub.f32 %v5605_v18, %v4183_v21 }
0x2528   :  { %v4180_v28 = vpop.xlane.xlu0 %4179 }
0x2529   :  { %v4188_v8 = vmul.f32 1.442695, %v4185_v7  ;;  %v4184_v24 = vsub.f32 %v4169_v56, %v4180_v28 }
0x252a   :  { %v4201_v10 = vpop.permute.xlu1 %4200 }
0x252b   :  { %5846 = vpow2.f32 %v4188_v8  ;;  %v4186_v49 = vmul.f32 1.442695, %v4184_v24 }
0x252d   :  { %5848 = vpow2.f32 %v4186_v49 }
0x252e   :  { %v3458_v4 = vpop.permute.xlu1 %3457 }
0x252f   :  { %v3479_v16 = vsel %vm373_vm2, %v6640_v52, %v3458_v4  ;;  %v5008_v52 = vld [vmem:[%s7028_s8 + $0x28] sm:$0xff] }
0x2530   :  { %v5022_v4 = vld [vmem:[%s7032_s12 + $0x28] sm:$0xff] }
0x2538   :  { %v5847_v46 = vpop.eup %5846 }
0x2539   :  { %v4193_v9 = vsel %vm459_vm3, %v5847_v46, 0.0 }
0x253a   :  { %v5849_v50 = vpop.eup %5848  ;;  %4194 = vadd.xlane.f32.xlu0 %v4193_v9 }
0x253b   :  { %v4190_v34 = vsel %vm459_vm3, %v5849_v50, 0.0 }
0x253e   :  { %4191 = vadd.xlane.f32.xlu0 %v4190_v34 }
0x2554   :  { %4202 = vrot.lane.b32.xlu0 %v6690_v57, %s7061_s23 }
0x2558   :  { %3465 = vrot.lane.b32.xlu0 %v6682_v32, %s7063_s26  ;;  %v5010_v32 = vld [vmem:[%s7028_s8 + $0x38] sm:$0xff] }
0x255c   :  { %3473 = vrot.lane.b32.xlu0 %v6722_v1, %s7064_s3  ;;  %v3460_v1 = vpop.permute.xlu1 %3459 }
0x255d   :  { %v3480_v12 = vsel %vm373_vm2, %v6638_v51, %v3460_v1 }
0x2560   :  { %4289 = vrot.lane.b32.xlu0 %v6778_v17, %s7062_s25  ;;  %v3468_v17 = vpop.permute.xlu1 %3467 }
0x2561   :  { %v3482_v40 = vsel %vm459_vm3, %v3480_v12, %v3468_v17 }
0x2564   :  { %4297 = vrot.lane.b32.xlu0 %v4078_v5, %s7063_s26  ;;  %v3476_v41 = vpop.permute.xlu1 %3475 }
0x2565   :  { %v3484_v62 = vsel %vm1197_vm4, %v3482_v40, %v3476_v41 }
0x2568   :  { %v4292_v31 = vpop.permute.xlu1 %4291 }
0x2569   :  { %v4312_v58 = vsel %vm373_vm2, %v6748_v48, %v4292_v31  ;;  %v5044_v31 = vld [vmem:[%s7034_s14 + $0xe8] sm:$0xff] }
0x256c   :  { %v4300_v30 = vpop.permute.xlu1 %4299 }
0x256d   :  { %v4314_v20 = vsel %vm459_vm3, %v4312_v58, %v4300_v30  ;;  %v5042_v30 = vld [vmem:[%s7034_s14 + $0xd8] sm:$0xff] }
0x256e   :  { %v5038_v58 = vld [vmem:[%s7034_s14 + $0xb8] sm:$0xff] }
0x25c3   :  { %v4195_v27 = vpop.xlane.xlu0 %4194 }
0x25c4   :  { %5850 = vrcp.f32 %v4195_v27 }
0x25c7   :  { %v4192_v11 = vpop.xlane.xlu0 %4191 }
0x25c8   :  { %5852 = vrcp.f32 %v4192_v11 }
0x25cb   :  { %v4203_v13 = vpop.permute.xlu0 %4202 }
0x25cc   :  { %5606 = vmatprep.subr.mxu0 %v4203_v13 }
0x25cd   :  { %5607 = vmatpush3.msra.mxu0 %v4203_v13  ;;  %v5021_v13 = vld [vmem:[%s7032_s12 + $0x20] sm:$0xff] }
0x25ce   :  { %5608 = vmatprep.subr.mxu0 %v4201_v10 }
0x25cf   :  { %5609 = vmatpush3.msra.mxu0 %v4201_v10  ;;  %v3466_v57 = vpop.permute.xlu0 %3465 }
0x25d0   :  { %5613 = vmatprep.subr.mxu0 %v5010_v32  ;;  %v3481_v26 = vsel %vm459_vm3, %v3479_v16, %v3466_v57 }
0x25d1   :  { %v5851_v3 = vpop.eup %5850 }
0x25d2   :  { %v4199_v19 = vmul.f32 %v5851_v3, %v5847_v46 }
0x25d3   :  { %v3474_v61 = vpop.permute.xlu0 %3473 }
0x25d4   :  { %v3483_v39 = vsel %vm1197_vm4, %v3481_v26, %v3474_v61 }
0x25d5   :  { %v5853_v33 = vpop.eup %5852 }
0x25d6   :  { %v4198_v35 = vmul.f32 %v5853_v33, %v5849_v50 }
0x25d8   :  { %5610 = vmatprep.mubr.msk.f32.mxu0 %vm459_vm3, %v4198_v35 }
0x25d9   :  { %5611 = vmatmul.mubr.msk.f32.vlgmr.msra.gmra.mxu0 %vm459_vm3, %v4199_v19 }
0x25da   :  { %5614 = vmatpush3.msra.mxu0 %v5010_v32  ;;  %5621 = vmatprep.mubr.msk.f32.mxu0 %vm183_vm1, %v3483_v39 }
0x25db   :  { %5615 = vmatprep.subr.mxu0 %v5009_v36 }
0x25dc   :  { %5616 = vmatpush3.msra.mxu0 %v5009_v36 }
0x25dd   :  { %5617 = vmatprep.subr.mxu0 %v5008_v52 }
0x25de   :  { %5618 = vmatpush3.msra.mxu0 %v5008_v52 }
0x25df   :  { %5619 = vmatprep.subr.mxu0 %v5007_v22 }
0x25e0   :  { %5620 = vmatpush3.msra.mxu0 %v5007_v22 }
0x25e1   :  { %5622 = vmatmul.mubr.msk.f32.vlgmr.msra.gmra.mxu0 %vm183_vm1, %v3484_v62  ;;  %v6920_v62 = vld [vmem:[%s7030_s10 + $0x1] ss:$0 sm:$0xff] }
0x2699   :  { %v5612_v42 = vpop.f32.mrf.mxu0 }
0x269a   :  { %4307 = vrot.lane.b32.xlu1 %v5612_v42, %s7064_s3 }
0x269b   :  { %v4278_v43 = vpop.f32.mrf.mxu0 }
0x269c   :  { %4305 = vrot.lane.b32.xlu0 %v4278_v43, %s7064_s3 }
0x26a1   :  { %v5623_v44 = vpop.f32.mrf.mxu0 }
0x26a2   :  { %v4420_v51 = vadd.f32 %v5623_v44, %v6518_v53 }
0x26a3   :  { %v4400_v23 = vpop.f32.mrf.mxu0 }
0x26a4   :  { %v4419_v45 = vadd.f32 %v4400_v23, %v6521_v54  ;;  %v6863_v47 = vadd.f32 %v5016_v37, %v4420_v51  ;;  %v4290_v54 = vpop.permute.xlu0 %4289  ;;  %v6926_v23 = vld [vmem:[%s7031_s11 + $0x1] ss:$0 sm:$0xff] }
0x26a5   :  { %v4311_v59 = vsel %vm373_vm2, %v6750_v55, %v4290_v54  ;;  %v5043_v54 = vld [vmem:[%s7034_s14 + $0xe0] sm:$0xff] }
0x26a6   :  { %v6861_v38 = vadd.f32 %v5016_v37, %v4419_v45  ;;  %v4442_v25 = vsel %vm183_vm1, %v6863_v47, 0.0 }
0x26a8   :  { %v4439_v29 = vsel %vm183_vm1, %v6861_v38, 0.0  ;;  %v4298_v53 = vpop.permute.xlu0 %4297 }
0x26a9   :  { %v4313_v0 = vsel %vm459_vm3, %v4311_v59, %v4298_v53  ;;  %v5041_v53 = vld [vmem:[%s7034_s14 + $0xd0] sm:$0xff]  ;;  %v5040_v59 = vld [vmem:[%s7034_s14 + $0xc8] sm:$0xff] }
0x26bb   :  { %4440 = vadd.xlane.f32.xlu0 %v4439_v29  ;;  %v5046_v29 = vld [vmem:[%s7034_s14 + $0xf8] sm:$0xff] }
0x26bc   :  { %5641 = vmatprep.subr.mxu0 %v5046_v29 }
0x26bd   :  { %5642 = vmatpush3.msra.mxu0 %v5046_v29  ;;  %v5048_v29 = vld [vmem:[%s7035_s15 + $0x1] ss:$0 sm:$0xff] }
0x26be   :  { %4443 = vadd.xlane.f32.xlu1 %v4442_v25  ;;  %v5045_v25 = vld [vmem:[%s7034_s14 + $0xf0] sm:$0xff] }
0x26bf   :  { %5643 = vmatprep.subr.mxu0 %v5045_v25 }
0x26c0   :  { %5644 = vmatpush3.msra.mxu0 %v5045_v25 }
0x26c1   :  { %5645 = vmatprep.subr.mxu0 %v5044_v31 }
0x26c2   :  { %5646 = vmatpush3.msra.mxu0 %v5044_v31 }
0x26c3   :  { %5647 = vmatprep.subr.mxu0 %v5043_v54 }
0x26c4   :  { %5648 = vmatpush3.msra.mxu0 %v5043_v54 }
0x26c5   :  { %5649 = vmatprep.subr.mxu0 %v5042_v30 }
0x26c6   :  { %5650 = vmatpush3.msra.mxu0 %v5042_v30 }
0x26c7   :  { %5651 = vmatprep.subr.mxu0 %v5041_v53 }
0x26c8   :  { %5652 = vmatpush3.msra.mxu0 %v5041_v53 }
0x26c9   :  { %5653 = vmatprep.subr.mxu0 %v5040_v59 }
0x26ca   :  { %5654 = vmatpush3.msra.mxu0 %v5040_v59 }
0x270c   :  { %v4308_v63 = vpop.permute.xlu1 %4307 }
0x270d   :  { %v4316_v18 = vsel %vm1197_vm4, %v4314_v20, %v4308_v63  ;;  %v5039_v63 = vld [vmem:[%s7034_s14 + $0xc0] sm:$0xff] }
0x270e   :  { %v4306_v60 = vpop.permute.xlu0 %4305  ;;  %5655 = vmatprep.subr.mxu0 %v5039_v63  ;;  %v5035_v20 = vld [vmem:[%s7034_s14 + $0xa0] sm:$0xff] }
0x270f   :  { %v4315_v5 = vsel %vm1197_vm4, %v4313_v0, %v4306_v60  ;;  %5656 = vmatpush3.msra.mxu0 %v5039_v63  ;;  %v5037_v0 = vld [vmem:[%s7034_s14 + $0xb0] sm:$0xff]  ;;  %v5036_v60 = vld [vmem:[%s7034_s14 + $0xa8] sm:$0xff] }
0x2710   :  { %5624 = vmatprep.mubr.msk.f32.mxu0 %vm183_vm1, %v4315_v5  ;;  %5657 = vmatprep.subr.mxu0 %v5038_v58  ;;  %v5034_v5 = vld [vmem:[%s7034_s14 + $0x98] sm:$0xff] }
0x2711   :  { %5625 = vmatmul.mubr.msk.f32.gmra.mxu0 %vm183_vm1, %v4316_v18  ;;  %v5033_v18 = vld [vmem:[%s7034_s14 + $0x90] sm:$0xff] }
0x2712   :  { %5658 = vmatpush3.msra.mxu0 %v5038_v58 }
0x2713   :  { %5659 = vmatprep.subr.mxu0 %v5037_v0 }
0x2714   :  { %5660 = vmatpush3.msra.mxu0 %v5037_v0 }
0x2715   :  { %5661 = vmatprep.subr.mxu0 %v5036_v60 }
0x2716   :  { %5662 = vmatpush3.msra.mxu0 %v5036_v60 }
0x2717   :  { %5663 = vmatprep.subr.mxu0 %v5035_v20 }
0x2718   :  { %5664 = vmatpush3.msra.mxu0 %v5035_v20 }
0x2719   :  { %5665 = vmatprep.subr.mxu0 %v5034_v5 }
0x271a   :  { %5666 = vmatpush3.msra.mxu0 %v5034_v5 }
0x271b   :  { %5667 = vmatprep.subr.mxu0 %v5033_v18 }
0x271c   :  { %5668 = vmatpush3.msra.mxu0 %v5033_v18 }
0x2744   :  { %v4441_v21 = vpop.xlane.xlu0 %4440 }
0x2745   :  { %v4451_v8 = vmul.f32 0.03125, %v4441_v21 }
0x2747   :  { %v4444_v6 = vpop.xlane.xlu1 %4443  ;;  %v4455_v9 = vsub.f32 %v6861_v38, %v4451_v8 }
0x2748   :  { %v4452_v56 = vmul.f32 0.03125, %v4444_v6  ;;  %v5032_v6 = vld [vmem:[%s7034_s14 + $0x88] sm:$0xff] }
0x2749   :  { %v4459_v10 = vmul.f32 %v4455_v9, %v4455_v9  ;;  %5669 = vmatprep.subr.mxu0 %v5032_v6 }
0x274a   :  { %v4456_v55 = vsub.f32 %v6863_v47, %v4452_v56  ;;  %v5031_v56 = vld [vmem:[%s7034_s14 + $0x80] sm:$0xff]  ;;  %5670 = vmatpush3.msra.mxu0 %v5032_v6 }
0x274b   :  { %v4463_v11 = vsel %vm183_vm1, %v4459_v10, 0.0  ;;  %5671 = vmatprep.subr.mxu0 %v5031_v56 }
0x274c   :  { %v4460_v2 = vmul.f32 %v4456_v55, %v4456_v55  ;;  %5672 = vmatpush3.msra.mxu0 %v5031_v56 }
0x274e   :  { %v4466_v48 = vsel %vm183_vm1, %v4460_v2, 0.0 }
0x274f   :  { %4467 = vadd.xlane.f32.xlu1 %v4466_v48 }
0x27d1   :  { %v5626_v7 = vpop.f32.mrf.mxu0 }
0x27d2   :  { %v4422_v24 = vadd.f32 %v5626_v7, %v6544_v14  ;;  %v5024_v14 = vld [vmem:[%s7032_s12 + $0x38] sm:$0xff] }
0x27d3   :  { %v4410_v28 = vpop.f32.mrf.mxu0  ;;  %5627 = vmatprep.subr.mxu1 %v5024_v14 }
0x27d4   :  { %v4421_v49 = vadd.f32 %v4410_v28, %v6547_v15  ;;  %v6886_v50 = vadd.f32 %v5016_v37, %v4422_v24  ;;  %v5023_v15 = vld [vmem:[%s7032_s12 + $0x30] sm:$0xff]  ;;  %5628 = vmatpush3.msra.mxu1 %v5024_v14  ;;  %v5026_v14 = vld [vmem:[%s7033_s13 + $0x1] ss:$0 sm:$0xff] }
0x27d5   :  { %5629 = vmatprep.subr.mxu1 %v5023_v15 }
0x27d6   :  { %v6883_v46 = vadd.f32 %v5016_v37, %v4421_v49  ;;  %v4448_v27 = vsel %vm183_vm1, %v6886_v50, 0.0  ;;  %5630 = vmatpush3.msra.mxu1 %v5023_v15 }
0x27d7   :  { %5631 = vmatprep.subr.mxu1 %v5022_v4 }
0x27d8   :  { %v4445_v34 = vsel %vm183_vm1, %v6883_v46, 0.0  ;;  %5632 = vmatpush3.msra.mxu1 %v5022_v4  ;;  %v4468_v32 = vpop.xlane.xlu1 %4467 }
0x27d9   :  { %4446 = vadd.xlane.f32.xlu0 %v4445_v34  ;;  %5633 = vmatprep.subr.mxu1 %v5021_v13  ;;  %v4476_v57 = vmul.f32 0.03125, %v4468_v32 }
0x27da   :  { %5634 = vmatpush3.msra.mxu1 %v5021_v13 }
0x27db   :  { %v4480_v61 = vadd.f32 1e-06, %v4476_v57 }
0x27dd   :  { %4449 = vadd.xlane.f32.xlu0 %v4448_v27  ;;  %5854 = vrsqrt.f32 %v4480_v61 }
0x27e1   :  { %4464 = vadd.xlane.f32.xlu0 %v4463_v11 }
0x27ea   :  { %v5855_v12 = vpop.eup %5854 }
0x27eb   :  { %v4488_v40 = vmul.f32 %v5855_v12, %v4456_v55 }
0x27ed   :  { %v4498_v44 = vmul.f32 %v6920_v62, %v4488_v40 }
0x27ef   :  { %v4508_v37 = vadd.f32 %v6926_v23, %v4498_v44 }
0x2862   :  { %v4447_v1 = vpop.xlane.xlu0 %4446 }
0x2863   :  { %v4453_v3 = vmul.f32 0.03125, %v4447_v1 }
0x2865   :  { %v6906_v33 = vsub.f32 %v6883_v46, %v4453_v3 }
0x2866   :  { %v4450_v35 = vpop.xlane.xlu0 %4449 }
0x2867   :  { %v4454_v16 = vmul.f32 0.03125, %v4450_v35  ;;  %v4461_v17 = vmul.f32 %v6906_v33, %v6906_v33 }
0x2869   :  { %v6911_v19 = vsub.f32 %v6886_v50, %v4454_v16  ;;  %v4469_v26 = vsel %vm183_vm1, %v4461_v17, 0.0 }
0x286a   :  { %4470 = vadd.xlane.f32.xlu0 %v4469_v26  ;;  %v4465_v36 = vpop.xlane.xlu0 %4464 }
0x286b   :  { %v4475_v39 = vmul.f32 0.03125, %v4465_v36  ;;  %v4462_v52 = vmul.f32 %v6911_v19, %v6911_v19 }
0x286d   :  { %v4479_v22 = vadd.f32 1e-06, %v4475_v39  ;;  %v4472_v41 = vsel %vm183_vm1, %v4462_v52, 0.0 }
0x286e   :  { %4473 = vadd.xlane.f32.xlu1 %v4472_v41 }
0x286f   :  { %5856 = vrsqrt.f32 %v4479_v22 }
0x287c   :  { %v5857_v42 = vpop.eup %5856 }
0x287d   :  { %v4487_v43 = vmul.f32 %v5857_v42, %v4455_v9 }
0x287f   :  { %v4497_v45 = vmul.f32 %v6920_v62, %v4487_v43 }
0x2881   :  { %v4507_v51 = vadd.f32 %v6926_v23, %v4497_v45 }
0x2883   :  { %5635 = vmatprep.mubr.msk.f32.mxu1 %vm183_vm1, %v4507_v51 }
0x2884   :  { %5636 = vmatmul.mubr.msk.f32.vlgmr.msra.gmra.mxu1 %vm183_vm1, %v4508_v37 }
0x28f3   :  { %v4471_v55 = vpop.xlane.xlu0 %4470 }
0x28f4   :  { %v4477_v2 = vmul.f32 0.03125, %v4471_v55 }
0x28f6   :  { %v4481_v48 = vadd.f32 1e-06, %v4477_v2 }
0x28f7   :  { %v4474_v21 = vpop.xlane.xlu1 %4473 }
0x28f8   :  { %5858 = vrsqrt.f32 %v4481_v48  ;;  %v4478_v7 = vmul.f32 0.03125, %v4474_v21 }
0x28fa   :  { %v4482_v28 = vadd.f32 1e-06, %v4478_v7 }
0x28fc   :  { %5860 = vrsqrt.f32 %v4482_v28 }
0x2905   :  { %v5859_v8 = vpop.eup %5858 }
0x2906   :  { %v4489_v24 = vmul.f32 %v5859_v8, %v6906_v33 }
0x2908   :  { %v4499_v49 = vmul.f32 %v6920_v62, %v4489_v24 }
0x2909   :  { %v5861_v9 = vpop.eup %5860 }
0x290a   :  { %v4509_v34 = vadd.f32 %v6926_v23, %v4499_v49  ;;  %v4490_v27 = vmul.f32 %v5861_v9, %v6911_v19 }
0x290c   :  { %5638 = vmatprep.mubr.msk.f32.mxu1 %vm183_vm1, %v4509_v34  ;;  %v4500_v10 = vmul.f32 %v6920_v62, %v4490_v27 }
0x290e   :  { %v4510_v11 = vadd.f32 %v6926_v23, %v4500_v10 }
0x2910   :  { %5639 = vmatmul.mubr.msk.f32.gmra.mxu1 %vm183_vm1, %v4510_v11 }
0x2944   :  { %v5637_v15 = vpop.f32.mrf.mxu1 }
0x2945   :  { %v4608_v4 = vadd.f32 %v5637_v15, %v5026_v14 }
0x2946   :  { %v4602_v13 = vpop.f32.mrf.mxu1 }
0x2947   :  { %v4626_v32 = vmul.f32 0.70710677, %v4608_v4  ;;  %v4603_v57 = vadd.f32 %v5026_v14, %v4602_v13  ;;  %v4622_v17 = vmul.f32 0.5, %v4608_v4 }
0x2949   :  { %5862 = verf.f32 %v4626_v32  ;;  %v4625_v1 = vmul.f32 0.70710677, %v4603_v57  ;;  %v4621_v35 = vmul.f32 0.5, %v4603_v57 }
0x294b   :  { %5864 = verf.f32 %v4625_v1 }
0x2956   :  { %v5863_v3 = vpop.eup %5862 }
0x2957   :  { %v4634_v61 = vadd.f32 1.0, %v5863_v3 }
0x2958   :  { %v5865_v33 = vpop.eup %5864 }
0x2959   :  { %v4633_v16 = vadd.f32 1.0, %v5865_v33  ;;  %v4638_v26 = vmul.f32 %v4634_v61, %v4622_v17 }
0x295b   :  { %v4637_v19 = vmul.f32 %v4633_v16, %v4621_v35 }
0x295d   :  { %5673 = vmatprep.mubr.f32.mxu0 %v4637_v19 }
0x295e   :  { %5674 = vmatmul.mubr.f32.vlgmr.msra.gmra.mxu0 %v4638_v26  ;;  %v5049_v26 = vld [vmem:[%s7036_s16] ss:$0 sm:$0xff]  ;;  %s5914_s16 = smov [#allocation2]  }
0x29d0   :  { %v5640_v36 = vpop.f32.mrf.mxu1 }
0x29d1   :  { %v4618_v39 = vadd.f32 %v5640_v36, %v5026_v14 }
0x29d2   :  { %v4612_v52 = vpop.f32.mrf.mxu1 }
0x29d3   :  { %v4628_v22 = vmul.f32 0.70710677, %v4618_v39  ;;  %v4613_v41 = vadd.f32 %v5026_v14, %v4612_v52  ;;  %v4624_v23 = vmul.f32 0.5, %v4618_v39 }
0x29d5   :  { %5866 = verf.f32 %v4628_v22  ;;  %v4627_v12 = vmul.f32 0.70710677, %v4613_v41  ;;  %v4623_v43 = vmul.f32 0.5, %v4613_v41 }
0x29d7   :  { %5868 = verf.f32 %v4627_v12 }
0x29e2   :  { %v5867_v40 = vpop.eup %5866 }
0x29e3   :  { %v4636_v42 = vadd.f32 1.0, %v5867_v40  ;;  %v5050_v40 = vld [vmem:[%s7037_s17] ss:$0 sm:$0xff]  ;;  %s4864_s17 = sshll.u32 %s5914_s16, 4  ;;  %s4865_s17 = int_to_ptr.vmem [resolvable:$true] %s4864_s17 }
0x29e4   :  { %v5869_v62 = vpop.eup %5868  ;;  %s5878_s6 = scalar_lea.vmem %s4865_s17, 32  ;;  %p5883_p1 = scmp.lt.s32.totalorder %s4865_s17, %s4865_s17 }
0x29e5   :  { %v4635_v44 = vadd.f32 1.0, %v5869_v62  ;;  %v4640_v51 = vmul.f32 %v4636_v42, %v4624_v23  ;;  %p5879_p0 = scmp.ne.s32.totalorder %s4865_s17, %s5878_s6  ;;  %p5884_p2 = scmp.lt.s32.totalorder %s5878_s6, %s5878_s6 }
0x29e7   :  { %v4639_v45 = vmul.f32 %v4635_v44, %v4623_v43  ;;  %p5885_p3 = por %p5884_p2, %p5883_p1 }
0x29e9   :  { %5676 = vmatprep.mubr.f32.mxu0 %v4639_v45  ;;  %p5886_p4 = pnand %p5885_p3, %p5879_p0 }
0x29ea   :  { %5677 = vmatmul.mubr.f32.gmra.mxu0 %v4640_v51 }
0x2a1e   :  { %v5675_v37 = vpop.f32.mrf.mxu0 }
0x2a1f   :  { %v4744_v25 = vadd.f32 %v5675_v37, %v6863_v47 }
0x2a20   :  { %v4724_v31 = vpop.f32.mrf.mxu0 }
0x2a21   :  { %v4756_v54 = vadd.f32 %v5048_v29, %v4744_v25  ;;  %v4743_v30 = vadd.f32 %v4724_v31, %v6861_v38 }
0x2a23   :  { %v4755_v53 = vadd.f32 %v5048_v29, %v4743_v30  ;;  %v4764_v59 = vsel %vm183_vm1, %v4756_v54, 0.0 }
0x2a24   :  { %4765 = vadd.xlane.f32.xlu1 %v4764_v59 }
0x2a25   :  { %v4761_v63 = vsel %vm183_vm1, %v4755_v53, 0.0 }
0x2a26   :  { %4762 = vadd.xlane.f32.xlu0 %v4761_v63 }
0x2aaa   :  { %v5678_v58 = vpop.f32.mrf.mxu0 }
0x2aab   :  { %v4746_v0 = vadd.f32 %v5678_v58, %v6886_v50 }
0x2aac   :  { %v4734_v60 = vpop.f32.mrf.mxu0 }
0x2aad   :  { %v4758_v20 = vadd.f32 %v5048_v29, %v4746_v0  ;;  %v4745_v5 = vadd.f32 %v4734_v60, %v6883_v46  ;;  %v4766_v18 = vpop.xlane.xlu1 %4765 }
0x2aae   :  { %v4774_v47 = vmul.f32 0.03125, %v4766_v18 }
0x2aaf   :  { %v4757_v6 = vadd.f32 %v5048_v29, %v4745_v5  ;;  %v4763_v56 = vpop.xlane.xlu0 %4762  ;;  %v4770_v38 = vsel %vm183_vm1, %v4758_v20, 0.0 }
0x2ab0   :  { %v4778_v55 = vsub.f32 %v4756_v54, %v4774_v47  ;;  %v4773_v2 = vmul.f32 0.03125, %v4763_v56  ;;  %4771 = vadd.xlane.f32.xlu1 %v4770_v38 }
0x2ab1   :  { %v4767_v48 = vsel %vm183_vm1, %v4757_v6, 0.0 }
0x2ab2   :  { %v4777_v21 = vsub.f32 %v4755_v53, %v4773_v2  ;;  %4768 = vadd.xlane.f32.xlu0 %v4767_v48  ;;  %v4782_v7 = vmul.f32 %v4778_v55, %v4778_v55 }
0x2ab4   :  { %v4788_v50 = vsel %vm183_vm1, %v4782_v7, 0.0  ;;  %v4781_v28 = vmul.f32 %v4777_v21, %v4777_v21 }
0x2ab5   :  { %4789 = vadd.xlane.f32.xlu1 %v4788_v50 }
0x2ab6   :  { %v4785_v46 = vsel %vm183_vm1, %v4781_v28, 0.0 }
0x2ab7   :  { %4786 = vadd.xlane.f32.xlu0 %v4785_v46 }
0x2b39   :  { %v4772_v8 = vpop.xlane.xlu1 %4771 }
0x2b3a   :  { %v4776_v24 = vmul.f32 0.03125, %v4772_v8 }
0x2b3b   :  { %v4769_v49 = vpop.xlane.xlu0 %4768 }
0x2b3c   :  { %v4780_v9 = vsub.f32 %v4758_v20, %v4776_v24  ;;  %v4775_v34 = vmul.f32 0.03125, %v4769_v49 }
0x2b3e   :  { %v4779_v27 = vsub.f32 %v4757_v6, %v4775_v34  ;;  %v4784_v10 = vmul.f32 %v4780_v9, %v4780_v9  ;;  %v4790_v13 = vpop.xlane.xlu1 %4789 }
0x2b3f   :  { %v4798_v57 = vmul.f32 0.03125, %v4790_v13 }
0x2b40   :  { %v4794_v11 = vsel %vm183_vm1, %v4784_v10, 0.0  ;;  %v4783_v14 = vmul.f32 %v4779_v27, %v4779_v27  ;;  %v4787_v4 = vpop.xlane.xlu0 %4786 }
0x2b41   :  { %4795 = vadd.xlane.f32.xlu1 %v4794_v11  ;;  %v4797_v32 = vmul.f32 0.03125, %v4787_v4  ;;  %v4802_v3 = vadd.f32 1e-06, %v4798_v57 }
0x2b42   :  { %v4791_v15 = vsel %vm183_vm1, %v4783_v14, 0.0 }
0x2b43   :  { %4792 = vadd.xlane.f32.xlu0 %v4791_v15  ;;  %v4801_v1 = vadd.f32 1e-06, %v4797_v32 }
0x2b45   :  { %5870 = vrsqrt.f32 %v4801_v1 }
0x2b46   :  { %5872 = vrsqrt.f32 %v4802_v3 }
0x2b52   :  { %v5871_v33 = vpop.eup %5870 }
0x2b53   :  { %v5873_v61 = vpop.eup %5872  ;;  %v4809_v35 = vmul.f32 %v5871_v33, %v4777_v21 }
0x2b54   :  { %v4810_v17 = vmul.f32 %v5873_v61, %v4778_v55 }
0x2b55   :  { %v4819_v39 = vmul.f32 %v5049_v26, %v4809_v35 }
0x2b56   :  { %v4820_v41 = vmul.f32 %v5049_v26, %v4810_v17 }
0x2b57   :  { %v4829_v62 = vadd.f32 %v5050_v40, %v4819_v39 }
0x2b58   :  { %v4830_v42 = vadd.f32 %v5050_v40, %v4820_v41 }
0x2b59   :  { %v4833_v43 = vsel %vm183_vm1, %v4829_v62, 0.0 }
0x2b5a   :  { %v4834_v44 = vsel %vm183_vm1, %v4830_v42, 0.0 }
0x2b5b   :  { %v4835_v23 = vadd.f32 %v4834_v44, %v4833_v43 }
0x2b5d   :  { %v4836_v51 = vrot.slane %v4835_v23, 4 }
0x2b5f   :  { %v4837_v54 = vadd.f32 %v4836_v51, %v4835_v23 }
0x2b61   :  { %v4838_v63 = vrot.slane %v4837_v54, 2 }
0x2b63   :  { %v4839_v20 = vadd.f32 %v4838_v63, %v4837_v54 }
0x2b65   :  { %v4840_v47 = vrot.slane %v4839_v20, 1 }
0x2b67   :  { %v4841_v38 = vadd.f32 %v4840_v47, %v4839_v20 }
0x2b69   :  { %v4843_v48 = vmul.f32 0.0625, %v4841_v38 }
0x2bca   :  { %v4796_v16 = vpop.xlane.xlu1 %4795 }
0x2bcb   :  { %v4800_v19 = vmul.f32 0.03125, %v4796_v16 }
0x2bcc   :  { %v4793_v36 = vpop.xlane.xlu0 %4792 }
0x2bcd   :  { %v4804_v52 = vadd.f32 1e-06, %v4800_v19  ;;  %v4799_v22 = vmul.f32 0.03125, %v4793_v36 }
0x2bcf   :  { %5874 = vrsqrt.f32 %v4804_v52  ;;  %v4803_v12 = vadd.f32 1e-06, %v4799_v22 }
0x2bd1   :  { %5876 = vrsqrt.f32 %v4803_v12 }
0x2bdc   :  { %v5875_v45 = vpop.eup %5874 }
0x2bdd   :  { %v4812_v37 = vmul.f32 %v5875_v45, %v4780_v9 }
0x2bde   :  { %v5877_v29 = vpop.eup %5876 }
0x2bdf   :  { %v4822_v25 = vmul.f32 %v5049_v26, %v4812_v37  ;;  %v4811_v31 = vmul.f32 %v5877_v29, %v4779_v27 }
0x2be1   :  { %v4821_v30 = vmul.f32 %v5049_v26, %v4811_v31  ;;  %v4832_v53 = vadd.f32 %v5050_v40, %v4822_v25 }
0x2be3   :  { %v4831_v59 = vadd.f32 %v5050_v40, %v4821_v30  ;;  %v4845_v0 = vsel %vm183_vm1, %v4832_v53, 0.0 }
0x2be5   :  { %v4844_v58 = vsel %vm183_vm1, %v4831_v59, 0.0 }
0x2be6   :  { %v4846_v60 = vadd.f32 %v4845_v0, %v4844_v58 }
0x2be8   :  { %v4847_v5 = vrot.slane %v4846_v60, 4 }
0x2bea   :  { %v4848_v18 = vadd.f32 %v4847_v5, %v4846_v60 }
0x2bec   :  { %v4849_v6 = vrot.slane %v4848_v18, 2 }
0x2bee   :  { %v4850_v56 = vadd.f32 %v4849_v6, %v4848_v18 }
0x2bf0   :  { %v4851_v55 = vrot.slane %v4850_v56, 1 }
0x2bf2   :  { %v4852_v2 = vadd.f32 %v4851_v55, %v4850_v56 }
0x2bf4   :  { %v4853_v21 = vmul.f32 0.0625, %v4852_v2 }
0x2bf6   :  { %v4855_v7 = vsel %vm4854_vm5, %v4843_v48, %v4853_v21 }
0x2bf7   :  { %4857 = vst.msk [vmem:[#allocation2] sm:$0x3] %vm4856_vm6, %v4855_v7 }
0x2bf8   :  { %5889 = shalt.err (!%p5886_p4)
}
0x2bf9   :  { %4867 = dma.vmem_to_hbm [thread:$0]  %s4865_s17, 32, %s7038_s18, [#allocation3]  }
0x2bfa   :  { %5898 = dma.done.wait [#allocation3], 32  }
0x2bfb   :  { %5899 = vsyncadd [#allocation3], 4294967264 }
0x2bfc   :  { %4871 = vsyncpa [#allocation3], 1 }

</bundles_post_ra>
